<compile_context>
chip_gen: v6e
topology: v6e:2x2x1
jax: 0.10.0
libtpu: 0.0.40
codegen_flags: <defaults>
</compile_context>

<pallas_src>
import jax
import jax.numpy as jnp
from jax import lax
from jax.experimental import pallas as pl
from jax.experimental.pallas import tpu as pltpu


def att_lstm_kernel(x_ref, wih_ref, whh_ref, b_ref, watt_ref, wfc_ref, bfc_ref,
                    o_ref, gx_ref, ht_ref):
    # x_ref:    (T, D, Bt)    time-major, batch-in-lanes input (matmul dtype)
    # wih_ref:  (4H, D)       W_ih, gate rows ordered [i, f, o, g] (matmul dtype)
    # whh_ref:  (4H, H)       W_hh, same row order                  (matmul dtype)
    # b_ref:    (4H, 1)       b_ih + b_hh, same row order           (f32)
    # watt_ref: (T, H)        time-attention W                      (f32)
    # wfc_ref:  (O8, H)       fc.weight (rows padded to mult of 8)  (matmul dtype)
    # bfc_ref:  (O8, 1)       fc.bias                               (f32)
    # o_ref:    (O8, Bt)      output tile, batch-in-lanes           (f32)
    # gx_ref:   (T, 4H, Bt)   f32 scratch: input projections
    # ht_ref:   (T, H, Bt)    f32 scratch: per-step hidden states
    T = x_ref.shape[0]
    H = whh_ref.shape[1]
    Bt = x_ref.shape[2]
    mm_dtype = whh_ref.dtype

    wih = wih_ref[...]
    whh = whh_ref[...]
    bias = b_ref[...]                                   # (4H, 1) f32

    # Input projections for all timesteps up front (off the serial h-chain).
    # T is small & static -> plain Python loop, static leading-axis stores.
    for t in range(T):
        gx_ref[t] = jnp.dot(wih, x_ref[t],
                            preferred_element_type=jnp.float32) + bias

    def step(t, carry):
        h, c = carry                                    # f32 (H, Bt)
        g = gx_ref[t] + jnp.dot(whh, h.astype(mm_dtype),
                                preferred_element_type=jnp.float32)   # (4H, Bt)
        # Gate rows are [i, f, o, g]: one fused sigmoid over the 3H sigmoid
        # gates (lane-dense, 8-aligned sublane slices), one tanh on the rest.
        sig = jax.nn.sigmoid(g[0:3 * H])
        i_g = sig[0 * H:1 * H]
        f_g = sig[1 * H:2 * H]
        o_g = sig[2 * H:3 * H]
        g_g = jnp.tanh(g[3 * H:4 * H])
        c_new = f_g * c + i_g * g_g
        h_new = o_g * jnp.tanh(c_new)
        ht_ref[t] = h_new                               # leading-axis VMEM store
        return h_new, c_new

    h0 = jnp.zeros((H, Bt), jnp.float32)
    c0 = jnp.zeros((H, Bt), jnp.float32)
    # Fully unrolled (T small & static): scheduler can overlap MXU/EUP/VPU
    # work across steps; only (h, c) are carried in vregs.
    lax.fori_loop(0, T, step, (h0, c0), unroll=True)

    # --- time attention: softmax over T of sum_h(ht * W) ---
    ht = ht_ref[...]                                    # (T, H, Bt) f32
    watt = watt_ref[...]                                # (T, H)     f32
    scores = jnp.sum(ht * watt[:, :, None], axis=1)     # (T, Bt)
    scores = scores - jnp.max(scores, axis=0, keepdims=True)
    e = jnp.exp(scores)
    att = e / jnp.sum(e, axis=0, keepdims=True)         # (T, Bt)

    # bmm(att[B,1,T], ht[B,T,H]) in batch-in-lanes form -> (H, Bt)
    att_ht = jnp.sum(att[:, None, :] * ht, axis=0)      # (H, Bt)

    # fc: Linear + ReLU, still batch-in-lanes.
    out = jnp.dot(wfc_ref[...], att_ht.astype(mm_dtype),
                  preferred_element_type=jnp.float32) + bfc_ref[...]
    o_ref[...] = jnp.maximum(out, 0.0).astype(o_ref.dtype)


def _round_up(a, m):
    return ((a + m - 1) // m) * m


def att_lstm_forward(x, params, *, b_tile=None, matmul_dtype=jnp.bfloat16):
    """x: (B, T, D) f32  ->  (B, 1, out_dim) f32 (matches the PyTorch module)."""
    B, T, D = x.shape
    H = params["w_hh"].shape[1]
    O = params["w_fc"].shape[0]
    mm = matmul_dtype

    # --- gate-row reorder: PyTorch [i, f, g, o] -> [i, f, o, g] so the three
    #     sigmoid gates are contiguous (fused sigmoid in the kernel). ---
    def reorder(w):
        i_r, f_r, g_r, o_r = jnp.split(w, 4, axis=0)
        return jnp.concatenate([i_r, f_r, o_r, g_r], axis=0)

    wih = reorder(params["w_ih"]).astype(mm)                            # (4H, D)
    whh = reorder(params["w_hh"]).astype(mm)                            # (4H, H)
    b = reorder((params["b_ih"] + params["b_hh"])[:, None]).astype(jnp.float32)  # (4H,1)
    watt = params["w_att"].astype(jnp.float32)                          # (T, H)

    # fc weights stay in PyTorch (O, H) orientation (batch-in-lanes matmul);
    # pad the O rows to a multiple of 8 sublanes.
    O8 = _round_up(O, 8)
    wfc = params["w_fc"]
    bfc = params["b_fc"][:, None]
    if O8 != O:
        wfc = jnp.pad(wfc, ((0, O8 - O), (0, 0)))
        bfc = jnp.pad(bfc, ((0, O8 - O), (0, 0)))
    wfc = wfc.astype(mm)                                                # (O8, H)
    bfc = bfc.astype(jnp.float32)                                       # (O8, 1)

    # --- batch tiling: one big tile for small B; lane-dense (multiple of 128)
    #     tiles for large B. (For v7x megacore an even number of tiles keeps
    #     both TensorCores busy.) ---
    B8 = _round_up(B, 8)
    if b_tile is None:
        b_tile = B8 if B8 <= 512 else 256
    b_tile = int(b_tile)
    if b_tile >= B8:
        b_tile = B8
    else:
        b_tile = min(_round_up(b_tile, 128), _round_up(B8, 128))
    Bp = _round_up(B, b_tile)
    num_tiles = Bp // b_tile

    xp = x if Bp == B else jnp.pad(x, ((0, Bp - B), (0, 0), (0, 0)))
    x_tdb = jnp.transpose(xp, (1, 2, 0)).astype(mm)        # (T, D, Bp)

    grid_spec = pltpu.PrefetchScalarGridSpec(
        num_scalar_prefetch=0,
        grid=(num_tiles,),
        in_specs=[
            pl.BlockSpec((T, D, b_tile), lambda i: (0, 0, i)),   # x (pipelined)
            pl.BlockSpec((4 * H, D), lambda i: (0, 0)),          # wih (resident)
            pl.BlockSpec((4 * H, H), lambda i: (0, 0)),          # whh
            pl.BlockSpec((4 * H, 1), lambda i: (0, 0)),          # bias
            pl.BlockSpec((T, H), lambda i: (0, 0)),              # watt
            pl.BlockSpec((O8, H), lambda i: (0, 0)),             # wfc
            pl.BlockSpec((O8, 1), lambda i: (0, 0)),             # bfc
        ],
        out_specs=pl.BlockSpec((O8, b_tile), lambda i: (0, i)),
        scratch_shapes=[
            pltpu.VMEM((T, 4 * H, b_tile), jnp.float32),         # gx scratch
            pltpu.VMEM((T, H, b_tile), jnp.float32),             # ht scratch
        ],
    )

    # VMEM budget: double-buffered x/out tiles + resident weights + scratch,
    # generous headroom, 16 MiB floor, capped at 64 MiB (v7x-safe).
    itemsize = jnp.dtype(mm).itemsize
    x_tile_bytes = T * D * b_tile * itemsize
    out_tile_bytes = O8 * b_tile * 4
    weight_bytes = (4 * H * D + 4 * H * H + O8 * H) * itemsize \
        + (4 * H + T * H + O8) * 4
    scratch_bytes = T * b_tile * (4 * H + H) * 4
    vmem_limit = int(min(64 * 1024 * 1024,
                         max(16 * 1024 * 1024,
                             4 * (2 * (x_tile_bytes + out_tile_bytes)
                                  + 2 * weight_bytes + scratch_bytes))))

    cost = pl.CostEstimate(
        flops=int(2 * Bp * T * D * 4 * H          # input projection
                  + 2 * Bp * T * H * 4 * H        # recurrent matmuls
                  + 2 * Bp * H * O8               # fc
                  + 12 * Bp * T * H),             # gates / attention elementwise
        transcendentals=int(Bp * T * (5 * H + 1)),  # sigmoid/tanh/exp
        bytes_accessed=int(x_tdb.size * itemsize
                           + (wih.size + whh.size + wfc.size) * itemsize
                           + (b.size + watt.size + bfc.size) * 4
                           + O8 * Bp * 4),
    )

    out = pl.pallas_call(
        att_lstm_kernel,
        out_shape=jax.ShapeDtypeStruct((O8, Bp), jnp.float32),
        grid_spec=grid_spec,
        compiler_params=pltpu.CompilerParams(
            dimension_semantics=("parallel",),
            vmem_limit_bytes=vmem_limit,
        ),
        cost_estimate=cost,
    )(x_tdb, wih, whh, b, watt, wfc, bfc)

    # (O8, Bp) batch-in-lanes -> (B, 1, out_dim), matching the torch output.
    return jnp.transpose(out[:O, :B])[:, None, :]


def init_params(key, lag, in_dim, hidden, out_dim):
    """PyTorch-native parameter shapes (gate order [i, f, g, o])."""
    k = jax.random.split(key, 7)
    s = 1.0 / jnp.sqrt(hidden)
    w_ih = jax.random.uniform(k[0], (4 * hidden, in_dim), jnp.float32, -s, s)
    w_hh = jax.random.uniform(k[1], (4 * hidden, hidden), jnp.float32, -s, s)
    b_ih = jax.random.uniform(k[2], (4 * hidden,), jnp.float32, -s, s)
    b_hh = jax.random.uniform(k[3], (4 * hidden,), jnp.float32, -s, s)
    std_att = jnp.sqrt(2.0 / (lag + hidden))                  # xavier_normal
    w_att = std_att * jax.random.normal(k[4], (lag, hidden), jnp.float32)
    sf = 1.0 / jnp.sqrt(hidden)
    w_fc = jax.random.uniform(k[5], (out_dim, hidden), jnp.float32, -sf, sf)
    b_fc = jax.random.uniform(k[6], (out_dim,), jnp.float32, -sf, sf)
    return {"w_ih": w_ih, "w_hh": w_hh, "b_ih": b_ih, "b_hh": b_hh,
            "w_att": w_att, "w_fc": w_fc, "b_fc": b_fc}


def att_lstm_reference(x, params):
    """Pure-JAX f32 reference with identical semantics (for verification)."""
    B, T, D = x.shape
    H = params["w_hh"].shape[1]
    gx = jnp.einsum("btd,gd->btg", x, params["w_ih"]) \
        + (params["b_ih"] + params["b_hh"])

    def step(carry, g_t):
        h, c = carry
        g_t = g_t + h @ params["w_hh"].T
        i = jax.nn.sigmoid(g_t[:, 0 * H:1 * H])
        f = jax.nn.sigmoid(g_t[:, 1 * H:2 * H])
        g = jnp.tanh(g_t[:, 2 * H:3 * H])
        o = jax.nn.sigmoid(g_t[:, 3 * H:4 * H])
        c = f * c + i * g
        h = o * jnp.tanh(c)
        return (h, c), h

    (_, _), ht = lax.scan(step, (jnp.zeros((B, H)), jnp.zeros((B, H))),
                          jnp.swapaxes(gx, 0, 1))
    ht = jnp.swapaxes(ht, 0, 1)                                  # (B, T, H)
    scores = jnp.sum(ht * params["w_att"][None], axis=2)         # (B, T)
    att = jax.nn.softmax(scores, axis=1)
    att_ht = jnp.einsum("bt,bth->bh", att, ht)
    out = jnp.maximum(att_ht @ params["w_fc"].T + params["b_fc"], 0.0)
    return out[:, None, :]


if __name__ == "__main__":
    # Module defaults: hidden=32, out=32; lag=8, in_dim=4.
    B, lag, in_dim, hidden, out_dim = 16, 8, 4, 32, 32
    key = jax.random.PRNGKey(0)
    kx, kp, kx2 = jax.random.split(key, 3)
    x = jax.random.normal(kx, (B, lag, in_dim), jnp.float32)
    params = init_params(kp, lag, in_dim, hidden, out_dim)

    y_ref = att_lstm_reference(x, params)

    # f32 matmul operands, single batch tile: tight check vs reference.
    y = att_lstm_forward(x, params, matmul_dtype=jnp.float32)
    jax.block_until_ready(y)
    assert y.shape == (B, 1, out_dim)
    assert jnp.allclose(y, y_ref, atol=1e-5, rtol=1e-5), "f32 mismatch vs reference"

    # bf16 matmul operands (MXU-native on v5e/v6e/v7x); state/softmax stay f32.
    y_bf = att_lstm_forward(x, params, matmul_dtype=jnp.bfloat16)
    jax.block_until_ready(y_bf)
    assert jnp.allclose(y_bf, y_ref, atol=5e-2, rtol=5e-2), "bf16 mismatch vs reference"

    # Multi-tile grid path: lane-dense 128-row tiles, padded batch rows.
    B2 = 144
    x2 = jax.random.normal(kx2, (B2, lag, in_dim), jnp.float32)
    y2_ref = att_lstm_reference(x2, params)
    y2 = att_lstm_forward(x2, params, b_tile=128, matmul_dtype=jnp.float32)
    jax.block_until_ready(y2)
    assert y2.shape == (B2, 1, out_dim)
    assert jnp.allclose(y2, y2_ref, atol=1e-5, rtol=1e-5), "multi-tile mismatch vs reference"

    print("KERNEL_OK")
</pallas_src>

<mosaic_0001>
module attributes {stable_mosaic.version = 11 : i64} {
  func.func @att_lstm_kernel(%arg0: i32, %arg1: memref<8x4x16xf32, #tpu.memory_space<vmem>>, %arg2: memref<128x4xf32, #tpu.memory_space<vmem>>, %arg3: memref<128x32xf32, #tpu.memory_space<vmem>>, %arg4: memref<128x1xf32, #tpu.memory_space<vmem>>, %arg5: memref<8x32xf32, #tpu.memory_space<vmem>>, %arg6: memref<32x32xf32, #tpu.memory_space<vmem>>, %arg7: memref<32x1xf32, #tpu.memory_space<vmem>>, %arg8: memref<32x16xf32, #tpu.memory_space<vmem>>, %arg9: memref<8x128x16xf32, #tpu.memory_space<vmem>>, %arg10: memref<8x32x16xf32, #tpu.memory_space<vmem>>) attributes {dimension_semantics = [#tpu.dimension_semantics<parallel>], iteration_bounds = array<i64: 1>, scalar_prefetch = 0 : i64, scratch_operands = 2 : i64, tpu.core_type = #tpu.core_type<tc>, window_params = [{transform_indices = @transform_0, window_bounds = array<i64: 8, 4, 16>}, {pipeline_mode = #tpu.pipeline_mode<synchronous>, transform_indices = @transform_1, window_bounds = array<i64: 128, 4>}, {pipeline_mode = #tpu.pipeline_mode<synchronous>, transform_indices = @transform_2, window_bounds = array<i64: 128, 32>}, {pipeline_mode = #tpu.pipeline_mode<synchronous>, transform_indices = @transform_3, window_bounds = array<i64: 128, 1>}, {pipeline_mode = #tpu.pipeline_mode<synchronous>, transform_indices = @transform_4, window_bounds = array<i64: 8, 32>}, {pipeline_mode = #tpu.pipeline_mode<synchronous>, transform_indices = @transform_5, window_bounds = array<i64: 32, 32>}, {pipeline_mode = #tpu.pipeline_mode<synchronous>, transform_indices = @transform_6, window_bounds = array<i64: 32, 1>}, {transform_indices = @transform_7, window_bounds = array<i64: 32, 16>}]} {
    %c0 = arith.constant 0 : index
    %c0_0 = arith.constant 0 : index
    %0 = vector.load %arg2[%c0, %c0_0] : memref<128x4xf32, #tpu.memory_space<vmem>>, vector<128x4xf32>
    %c0_1 = arith.constant 0 : index
    %c0_2 = arith.constant 0 : index
    %1 = vector.load %arg3[%c0_1, %c0_2] : memref<128x32xf32, #tpu.memory_space<vmem>>, vector<128x32xf32>
    %c0_3 = arith.constant 0 : index
    %c0_4 = arith.constant 0 : index
    %2 = vector.load %arg4[%c0_3, %c0_4] : memref<128x1xf32, #tpu.memory_space<vmem>>, vector<128x1xf32>
    %c0_5 = arith.constant 0 : index
    %c0_6 = arith.constant 0 : index
    %c0_7 = arith.constant 0 : index
    %3 = vector.load %arg1[%c0_5, %c0_6, %c0_7] : memref<8x4x16xf32, #tpu.memory_space<vmem>>, vector<1x4x16xf32>
    %4 = vector.shape_cast %3 : vector<1x4x16xf32> to vector<4x16xf32>
    %cst = arith.constant dense<0.000000e+00> : vector<128x16xf32>
    %5 = tpu.matmul %0, %4, %cst {dimension_numbers = #tpu.dot_dimension_numbers<[1], [0], [0], [1], [0, 0, 1, 1], [], []>} : vector<128x4xf32>, vector<4x16xf32>, vector<128x16xf32> -> vector<128x16xf32>
    %6 = vector.broadcast %2 : vector<128x1xf32> to vector<128x16xf32>
    %7 = arith.addf %5, %6 : vector<128x16xf32>
    %c0_8 = arith.constant 0 : index
    %c0_9 = arith.constant 0 : index
    %c0_10 = arith.constant 0 : index
    %8 = vector.load %arg9[%c0_8, %c0_9, %c0_10] : memref<8x128x16xf32, #tpu.memory_space<vmem>>, vector<1x128x16xf32>
    %9 = vector.shape_cast %8 : vector<1x128x16xf32> to vector<128x16xf32>
    %10 = vector.shape_cast %7 : vector<128x16xf32> to vector<1x128x16xf32>
    tpu.vector_store %arg9[%c0_8, %c0_9, %c0_10], %10 {strides = array<i32>} : memref<8x128x16xf32, #tpu.memory_space<vmem>>, vector<1x128x16xf32>,
    %c1 = arith.constant 1 : index
    %c0_11 = arith.constant 0 : index
    %c0_12 = arith.constant 0 : index
    %11 = vector.load %arg1[%c1, %c0_11, %c0_12] : memref<8x4x16xf32, #tpu.memory_space<vmem>>, vector<1x4x16xf32>
    %12 = vector.shape_cast %11 : vector<1x4x16xf32> to vector<4x16xf32>
    %cst_13 = arith.constant dense<0.000000e+00> : vector<128x16xf32>
    %13 = tpu.matmul %0, %12, %cst_13 {dimension_numbers = #tpu.dot_dimension_numbers<[1], [0], [0], [1], [0, 0, 1, 1], [], []>} : vector<128x4xf32>, vector<4x16xf32>, vector<128x16xf32> -> vector<128x16xf32>
    %14 = vector.broadcast %2 : vector<128x1xf32> to vector<128x16xf32>
    %15 = arith.addf %13, %14 : vector<128x16xf32>
    %c1_14 = arith.constant 1 : index
    %c0_15 = arith.constant 0 : index
    %c0_16 = arith.constant 0 : index
    %16 = vector.load %arg9[%c1_14, %c0_15, %c0_16] : memref<8x128x16xf32, #tpu.memory_space<vmem>>, vector<1x128x16xf32>
    %17 = vector.shape_cast %16 : vector<1x128x16xf32> to vector<128x16xf32>
    %18 = vector.shape_cast %15 : vector<128x16xf32> to vector<1x128x16xf32>
    tpu.vector_store %arg9[%c1_14, %c0_15, %c0_16], %18 {strides = array<i32>} : memref<8x128x16xf32, #tpu.memory_space<vmem>>, vector<1x128x16xf32>,
    %c2 = arith.constant 2 : index
    %c0_17 = arith.constant 0 : index
    %c0_18 = arith.constant 0 : index
    %19 = vector.load %arg1[%c2, %c0_17, %c0_18] : memref<8x4x16xf32, #tpu.memory_space<vmem>>, vector<1x4x16xf32>
    %20 = vector.shape_cast %19 : vector<1x4x16xf32> to vector<4x16xf32>
    %cst_19 = arith.constant dense<0.000000e+00> : vector<128x16xf32>
    %21 = tpu.matmul %0, %20, %cst_19 {dimension_numbers = #tpu.dot_dimension_numbers<[1], [0], [0], [1], [0, 0, 1, 1], [], []>} : vector<128x4xf32>, vector<4x16xf32>, vector<128x16xf32> -> vector<128x16xf32>
    %22 = vector.broadcast %2 : vector<128x1xf32> to vector<128x16xf32>
    %23 = arith.addf %21, %22 : vector<128x16xf32>
    %c2_20 = arith.constant 2 : index
    %c0_21 = arith.constant 0 : index
    %c0_22 = arith.constant 0 : index
    %24 = vector.load %arg9[%c2_20, %c0_21, %c0_22] : memref<8x128x16xf32, #tpu.memory_space<vmem>>, vector<1x128x16xf32>
    %25 = vector.shape_cast %24 : vector<1x128x16xf32> to vector<128x16xf32>
    %26 = vector.shape_cast %23 : vector<128x16xf32> to vector<1x128x16xf32>
    tpu.vector_store %arg9[%c2_20, %c0_21, %c0_22], %26 {strides = array<i32>} : memref<8x128x16xf32, #tpu.memory_space<vmem>>, vector<1x128x16xf32>,
    %c3 = arith.constant 3 : index
    %c0_23 = arith.constant 0 : index
    %c0_24 = arith.constant 0 : index
    %27 = vector.load %arg1[%c3, %c0_23, %c0_24] : memref<8x4x16xf32, #tpu.memory_space<vmem>>, vector<1x4x16xf32>
    %28 = vector.shape_cast %27 : vector<1x4x16xf32> to vector<4x16xf32>
    %cst_25 = arith.constant dense<0.000000e+00> : vector<128x16xf32>
    %29 = tpu.matmul %0, %28, %cst_25 {dimension_numbers = #tpu.dot_dimension_numbers<[1], [0], [0], [1], [0, 0, 1, 1], [], []>} : vector<128x4xf32>, vector<4x16xf32>, vector<128x16xf32> -> vector<128x16xf32>
    %30 = vector.broadcast %2 : vector<128x1xf32> to vector<128x16xf32>
    %31 = arith.addf %29, %30 : vector<128x16xf32>
    %c3_26 = arith.constant 3 : index
    %c0_27 = arith.constant 0 : index
    %c0_28 = arith.constant 0 : index
    %32 = vector.load %arg9[%c3_26, %c0_27, %c0_28] : memref<8x128x16xf32, #tpu.memory_space<vmem>>, vector<1x128x16xf32>
    %33 = vector.shape_cast %32 : vector<1x128x16xf32> to vector<128x16xf32>
    %34 = vector.shape_cast %31 : vector<128x16xf32> to vector<1x128x16xf32>
    tpu.vector_store %arg9[%c3_26, %c0_27, %c0_28], %34 {strides = array<i32>} : memref<8x128x16xf32, #tpu.memory_space<vmem>>, vector<1x128x16xf32>,
    %c4 = arith.constant 4 : index
    %c0_29 = arith.constant 0 : index
    %c0_30 = arith.constant 0 : index
    %35 = vector.load %arg1[%c4, %c0_29, %c0_30] : memref<8x4x16xf32, #tpu.memory_space<vmem>>, vector<1x4x16xf32>
    %36 = vector.shape_cast %35 : vector<1x4x16xf32> to vector<4x16xf32>
    %cst_31 = arith.constant dense<0.000000e+00> : vector<128x16xf32>
    %37 = tpu.matmul %0, %36, %cst_31 {dimension_numbers = #tpu.dot_dimension_numbers<[1], [0], [0], [1], [0, 0, 1, 1], [], []>} : vector<128x4xf32>, vector<4x16xf32>, vector<128x16xf32> -> vector<128x16xf32>
    %38 = vector.broadcast %2 : vector<128x1xf32> to vector<128x16xf32>
    %39 = arith.addf %37, %38 : vector<128x16xf32>
    %c4_32 = arith.constant 4 : index
    %c0_33 = arith.constant 0 : index
    %c0_34 = arith.constant 0 : index
    %40 = vector.load %arg9[%c4_32, %c0_33, %c0_34] : memref<8x128x16xf32, #tpu.memory_space<vmem>>, vector<1x128x16xf32>
    %41 = vector.shape_cast %40 : vector<1x128x16xf32> to vector<128x16xf32>
    %42 = vector.shape_cast %39 : vector<128x16xf32> to vector<1x128x16xf32>
    tpu.vector_store %arg9[%c4_32, %c0_33, %c0_34], %42 {strides = array<i32>} : memref<8x128x16xf32, #tpu.memory_space<vmem>>, vector<1x128x16xf32>,
    %c5 = arith.constant 5 : index
    %c0_35 = arith.constant 0 : index
    %c0_36 = arith.constant 0 : index
    %43 = vector.load %arg1[%c5, %c0_35, %c0_36] : memref<8x4x16xf32, #tpu.memory_space<vmem>>, vector<1x4x16xf32>
    %44 = vector.shape_cast %43 : vector<1x4x16xf32> to vector<4x16xf32>
    %cst_37 = arith.constant dense<0.000000e+00> : vector<128x16xf32>
    %45 = tpu.matmul %0, %44, %cst_37 {dimension_numbers = #tpu.dot_dimension_numbers<[1], [0], [0], [1], [0, 0, 1, 1], [], []>} : vector<128x4xf32>, vector<4x16xf32>, vector<128x16xf32> -> vector<128x16xf32>
    %46 = vector.broadcast %2 : vector<128x1xf32> to vector<128x16xf32>
    %47 = arith.addf %45, %46 : vector<128x16xf32>
    %c5_38 = arith.constant 5 : index
    %c0_39 = arith.constant 0 : index
    %c0_40 = arith.constant 0 : index
    %48 = vector.load %arg9[%c5_38, %c0_39, %c0_40] : memref<8x128x16xf32, #tpu.memory_space<vmem>>, vector<1x128x16xf32>
    %49 = vector.shape_cast %48 : vector<1x128x16xf32> to vector<128x16xf32>
    %50 = vector.shape_cast %47 : vector<128x16xf32> to vector<1x128x16xf32>
    tpu.vector_store %arg9[%c5_38, %c0_39, %c0_40], %50 {strides = array<i32>} : memref<8x128x16xf32, #tpu.memory_space<vmem>>, vector<1x128x16xf32>,
    %c6 = arith.constant 6 : index
    %c0_41 = arith.constant 0 : index
    %c0_42 = arith.constant 0 : index
    %51 = vector.load %arg1[%c6, %c0_41, %c0_42] : memref<8x4x16xf32, #tpu.memory_space<vmem>>, vector<1x4x16xf32>
    %52 = vector.shape_cast %51 : vector<1x4x16xf32> to vector<4x16xf32>
    %cst_43 = arith.constant dense<0.000000e+00> : vector<128x16xf32>
    %53 = tpu.matmul %0, %52, %cst_43 {dimension_numbers = #tpu.dot_dimension_numbers<[1], [0], [0], [1], [0, 0, 1, 1], [], []>} : vector<128x4xf32>, vector<4x16xf32>, vector<128x16xf32> -> vector<128x16xf32>
    %54 = vector.broadcast %2 : vector<128x1xf32> to vector<128x16xf32>
    %55 = arith.addf %53, %54 : vector<128x16xf32>
    %c6_44 = arith.constant 6 : index
    %c0_45 = arith.constant 0 : index
    %c0_46 = arith.constant 0 : index
    %56 = vector.load %arg9[%c6_44, %c0_45, %c0_46] : memref<8x128x16xf32, #tpu.memory_space<vmem>>, vector<1x128x16xf32>
    %57 = vector.shape_cast %56 : vector<1x128x16xf32> to vector<128x16xf32>
    %58 = vector.shape_cast %55 : vector<128x16xf32> to vector<1x128x16xf32>
    tpu.vector_store %arg9[%c6_44, %c0_45, %c0_46], %58 {strides = array<i32>} : memref<8x128x16xf32, #tpu.memory_space<vmem>>, vector<1x128x16xf32>,
    %c7 = arith.constant 7 : index
    %c0_47 = arith.constant 0 : index
    %c0_48 = arith.constant 0 : index
    %59 = vector.load %arg1[%c7, %c0_47, %c0_48] : memref<8x4x16xf32, #tpu.memory_space<vmem>>, vector<1x4x16xf32>
    %60 = vector.shape_cast %59 : vector<1x4x16xf32> to vector<4x16xf32>
    %cst_49 = arith.constant dense<0.000000e+00> : vector<128x16xf32>
    %61 = tpu.matmul %0, %60, %cst_49 {dimension_numbers = #tpu.dot_dimension_numbers<[1], [0], [0], [1], [0, 0, 1, 1], [], []>} : vector<128x4xf32>, vector<4x16xf32>, vector<128x16xf32> -> vector<128x16xf32>
    %62 = vector.broadcast %2 : vector<128x1xf32> to vector<128x16xf32>
    %63 = arith.addf %61, %62 : vector<128x16xf32>
    %c7_50 = arith.constant 7 : index
    %c0_51 = arith.constant 0 : index
    %c0_52 = arith.constant 0 : index
    %64 = vector.load %arg9[%c7_50, %c0_51, %c0_52] : memref<8x128x16xf32, #tpu.memory_space<vmem>>, vector<1x128x16xf32>
    %65 = vector.shape_cast %64 : vector<1x128x16xf32> to vector<128x16xf32>
    %66 = vector.shape_cast %63 : vector<128x16xf32> to vector<1x128x16xf32>
    tpu.vector_store %arg9[%c7_50, %c0_51, %c0_52], %66 {strides = array<i32>} : memref<8x128x16xf32, #tpu.memory_space<vmem>>, vector<1x128x16xf32>,
    %cst_53 = arith.constant 0.000000e+00 : f32
    %67 = vector.broadcast %cst_53 : f32 to vector<32x16xf32>
    %cst_54 = arith.constant 0.000000e+00 : f32
    %68 = vector.broadcast %cst_54 : f32 to vector<32x16xf32>
    %c0_i32 = arith.constant 0 : i32
    %69 = arith.index_cast %c0_i32 : i32 to index
    %c0_55 = arith.constant 0 : index
    %c0_56 = arith.constant 0 : index
    %70 = vector.load %arg9[%69, %c0_55, %c0_56] : memref<8x128x16xf32, #tpu.memory_space<vmem>>, vector<1x128x16xf32>
    %71 = vector.shape_cast %70 : vector<1x128x16xf32> to vector<128x16xf32>
    %cst_57 = arith.constant dense<0.000000e+00> : vector<128x16xf32>
    %72 = tpu.matmul %1, %67, %cst_57 {dimension_numbers = #tpu.dot_dimension_numbers<[1], [0], [0], [1], [0, 0, 1, 1], [], []>} : vector<128x32xf32>, vector<32x16xf32>, vector<128x16xf32> -> vector<128x16xf32>
    %73 = arith.addf %71, %72 : vector<128x16xf32>
    %74 = vector.extract_strided_slice %73 {offsets = [0, 0], sizes = [96, 16], strides = [1, 1]} : vector<128x16xf32> to vector<96x16xf32>
    %75 = arith.negf %74 : vector<96x16xf32>
    %76 = math.exp %75 : vector<96x16xf32>
    %cst_58 = arith.constant 1.000000e+00 : f32
    %77 = vector.broadcast %cst_58 : f32 to vector<96x16xf32>
    %78 = arith.addf %77, %76 : vector<96x16xf32>
    %79 = arith.divf %77, %78 : vector<96x16xf32>
    %80 = vector.extract_strided_slice %79 {offsets = [0, 0], sizes = [32, 16], strides = [1, 1]} : vector<96x16xf32> to vector<32x16xf32>
    %81 = vector.extract_strided_slice %79 {offsets = [32, 0], sizes = [32, 16], strides = [1, 1]} : vector<96x16xf32> to vector<32x16xf32>
    %82 = vector.extract_strided_slice %79 {offsets = [64, 0], sizes = [32, 16], strides = [1, 1]} : vector<96x16xf32> to vector<32x16xf32>
    %83 = vector.extract_strided_slice %73 {offsets = [96, 0], sizes = [32, 16], strides = [1, 1]} : vector<128x16xf32> to vector<32x16xf32>
    %84 = math.tanh %83 : vector<32x16xf32>
    %85 = arith.mulf %81, %68 : vector<32x16xf32>
    %86 = arith.mulf %80, %84 : vector<32x16xf32>
    %87 = arith.addf %85, %86 : vector<32x16xf32>
    %88 = math.tanh %87 : vector<32x16xf32>
    %89 = arith.mulf %82, %88 : vector<32x16xf32>
    %90 = arith.index_cast %c0_i32 : i32 to index
    %c0_59 = arith.constant 0 : index
    %c0_60 = arith.constant 0 : index
    %91 = vector.load %arg10[%90, %c0_59, %c0_60] : memref<8x32x16xf32, #tpu.memory_space<vmem>>, vector<1x32x16xf32>
    %92 = vector.shape_cast %91 : vector<1x32x16xf32> to vector<32x16xf32>
    %93 = vector.shape_cast %89 : vector<32x16xf32> to vector<1x32x16xf32>
    tpu.vector_store %arg10[%90, %c0_59, %c0_60], %93 {strides = array<i32>} : memref<8x32x16xf32, #tpu.memory_space<vmem>>, vector<1x32x16xf32>,
    %c1_i32 = arith.constant 1 : i32
    %94 = arith.index_cast %c1_i32 : i32 to index
    %c0_61 = arith.constant 0 : index
    %c0_62 = arith.constant 0 : index
    %95 = vector.load %arg9[%94, %c0_61, %c0_62] : memref<8x128x16xf32, #tpu.memory_space<vmem>>, vector<1x128x16xf32>
    %96 = vector.shape_cast %95 : vector<1x128x16xf32> to vector<128x16xf32>
    %cst_63 = arith.constant dense<0.000000e+00> : vector<128x16xf32>
    %97 = tpu.matmul %1, %89, %cst_63 {dimension_numbers = #tpu.dot_dimension_numbers<[1], [0], [0], [1], [0, 0, 1, 1], [], []>} : vector<128x32xf32>, vector<32x16xf32>, vector<128x16xf32> -> vector<128x16xf32>
    %98 = arith.addf %96, %97 : vector<128x16xf32>
    %99 = vector.extract_strided_slice %98 {offsets = [0, 0], sizes = [96, 16], strides = [1, 1]} : vector<128x16xf32> to vector<96x16xf32>
    %100 = arith.negf %99 : vector<96x16xf32>
    %101 = math.exp %100 : vector<96x16xf32>
    %cst_64 = arith.constant 1.000000e+00 : f32
    %102 = vector.broadcast %cst_64 : f32 to vector<96x16xf32>
    %103 = arith.addf %102, %101 : vector<96x16xf32>
    %104 = arith.divf %102, %103 : vector<96x16xf32>
    %105 = vector.extract_strided_slice %104 {offsets = [0, 0], sizes = [32, 16], strides = [1, 1]} : vector<96x16xf32> to vector<32x16xf32>
    %106 = vector.extract_strided_slice %104 {offsets = [32, 0], sizes = [32, 16], strides = [1, 1]} : vector<96x16xf32> to vector<32x16xf32>
    %107 = vector.extract_strided_slice %104 {offsets = [64, 0], sizes = [32, 16], strides = [1, 1]} : vector<96x16xf32> to vector<32x16xf32>
    %108 = vector.extract_strided_slice %98 {offsets = [96, 0], sizes = [32, 16], strides = [1, 1]} : vector<128x16xf32> to vector<32x16xf32>
    %109 = math.tanh %108 : vector<32x16xf32>
    %110 = arith.mulf %106, %87 : vector<32x16xf32>
    %111 = arith.mulf %105, %109 : vector<32x16xf32>
    %112 = arith.addf %110, %111 : vector<32x16xf32>
    %113 = math.tanh %112 : vector<32x16xf32>
    %114 = arith.mulf %107, %113 : vector<32x16xf32>
    %115 = arith.index_cast %c1_i32 : i32 to index
    %c0_65 = arith.constant 0 : index
    %c0_66 = arith.constant 0 : index
    %116 = vector.load %arg10[%115, %c0_65, %c0_66] : memref<8x32x16xf32, #tpu.memory_space<vmem>>, vector<1x32x16xf32>
    %117 = vector.shape_cast %116 : vector<1x32x16xf32> to vector<32x16xf32>
    %118 = vector.shape_cast %114 : vector<32x16xf32> to vector<1x32x16xf32>
    tpu.vector_store %arg10[%115, %c0_65, %c0_66], %118 {strides = array<i32>} : memref<8x32x16xf32, #tpu.memory_space<vmem>>, vector<1x32x16xf32>,
    %c2_i32 = arith.constant 2 : i32
    %119 = arith.index_cast %c2_i32 : i32 to index
    %c0_67 = arith.constant 0 : index
    %c0_68 = arith.constant 0 : index
    %120 = vector.load %arg9[%119, %c0_67, %c0_68] : memref<8x128x16xf32, #tpu.memory_space<vmem>>, vector<1x128x16xf32>
    %121 = vector.shape_cast %120 : vector<1x128x16xf32> to vector<128x16xf32>
    %cst_69 = arith.constant dense<0.000000e+00> : vector<128x16xf32>
    %122 = tpu.matmul %1, %114, %cst_69 {dimension_numbers = #tpu.dot_dimension_numbers<[1], [0], [0], [1], [0, 0, 1, 1], [], []>} : vector<128x32xf32>, vector<32x16xf32>, vector<128x16xf32> -> vector<128x16xf32>
    %123 = arith.addf %121, %122 : vector<128x16xf32>
    %124 = vector.extract_strided_slice %123 {offsets = [0, 0], sizes = [96, 16], strides = [1, 1]} : vector<128x16xf32> to vector<96x16xf32>
    %125 = arith.negf %124 : vector<96x16xf32>
    %126 = math.exp %125 : vector<96x16xf32>
    %cst_70 = arith.constant 1.000000e+00 : f32
    %127 = vector.broadcast %cst_70 : f32 to vector<96x16xf32>
    %128 = arith.addf %127, %126 : vector<96x16xf32>
    %129 = arith.divf %127, %128 : vector<96x16xf32>
    %130 = vector.extract_strided_slice %129 {offsets = [0, 0], sizes = [32, 16], strides = [1, 1]} : vector<96x16xf32> to vector<32x16xf32>
    %131 = vector.extract_strided_slice %129 {offsets = [32, 0], sizes = [32, 16], strides = [1, 1]} : vector<96x16xf32> to vector<32x16xf32>
    %132 = vector.extract_strided_slice %129 {offsets = [64, 0], sizes = [32, 16], strides = [1, 1]} : vector<96x16xf32> to vector<32x16xf32>
    %133 = vector.extract_strided_slice %123 {offsets = [96, 0], sizes = [32, 16], strides = [1, 1]} : vector<128x16xf32> to vector<32x16xf32>
    %134 = math.tanh %133 : vector<32x16xf32>
    %135 = arith.mulf %131, %112 : vector<32x16xf32>
    %136 = arith.mulf %130, %134 : vector<32x16xf32>
    %137 = arith.addf %135, %136 : vector<32x16xf32>
    %138 = math.tanh %137 : vector<32x16xf32>
    %139 = arith.mulf %132, %138 : vector<32x16xf32>
    %140 = arith.index_cast %c2_i32 : i32 to index
    %c0_71 = arith.constant 0 : index
    %c0_72 = arith.constant 0 : index
    %141 = vector.load %arg10[%140, %c0_71, %c0_72] : memref<8x32x16xf32, #tpu.memory_space<vmem>>, vector<1x32x16xf32>
    %142 = vector.shape_cast %141 : vector<1x32x16xf32> to vector<32x16xf32>
    %143 = vector.shape_cast %139 : vector<32x16xf32> to vector<1x32x16xf32>
    tpu.vector_store %arg10[%140, %c0_71, %c0_72], %143 {strides = array<i32>} : memref<8x32x16xf32, #tpu.memory_space<vmem>>, vector<1x32x16xf32>,
    %c3_i32 = arith.constant 3 : i32
    %144 = arith.index_cast %c3_i32 : i32 to index
    %c0_73 = arith.constant 0 : index
    %c0_74 = arith.constant 0 : index
    %145 = vector.load %arg9[%144, %c0_73, %c0_74] : memref<8x128x16xf32, #tpu.memory_space<vmem>>, vector<1x128x16xf32>
    %146 = vector.shape_cast %145 : vector<1x128x16xf32> to vector<128x16xf32>
    %cst_75 = arith.constant dense<0.000000e+00> : vector<128x16xf32>
    %147 = tpu.matmul %1, %139, %cst_75 {dimension_numbers = #tpu.dot_dimension_numbers<[1], [0], [0], [1], [0, 0, 1, 1], [], []>} : vector<128x32xf32>, vector<32x16xf32>, vector<128x16xf32> -> vector<128x16xf32>
    %148 = arith.addf %146, %147 : vector<128x16xf32>
    %149 = vector.extract_strided_slice %148 {offsets = [0, 0], sizes = [96, 16], strides = [1, 1]} : vector<128x16xf32> to vector<96x16xf32>
    %150 = arith.negf %149 : vector<96x16xf32>
    %151 = math.exp %150 : vector<96x16xf32>
    %cst_76 = arith.constant 1.000000e+00 : f32
    %152 = vector.broadcast %cst_76 : f32 to vector<96x16xf32>
    %153 = arith.addf %152, %151 : vector<96x16xf32>
    %154 = arith.divf %152, %153 : vector<96x16xf32>
    %155 = vector.extract_strided_slice %154 {offsets = [0, 0], sizes = [32, 16], strides = [1, 1]} : vector<96x16xf32> to vector<32x16xf32>
    %156 = vector.extract_strided_slice %154 {offsets = [32, 0], sizes = [32, 16], strides = [1, 1]} : vector<96x16xf32> to vector<32x16xf32>
    %157 = vector.extract_strided_slice %154 {offsets = [64, 0], sizes = [32, 16], strides = [1, 1]} : vector<96x16xf32> to vector<32x16xf32>
    %158 = vector.extract_strided_slice %148 {offsets = [96, 0], sizes = [32, 16], strides = [1, 1]} : vector<128x16xf32> to vector<32x16xf32>
    %159 = math.tanh %158 : vector<32x16xf32>
    %160 = arith.mulf %156, %137 : vector<32x16xf32>
    %161 = arith.mulf %155, %159 : vector<32x16xf32>
    %162 = arith.addf %160, %161 : vector<32x16xf32>
    %163 = math.tanh %162 : vector<32x16xf32>
    %164 = arith.mulf %157, %163 : vector<32x16xf32>
    %165 = arith.index_cast %c3_i32 : i32 to index
    %c0_77 = arith.constant 0 : index
    %c0_78 = arith.constant 0 : index
    %166 = vector.load %arg10[%165, %c0_77, %c0_78] : memref<8x32x16xf32, #tpu.memory_space<vmem>>, vector<1x32x16xf32>
    %167 = vector.shape_cast %166 : vector<1x32x16xf32> to vector<32x16xf32>
    %168 = vector.shape_cast %164 : vector<32x16xf32> to vector<1x32x16xf32>
    tpu.vector_store %arg10[%165, %c0_77, %c0_78], %168 {strides = array<i32>} : memref<8x32x16xf32, #tpu.memory_space<vmem>>, vector<1x32x16xf32>,
    %c4_i32 = arith.constant 4 : i32
    %169 = arith.index_cast %c4_i32 : i32 to index
    %c0_79 = arith.constant 0 : index
    %c0_80 = arith.constant 0 : index
    %170 = vector.load %arg9[%169, %c0_79, %c0_80] : memref<8x128x16xf32, #tpu.memory_space<vmem>>, vector<1x128x16xf32>
    %171 = vector.shape_cast %170 : vector<1x128x16xf32> to vector<128x16xf32>
    %cst_81 = arith.constant dense<0.000000e+00> : vector<128x16xf32>
    %172 = tpu.matmul %1, %164, %cst_81 {dimension_numbers = #tpu.dot_dimension_numbers<[1], [0], [0], [1], [0, 0, 1, 1], [], []>} : vector<128x32xf32>, vector<32x16xf32>, vector<128x16xf32> -> vector<128x16xf32>
    %173 = arith.addf %171, %172 : vector<128x16xf32>
    %174 = vector.extract_strided_slice %173 {offsets = [0, 0], sizes = [96, 16], strides = [1, 1]} : vector<128x16xf32> to vector<96x16xf32>
    %175 = arith.negf %174 : vector<96x16xf32>
    %176 = math.exp %175 : vector<96x16xf32>
    %cst_82 = arith.constant 1.000000e+00 : f32
    %177 = vector.broadcast %cst_82 : f32 to vector<96x16xf32>
    %178 = arith.addf %177, %176 : vector<96x16xf32>
    %179 = arith.divf %177, %178 : vector<96x16xf32>
    %180 = vector.extract_strided_slice %179 {offsets = [0, 0], sizes = [32, 16], strides = [1, 1]} : vector<96x16xf32> to vector<32x16xf32>
    %181 = vector.extract_strided_slice %179 {offsets = [32, 0], sizes = [32, 16], strides = [1, 1]} : vector<96x16xf32> to vector<32x16xf32>
    %182 = vector.extract_strided_slice %179 {offsets = [64, 0], sizes = [32, 16], strides = [1, 1]} : vector<96x16xf32> to vector<32x16xf32>
    %183 = vector.extract_strided_slice %173 {offsets = [96, 0], sizes = [32, 16], strides = [1, 1]} : vector<128x16xf32> to vector<32x16xf32>
    %184 = math.tanh %183 : vector<32x16xf32>
    %185 = arith.mulf %181, %162 : vector<32x16xf32>
    %186 = arith.mulf %180, %184 : vector<32x16xf32>
    %187 = arith.addf %185, %186 : vector<32x16xf32>
    %188 = math.tanh %187 : vector<32x16xf32>
    %189 = arith.mulf %182, %188 : vector<32x16xf32>
    %190 = arith.index_cast %c4_i32 : i32 to index
    %c0_83 = arith.constant 0 : index
    %c0_84 = arith.constant 0 : index
    %191 = vector.load %arg10[%190, %c0_83, %c0_84] : memref<8x32x16xf32, #tpu.memory_space<vmem>>, vector<1x32x16xf32>
    %192 = vector.shape_cast %191 : vector<1x32x16xf32> to vector<32x16xf32>
    %193 = vector.shape_cast %189 : vector<32x16xf32> to vector<1x32x16xf32>
    tpu.vector_store %arg10[%190, %c0_83, %c0_84], %193 {strides = array<i32>} : memref<8x32x16xf32, #tpu.memory_space<vmem>>, vector<1x32x16xf32>,
    %c5_i32 = arith.constant 5 : i32
    %194 = arith.index_cast %c5_i32 : i32 to index
    %c0_85 = arith.constant 0 : index
    %c0_86 = arith.constant 0 : index
    %195 = vector.load %arg9[%194, %c0_85, %c0_86] : memref<8x128x16xf32, #tpu.memory_space<vmem>>, vector<1x128x16xf32>
    %196 = vector.shape_cast %195 : vector<1x128x16xf32> to vector<128x16xf32>
    %cst_87 = arith.constant dense<0.000000e+00> : vector<128x16xf32>
    %197 = tpu.matmul %1, %189, %cst_87 {dimension_numbers = #tpu.dot_dimension_numbers<[1], [0], [0], [1], [0, 0, 1, 1], [], []>} : vector<128x32xf32>, vector<32x16xf32>, vector<128x16xf32> -> vector<128x16xf32>
    %198 = arith.addf %196, %197 : vector<128x16xf32>
    %199 = vector.extract_strided_slice %198 {offsets = [0, 0], sizes = [96, 16], strides = [1, 1]} : vector<128x16xf32> to vector<96x16xf32>
    %200 = arith.negf %199 : vector<96x16xf32>
    %201 = math.exp %200 : vector<96x16xf32>
    %cst_88 = arith.constant 1.000000e+00 : f32
    %202 = vector.broadcast %cst_88 : f32 to vector<96x16xf32>
    %203 = arith.addf %202, %201 : vector<96x16xf32>
    %204 = arith.divf %202, %203 : vector<96x16xf32>
    %205 = vector.extract_strided_slice %204 {offsets = [0, 0], sizes = [32, 16], strides = [1, 1]} : vector<96x16xf32> to vector<32x16xf32>
    %206 = vector.extract_strided_slice %204 {offsets = [32, 0], sizes = [32, 16], strides = [1, 1]} : vector<96x16xf32> to vector<32x16xf32>
    %207 = vector.extract_strided_slice %204 {offsets = [64, 0], sizes = [32, 16], strides = [1, 1]} : vector<96x16xf32> to vector<32x16xf32>
    %208 = vector.extract_strided_slice %198 {offsets = [96, 0], sizes = [32, 16], strides = [1, 1]} : vector<128x16xf32> to vector<32x16xf32>
    %209 = math.tanh %208 : vector<32x16xf32>
    %210 = arith.mulf %206, %187 : vector<32x16xf32>
    %211 = arith.mulf %205, %209 : vector<32x16xf32>
    %212 = arith.addf %210, %211 : vector<32x16xf32>
    %213 = math.tanh %212 : vector<32x16xf32>
    %214 = arith.mulf %207, %213 : vector<32x16xf32>
    %215 = arith.index_cast %c5_i32 : i32 to index
    %c0_89 = arith.constant 0 : index
    %c0_90 = arith.constant 0 : index
    %216 = vector.load %arg10[%215, %c0_89, %c0_90] : memref<8x32x16xf32, #tpu.memory_space<vmem>>, vector<1x32x16xf32>
    %217 = vector.shape_cast %216 : vector<1x32x16xf32> to vector<32x16xf32>
    %218 = vector.shape_cast %214 : vector<32x16xf32> to vector<1x32x16xf32>
    tpu.vector_store %arg10[%215, %c0_89, %c0_90], %218 {strides = array<i32>} : memref<8x32x16xf32, #tpu.memory_space<vmem>>, vector<1x32x16xf32>,
    %c6_i32 = arith.constant 6 : i32
    %219 = arith.index_cast %c6_i32 : i32 to index
    %c0_91 = arith.constant 0 : index
    %c0_92 = arith.constant 0 : index
    %220 = vector.load %arg9[%219, %c0_91, %c0_92] : memref<8x128x16xf32, #tpu.memory_space<vmem>>, vector<1x128x16xf32>
    %221 = vector.shape_cast %220 : vector<1x128x16xf32> to vector<128x16xf32>
    %cst_93 = arith.constant dense<0.000000e+00> : vector<128x16xf32>
    %222 = tpu.matmul %1, %214, %cst_93 {dimension_numbers = #tpu.dot_dimension_numbers<[1], [0], [0], [1], [0, 0, 1, 1], [], []>} : vector<128x32xf32>, vector<32x16xf32>, vector<128x16xf32> -> vector<128x16xf32>
    %223 = arith.addf %221, %222 : vector<128x16xf32>
    %224 = vector.extract_strided_slice %223 {offsets = [0, 0], sizes = [96, 16], strides = [1, 1]} : vector<128x16xf32> to vector<96x16xf32>
    %225 = arith.negf %224 : vector<96x16xf32>
    %226 = math.exp %225 : vector<96x16xf32>
    %cst_94 = arith.constant 1.000000e+00 : f32
    %227 = vector.broadcast %cst_94 : f32 to vector<96x16xf32>
    %228 = arith.addf %227, %226 : vector<96x16xf32>
    %229 = arith.divf %227, %228 : vector<96x16xf32>
    %230 = vector.extract_strided_slice %229 {offsets = [0, 0], sizes = [32, 16], strides = [1, 1]} : vector<96x16xf32> to vector<32x16xf32>
    %231 = vector.extract_strided_slice %229 {offsets = [32, 0], sizes = [32, 16], strides = [1, 1]} : vector<96x16xf32> to vector<32x16xf32>
    %232 = vector.extract_strided_slice %229 {offsets = [64, 0], sizes = [32, 16], strides = [1, 1]} : vector<96x16xf32> to vector<32x16xf32>
    %233 = vector.extract_strided_slice %223 {offsets = [96, 0], sizes = [32, 16], strides = [1, 1]} : vector<128x16xf32> to vector<32x16xf32>
    %234 = math.tanh %233 : vector<32x16xf32>
    %235 = arith.mulf %231, %212 : vector<32x16xf32>
    %236 = arith.mulf %230, %234 : vector<32x16xf32>
    %237 = arith.addf %235, %236 : vector<32x16xf32>
    %238 = math.tanh %237 : vector<32x16xf32>
    %239 = arith.mulf %232, %238 : vector<32x16xf32>
    %240 = arith.index_cast %c6_i32 : i32 to index
    %c0_95 = arith.constant 0 : index
    %c0_96 = arith.constant 0 : index
    %241 = vector.load %arg10[%240, %c0_95, %c0_96] : memref<8x32x16xf32, #tpu.memory_space<vmem>>, vector<1x32x16xf32>
    %242 = vector.shape_cast %241 : vector<1x32x16xf32> to vector<32x16xf32>
    %243 = vector.shape_cast %239 : vector<32x16xf32> to vector<1x32x16xf32>
    tpu.vector_store %arg10[%240, %c0_95, %c0_96], %243 {strides = array<i32>} : memref<8x32x16xf32, #tpu.memory_space<vmem>>, vector<1x32x16xf32>,
    %c7_i32 = arith.constant 7 : i32
    %244 = arith.index_cast %c7_i32 : i32 to index
    %c0_97 = arith.constant 0 : index
    %c0_98 = arith.constant 0 : index
    %245 = vector.load %arg9[%244, %c0_97, %c0_98] : memref<8x128x16xf32, #tpu.memory_space<vmem>>, vector<1x128x16xf32>
    %246 = vector.shape_cast %245 : vector<1x128x16xf32> to vector<128x16xf32>
    %cst_99 = arith.constant dense<0.000000e+00> : vector<128x16xf32>
    %247 = tpu.matmul %1, %239, %cst_99 {dimension_numbers = #tpu.dot_dimension_numbers<[1], [0], [0], [1], [0, 0, 1, 1], [], []>} : vector<128x32xf32>, vector<32x16xf32>, vector<128x16xf32> -> vector<128x16xf32>
    %248 = arith.addf %246, %247 : vector<128x16xf32>
    %249 = vector.extract_strided_slice %248 {offsets = [0, 0], sizes = [96, 16], strides = [1, 1]} : vector<128x16xf32> to vector<96x16xf32>
    %250 = arith.negf %249 : vector<96x16xf32>
    %251 = math.exp %250 : vector<96x16xf32>
    %cst_100 = arith.constant 1.000000e+00 : f32
    %252 = vector.broadcast %cst_100 : f32 to vector<96x16xf32>
    %253 = arith.addf %252, %251 : vector<96x16xf32>
    %254 = arith.divf %252, %253 : vector<96x16xf32>
    %255 = vector.extract_strided_slice %254 {offsets = [0, 0], sizes = [32, 16], strides = [1, 1]} : vector<96x16xf32> to vector<32x16xf32>
    %256 = vector.extract_strided_slice %254 {offsets = [32, 0], sizes = [32, 16], strides = [1, 1]} : vector<96x16xf32> to vector<32x16xf32>
    %257 = vector.extract_strided_slice %254 {offsets = [64, 0], sizes = [32, 16], strides = [1, 1]} : vector<96x16xf32> to vector<32x16xf32>
    %258 = vector.extract_strided_slice %248 {offsets = [96, 0], sizes = [32, 16], strides = [1, 1]} : vector<128x16xf32> to vector<32x16xf32>
    %259 = math.tanh %258 : vector<32x16xf32>
    %260 = arith.mulf %256, %237 : vector<32x16xf32>
    %261 = arith.mulf %255, %259 : vector<32x16xf32>
    %262 = arith.addf %260, %261 : vector<32x16xf32>
    %263 = math.tanh %262 : vector<32x16xf32>
    %264 = arith.mulf %257, %263 : vector<32x16xf32>
    %265 = arith.index_cast %c7_i32 : i32 to index
    %c0_101 = arith.constant 0 : index
    %c0_102 = arith.constant 0 : index
    %266 = vector.load %arg10[%265, %c0_101, %c0_102] : memref<8x32x16xf32, #tpu.memory_space<vmem>>, vector<1x32x16xf32>
    %267 = vector.shape_cast %266 : vector<1x32x16xf32> to vector<32x16xf32>
    %268 = vector.shape_cast %264 : vector<32x16xf32> to vector<1x32x16xf32>
    tpu.vector_store %arg10[%265, %c0_101, %c0_102], %268 {strides = array<i32>} : memref<8x32x16xf32, #tpu.memory_space<vmem>>, vector<1x32x16xf32>,
    %c8_i32 = arith.constant 8 : i32
    %c0_103 = arith.constant 0 : index
    %c0_104 = arith.constant 0 : index
    %c0_105 = arith.constant 0 : index
    %269 = vector.load %arg10[%c0_103, %c0_104, %c0_105] : memref<8x32x16xf32, #tpu.memory_space<vmem>>, vector<8x32x16xf32>
    %c0_106 = arith.constant 0 : index
    %c0_107 = arith.constant 0 : index
    %270 = vector.load %arg5[%c0_106, %c0_107] : memref<8x32xf32, #tpu.memory_space<vmem>>, vector<8x32xf32>
    %271 = vector.shape_cast %270 : vector<8x32xf32> to vector<8x32x1xf32>
    %272 = vector.broadcast %271 : vector<8x32x1xf32> to vector<8x32x16xf32>
    %273 = arith.mulf %269, %272 : vector<8x32x16xf32>
    %cst_108 = arith.constant dense<0.000000e+00> : vector<8x16xf32>
    %274 = vector.multi_reduction <add>, %273, %cst_108 [1] : vector<8x32x16xf32> to vector<8x16xf32>
    %cst_109 = arith.constant dense<0xFF800000> : vector<16xf32>
    %275 = vector.multi_reduction <maximumf>, %274, %cst_109 [0] : vector<8x16xf32> to vector<16xf32>
    %276 = vector.shape_cast %275 : vector<16xf32> to vector<1x16xf32>
    %277 = vector.broadcast %276 : vector<1x16xf32> to vector<8x16xf32>
    %278 = arith.subf %274, %277 : vector<8x16xf32>
    %279 = math.exp %278 : vector<8x16xf32>
    %cst_110 = arith.constant dense<0.000000e+00> : vector<16xf32>
    %280 = vector.multi_reduction <add>, %279, %cst_110 [0] : vector<8x16xf32> to vector<16xf32>
    %281 = vector.shape_cast %280 : vector<16xf32> to vector<1x16xf32>
    %282 = vector.broadcast %281 : vector<1x16xf32> to vector<8x16xf32>
    %283 = arith.divf %279, %282 : vector<8x16xf32>
    %284 = vector.shape_cast %283 : vector<8x16xf32> to vector<8x1x16xf32>
    %285 = vector.broadcast %284 : vector<8x1x16xf32> to vector<8x32x16xf32>
    %286 = arith.mulf %285, %269 : vector<8x32x16xf32>
    %cst_111 = arith.constant dense<0.000000e+00> : vector<32x16xf32>
    %287 = vector.multi_reduction <add>, %286, %cst_111 [0] : vector<8x32x16xf32> to vector<32x16xf32>
    %c0_112 = arith.constant 0 : index
    %c0_113 = arith.constant 0 : index
    %288 = vector.load %arg6[%c0_112, %c0_113] : memref<32x32xf32, #tpu.memory_space<vmem>>, vector<32x32xf32>
    %cst_114 = arith.constant dense<0.000000e+00> : vector<32x16xf32>
    %289 = tpu.matmul %288, %287, %cst_114 {dimension_numbers = #tpu.dot_dimension_numbers<[1], [0], [0], [1], [0, 0, 1, 1], [], []>} : vector<32x32xf32>, vector<32x16xf32>, vector<32x16xf32> -> vector<32x16xf32>
    %c0_115 = arith.constant 0 : index
    %c0_116 = arith.constant 0 : index
    %290 = vector.load %arg7[%c0_115, %c0_116] : memref<32x1xf32, #tpu.memory_space<vmem>>, vector<32x1xf32>
    %291 = vector.broadcast %290 : vector<32x1xf32> to vector<32x16xf32>
    %292 = arith.addf %289, %291 : vector<32x16xf32>
    %cst_117 = arith.constant 0.000000e+00 : f32
    %293 = vector.broadcast %cst_117 : f32 to vector<32x16xf32>
    %294 = arith.maximumf %292, %293 : vector<32x16xf32>
    %c0_118 = arith.constant 0 : index
    %c0_119 = arith.constant 0 : index
    %295 = vector.load %arg8[%c0_118, %c0_119] : memref<32x16xf32, #tpu.memory_space<vmem>>, vector<32x16xf32>
    tpu.vector_store %arg8[%c0_118, %c0_119], %294 {strides = array<i32>} : memref<32x16xf32, #tpu.memory_space<vmem>>, vector<32x16xf32>,
    return
  }
  func.func @transform_0(%arg0: i32) -> (i32, i32, i32) {
    %c0_i32 = arith.constant 0 : i32
    %c0_i32_0 = arith.constant 0 : i32
    %c0_i32_1 = arith.constant 0 : i32
    return %c0_i32, %c0_i32_0, %arg0 : i32, i32, i32
  }
  func.func @transform_1(%arg0: i32) -> (i32, i32) {
    %c0_i32 = arith.constant 0 : i32
    %c0_i32_0 = arith.constant 0 : i32
    %c0_i32_1 = arith.constant 0 : i32
    return %c0_i32, %c0_i32_0 : i32, i32
  }
  func.func @transform_2(%arg0: i32) -> (i32, i32) {
    %c0_i32 = arith.constant 0 : i32
    %c0_i32_0 = arith.constant 0 : i32
    %c0_i32_1 = arith.constant 0 : i32
    return %c0_i32, %c0_i32_0 : i32, i32
  }
  func.func @transform_3(%arg0: i32) -> (i32, i32) {
    %c0_i32 = arith.constant 0 : i32
    %c0_i32_0 = arith.constant 0 : i32
    %c0_i32_1 = arith.constant 0 : i32
    return %c0_i32, %c0_i32_0 : i32, i32
  }
  func.func @transform_4(%arg0: i32) -> (i32, i32) {
    %c0_i32 = arith.constant 0 : i32
    %c0_i32_0 = arith.constant 0 : i32
    %c0_i32_1 = arith.constant 0 : i32
    return %c0_i32, %c0_i32_0 : i32, i32
  }
  func.func @transform_5(%arg0: i32) -> (i32, i32) {
    %c0_i32 = arith.constant 0 : i32
    %c0_i32_0 = arith.constant 0 : i32
    %c0_i32_1 = arith.constant 0 : i32
    return %c0_i32, %c0_i32_0 : i32, i32
  }
  func.func @transform_6(%arg0: i32) -> (i32, i32) {
    %c0_i32 = arith.constant 0 : i32
    %c0_i32_0 = arith.constant 0 : i32
    %c0_i32_1 = arith.constant 0 : i32
    return %c0_i32, %c0_i32_0 : i32, i32
  }
  func.func @transform_7(%arg0: i32) -> (i32, i32) {
    %c0_i32 = arith.constant 0 : i32
    %c0_i32_0 = arith.constant 0 : i32
    return %c0_i32, %arg0 : i32, i32
  }
}

</mosaic_0001>

<bundles_post_ra>
// kernel: tpu_custom_call.1
= control target key start
LH: loop header
LB: loop body
LE: loop exit
PB: predicated region body
PF: predicated region fallthrough
CT: control target
= control target key end

     0   :  { %vm204_vm0 = vcmask 1043456   ;;  %vm155_vm1 = vcmask 31744   ;;  %v6209_v3 = vmov 0   ;;  %v3844_v33 = vlaneseq  ;;  %s8052_s0 = inlined_call_operand.vmem [shape: f32[8,4,16], index: 0, kind: input, shape index: {}]   ;;  %s8053_s1 = inlined_call_operand.vmem [shape: f32[128,4], index: 1, kind: input, shape index: {}]   ;;  %s8054_s3 = inlined_call_operand.vmem [shape: f32[128,1], index: 3, kind: input, shape index: {}]   ;;  %s8055_s4 = inlined_call_operand.vmem [shape: f32[8,32], index: 4, kind: input, shape index: {}]   ;;  %s8056_s6 = inlined_call_operand.vmem [shape: f32[32,1], index: 6, kind: input, shape index: {}]   ;;  %s8057_s2 = inlined_call_operand.vmem [shape: f32[128,32], index: 2, kind: input, shape index: {}]   ;;  %s8058_s5 = inlined_call_operand.vmem [shape: f32[32,32], index: 5, kind: input, shape index: {}]   ;;  %s8059_s7 = inlined_call_operand.vmem [shape: f32[32,16], index: 7, kind: output, shape index: {}]  }
   0x1   :  { %v74_v0 = vld [vmem:[%s8052_s0] sm:$0xf]  ;;  %v6262_v2 = vld [vmem:[%s8053_s1 + $0x70] sm:$0xff]  ;;  %5630 = vset.pattern.permute.xlu0 %v6209_v3  ;;  %5631 = vset.pattern.permute.xlu1 %v6209_v3  ;;  %v6269_v4 = vld [vmem:[%s8053_s1 + $0x8] sm:$0xff]  ;;  %v6210_v59 = vmov 0.0   ;;  %vm1555_vm2 = vcmask 261120  }
   0x2   :  { %v6257_v1 = vld [vmem:[%s8053_s1] sm:$0xff]  ;;  %5154 = vmatprep.subr.msk.mxu0 %vm204_vm0, %v74_v0  ;;  %5626 = vmatprep.subr.msk.mxu1 %vm204_vm0, %v74_v0  ;;  %v6274_v5 = vld [vmem:[%s8053_s1 + $0x78] sm:$0xff]  ;;  %v6284_v7 = vld [vmem:[%s8053_s1 + $0x10] sm:$0xff]  ;;  %v6463_v36 = vshrl.u32 %v3844_v33, 7  ;;  %vm353_vm3 = vcmask 130048   ;;  %vm4180_vm4 = vcmask 1041409  }
   0x3   :  { %5155 = vmatpush3.msk.msra.mxu0 %vm204_vm0, %v74_v0  ;;  %5627 = vmatpush3.msk.msra.mxu1 %vm204_vm0, %v74_v0  ;;  %v4499_v6 = vld [vmem:[%s8052_s0 + $0x4] sm:$0xf]  ;;  %v6300_v8 = vld [vmem:[%s8053_s1 + $0x18] sm:$0xff]  ;;  %v4517_v10 = vld [vmem:[%s8052_s0 + $0x8] sm:$0xf]  ;;  %vm4183_vm5 = vcmask 1042434  }
   0x4   :  { %5156 = vmatprep.mubr.msk.f32.mxu0 %vm155_vm1, %v6257_v1  ;;  %5177 = vmatprep.mubr.msk.f32.mxu1 %vm155_vm1, %v6262_v2  ;;  %v6308_v9 = vld [vmem:[%s8053_s1 + $0x20] sm:$0xff]  ;;  %v4535_v11 = vld [vmem:[%s8052_s0 + $0xc] sm:$0xf]  ;;  %v6325_v12 = vld [vmem:[%s8052_s0 + $0x10] sm:$0xf]  ;;  %v6489_v40 = vsub.s32 0, %v6463_v36 }
   0x5   :  { %5157 = vmatmul.mubr.msk.f32.vlgmr.msra.gmra.mxu0 %vm155_vm1, %v6269_v4  ;;  %5178 = vmatmul.mubr.msk.f32.vlgmr.msra.gmra.mxu1 %vm155_vm1, %v6274_v5  ;;  %v61_v13 = vld [vmem:[%s8054_s3 + $0x18] sm:$0xff]  ;;  %v6337_v14 = vld [vmem:[%s8053_s1 + $0x28] sm:$0xff]  ;;  %v6342_v15 = vld [vmem:[%s8053_s1 + $0x30] sm:$0xff]  ;;  %v3865_v45 = vsub.s32 1, %v6463_v36  ;;  %v3884_v48 = vsub.s32 2, %v6463_v36  ;;  %v3903_v50 = vsub.s32 3, %v6463_v36 }
   0x6   :  { %5180 = vmatprep.subr.msk.mxu1 %vm204_vm0, %v4499_v6  ;;  %5159 = vmatprep.mubr.msk.f32.mxu0 %vm155_vm1, %v6284_v7  ;;  %v6351_v16 = vld [vmem:[%s8052_s0 + $0x14] sm:$0xf]  ;;  %v65_v18 = vld [vmem:[%s8054_s3 + $0x38] sm:$0xff]  ;;  %v6375_v20 = vld [vmem:[%s8053_s1 + $0x40] sm:$0xff]  ;;  %v3922_v52 = vsub.s32 4, %v6463_v36  ;;  %v3941_v54 = vsub.s32 5, %v6463_v36 }
   0x7   :  { %5181 = vmatpush3.msk.msra.mxu1 %vm204_vm0, %v4499_v6  ;;  %5182 = vmatprep.mubr.msk.f32.mxu1 %vm155_vm1, %v6257_v1  ;;  %v60_v17 = vld [vmem:[%s8054_s3 + $0x10] sm:$0xff]  ;;  %v6370_v19 = vld [vmem:[%s8053_s1 + $0x38] sm:$0xff]  ;;  %v59_v22 = vld [vmem:[%s8054_s3 + $0x8] sm:$0xff]  ;;  %v3960_v56 = vsub.s32 6, %v6463_v36  ;;  %v3979_v58 = vsub.s32 7, %v6463_v36  ;;  %vm4186_vm6 = vcmask 1043459  }
   0x8   :  { %5206 = vmatprep.subr.msk.mxu0 %vm204_vm0, %v4517_v10  ;;  %5232 = vmatprep.subr.msk.mxu1 %vm204_vm0, %v4535_v11  ;;  %v64_v21 = vld [vmem:[%s8054_s3 + $0x30] sm:$0xff]  ;;  %v6396_v23 = vld [vmem:[%s8053_s1 + $0x48] sm:$0xff]  ;;  %v58_v26 = vld [vmem:[%s8054_s3] sm:$0xff]  ;;  %vm4189_vm7 = vcmask 1044484   ;;  %vm4192_vm8 = vcmask 1045509   ;;  %vm4195_vm9 = vcmask 1046534  }
   0x9   :  { %5160 = vmatmul.mubr.msk.f32.gmra.mxu0 %vm155_vm1, %v6300_v8  ;;  %5183 = vmatmul.mubr.msk.f32.vlgmr.msra.gmra.mxu1 %vm155_vm1, %v6269_v4  ;;  %v6401_v24 = vld [vmem:[%s8053_s1 + $0x50] sm:$0xff]  ;;  %v63_v25 = vld [vmem:[%s8054_s3 + $0x28] sm:$0xff]  ;;  %v6420_v27 = vld [vmem:[%s8053_s1 + $0x58] sm:$0xff]  ;;  %vm4198_vm10 = vcmask 1047559  }
   0xa   :  { %5162 = vmatprep.mubr.msk.f32.mxu0 %vm155_vm1, %v6308_v9  ;;  %5185 = vmatprep.mubr.msk.f32.mxu1 %vm155_vm1, %v6284_v7  ;;  %v6425_v28 = vld [vmem:[%s8053_s1 + $0x60] sm:$0xff]  ;;  %v69_v30 = vld [vmem:[%s8054_s3 + $0x58] sm:$0xff]  ;;  %v6444_v31 = vld [vmem:[%s8053_s1 + $0x68] sm:$0xff] }
   0xb   :  { %5207 = vmatpush3.msk.msra.mxu0 %vm204_vm0, %v4517_v10  ;;  %5233 = vmatpush3.msk.msra.mxu1 %vm204_vm0, %v4535_v11  ;;  %v62_v29 = vld [vmem:[%s8054_s3 + $0x20] sm:$0xff]  ;;  %v73_v32 = vld [vmem:[%s8054_s3 + $0x78] sm:$0xff]  ;;  %v68_v34 = vld [vmem:[%s8054_s3 + $0x50] sm:$0xff] }
   0xc   :  { %5258 = vmatprep.subr.msk.mxu0 %vm204_vm0, %v6325_v12  ;;  %92 = vperm.xlu0 %5630, %v61_v13   ;;  %v72_v35 = vld [vmem:[%s8054_s3 + $0x70] sm:$0xff]  ;;  %v67_v37 = vld [vmem:[%s8054_s3 + $0x48] sm:$0xff]  ;;  %v6475_v38 = vld [vmem:[%s8052_s0 + $0x18] sm:$0xf] }
   0xd   :  { %5163 = vmatmul.mubr.msk.f32.gmra.mxu0 %vm155_vm1, %v6337_v14  ;;  %5186 = vmatmul.mubr.msk.f32.gmra.mxu1 %vm155_vm1, %v6300_v8  ;;  %v71_v39 = vld [vmem:[%s8054_s3 + $0x68] sm:$0xff]  ;;  %v66_v41 = vld [vmem:[%s8054_s3 + $0x40] sm:$0xff]  ;;  %v6522_v46 = vld [vmem:[%s8052_s0 + $0x1c] sm:$0xf] }
   0xe   :  { %5165 = vmatprep.mubr.msk.f32.mxu0 %vm155_vm1, %v6342_v15  ;;  %5188 = vmatprep.mubr.msk.f32.mxu1 %vm155_vm1, %v6308_v9  ;;  %v6501_v42 = vld [vmem:[%s8055_s4] sm:$0xff]  ;;  %v4350_v62 = vld [vmem:[%s8056_s6 + $0x8] sm:$0xff]  ;;  %v4351_v63 = vld [vmem:[%s8056_s6 + $0x10] sm:$0xff] }
   0xf   :  { %5284 = vmatprep.subr.msk.mxu1 %vm204_vm0, %v6351_v16  ;;  %87 = vperm.xlu1 %5631, %v60_v17   ;;  %v70_v43 = vld [vmem:[%s8054_s3 + $0x60] sm:$0xff]  ;;  %v6512_v44 = vrot.slane %v6501_v42, %v6489_v40  ;;  %v6534_v47 = vrot.slane %v6501_v42, %v3865_v45  ;;  %v6548_v49 = vrot.slane %v6501_v42, %v3884_v48  ;;  %v4352_v0 = vld [vmem:[%s8056_s6 + $0x18] sm:$0xff]  ;;  %v43_v3 = vld [vmem:[%s8057_s2 + $0x8] sm:$0xff] }
  0x10   :  { %112 = vperm.xlu0 %5630, %v65_v18   ;;  %v6562_v51 = vrot.slane %v6501_v42, %v3903_v50  ;;  %v6576_v53 = vrot.slane %v6501_v42, %v3922_v52  ;;  %v6590_v55 = vrot.slane %v6501_v42, %v3941_v54  ;;  %v6604_v57 = vrot.slane %v6501_v42, %v3960_v56  ;;  %v4349_v61 = vld [vmem:[%s8056_s6] sm:$0xff]  ;;  %v45_v6 = vld [vmem:[%s8057_s2 + $0x18] sm:$0xff]  ;;  %v51_v10 = vld [vmem:[%s8057_s2 + $0x48] sm:$0xff] }
  0x11   :  { %5166 = vmatmul.mubr.msk.f32.gmra.mxu0 %vm155_vm1, %v6370_v19  ;;  %5189 = vmatmul.mubr.msk.f32.gmra.mxu1 %vm155_vm1, %v6337_v14  ;;  %v6620_v60 = vrot.slane %v6501_v42, %v3979_v58  ;;  %v52_v11 = vld [vmem:[%s8057_s2 + $0x50] sm:$0xff]  ;;  %v54_v13 = vld [vmem:[%s8057_s2 + $0x60] sm:$0xff] }
  0x12   :  { %5168 = vmatprep.mubr.msk.f32.mxu0 %vm155_vm1, %v6375_v20  ;;  %5191 = vmatprep.mubr.msk.f32.mxu1 %vm155_vm1, %v6342_v15 }
  0x13   :  { %107 = vperm.xlu1 %5631, %v64_v21  }
  0x14   :  { %82 = vperm.xlu0 %5630, %v59_v22  }
  0x15   :  { %5169 = vmatmul.mubr.msk.f32.gmra.mxu0 %vm155_vm1, %v6396_v23  ;;  %5192 = vmatmul.mubr.msk.f32.gmra.mxu1 %vm155_vm1, %v6370_v19 }
  0x16   :  { %5171 = vmatprep.mubr.msk.f32.mxu0 %vm155_vm1, %v6401_v24  ;;  %5194 = vmatprep.mubr.msk.f32.mxu1 %vm155_vm1, %v6375_v20 }
  0x17   :  { %102 = vperm.xlu1 %5631, %v63_v25  }
  0x18   :  { %77 = vperm.xlu0 %5630, %v58_v26  }
  0x19   :  { %5172 = vmatmul.mubr.msk.f32.gmra.mxu0 %vm155_vm1, %v6420_v27  ;;  %5195 = vmatmul.mubr.msk.f32.gmra.mxu1 %vm155_vm1, %v6396_v23 }
  0x1a   :  { %5174 = vmatprep.mubr.msk.f32.mxu0 %vm155_vm1, %v6425_v28  ;;  %5197 = vmatprep.mubr.msk.f32.mxu1 %vm155_vm1, %v6401_v24 }
  0x1b   :  { %97 = vperm.xlu1 %5631, %v62_v29  }
  0x1c   :  { %132 = vperm.xlu0 %5630, %v69_v30  }
  0x1d   :  { %5175 = vmatmul.mubr.msk.f32.gmra.mxu0 %vm155_vm1, %v6444_v31  ;;  %5198 = vmatmul.mubr.msk.f32.gmra.mxu1 %vm155_vm1, %v6420_v27 }
  0x1e   :  { %5200 = vmatprep.mubr.msk.f32.mxu1 %vm155_vm1, %v6425_v28  ;;  %5208 = vmatprep.mubr.msk.f32.mxu0 %vm155_vm1, %v6257_v1 }
  0x1f   :  { %152 = vperm.xlu1 %5631, %v73_v32  }
  0x20   :  { %127 = vperm.xlu0 %5630, %v68_v34  }
  0x21   :  { %5201 = vmatmul.mubr.msk.f32.gmra.mxu1 %vm155_vm1, %v6444_v31  ;;  %5209 = vmatmul.mubr.msk.f32.vlgmr.msra.gmra.mxu0 %vm155_vm1, %v6269_v4 }
  0x22   :  { %5203 = vmatprep.mubr.msk.f32.mxu1 %vm155_vm1, %v6262_v2  ;;  %5211 = vmatprep.mubr.msk.f32.mxu0 %vm155_vm1, %v6284_v7 }
  0x23   :  { %5259 = vmatpush3.msk.msra.mxu0 %vm204_vm0, %v6325_v12  ;;  %147 = vperm.xlu1 %5631, %v72_v35   ;;  %v53_v12 = vld [vmem:[%s8057_s2 + $0x58] sm:$0xff] }
  0x24   :  { %122 = vperm.xlu0 %5630, %v67_v37   ;;  %5310 = vmatprep.subr.msk.mxu0 %vm204_vm0, %v6475_v38 }
  0x25   :  { %5204 = vmatmul.mubr.msk.f32.gmra.mxu1 %vm155_vm1, %v6274_v5  ;;  %5212 = vmatmul.mubr.msk.f32.gmra.mxu0 %vm155_vm1, %v6300_v8 }
  0x26   :  { %5214 = vmatprep.mubr.msk.f32.mxu0 %vm155_vm1, %v6308_v9  ;;  %5234 = vmatprep.mubr.msk.f32.mxu1 %vm155_vm1, %v6257_v1 }
  0x27   :  { %142 = vperm.xlu1 %5631, %v71_v39  }
  0x28   :  { %117 = vperm.xlu0 %5630, %v66_v41  }
  0x29   :  { %5215 = vmatmul.mubr.msk.f32.gmra.mxu0 %vm155_vm1, %v6337_v14  ;;  %5235 = vmatmul.mubr.msk.f32.vlgmr.msra.gmra.mxu1 %vm155_vm1, %v6269_v4 }
  0x2a   :  { %5217 = vmatprep.mubr.msk.f32.mxu0 %vm155_vm1, %v6342_v15  ;;  %5237 = vmatprep.mubr.msk.f32.mxu1 %vm155_vm1, %v6284_v7 }
  0x2b   :  { %5285 = vmatpush3.msk.msra.mxu1 %vm204_vm0, %v6351_v16  ;;  %137 = vperm.xlu1 %5631, %v70_v43   ;;  %v57_v16 = vld [vmem:[%s8057_s2 + $0x78] sm:$0xff] }
  0x2c   :  { %5336 = vmatprep.subr.msk.mxu1 %vm204_vm0, %v6522_v46  ;;  %3849 = vbcast.lane.b32.xlu0 %v6512_v44, 256 }
  0x2d   :  { %5218 = vmatmul.mubr.msk.f32.gmra.mxu0 %vm155_vm1, %v6370_v19  ;;  %5238 = vmatmul.mubr.msk.f32.gmra.mxu1 %vm155_vm1, %v6300_v8 }
  0x2e   :  { %5220 = vmatprep.mubr.msk.f32.mxu0 %vm155_vm1, %v6375_v20  ;;  %5240 = vmatprep.mubr.msk.f32.mxu1 %vm155_vm1, %v6308_v9 }
  0x2f   :  { %3853 = vbcast.lane.b32.xlu1 %v6512_v44, 264 }
  0x30   :  { %3868 = vbcast.lane.b32.xlu0 %v6534_v47, 256 }
  0x31   :  { %5221 = vmatmul.mubr.msk.f32.gmra.mxu0 %vm155_vm1, %v6396_v23  ;;  %5241 = vmatmul.mubr.msk.f32.gmra.mxu1 %vm155_vm1, %v6337_v14 }
  0x32   :  { %5223 = vmatprep.mubr.msk.f32.mxu0 %vm155_vm1, %v6401_v24  ;;  %5243 = vmatprep.mubr.msk.f32.mxu1 %vm155_vm1, %v6342_v15 }
  0x33   :  { %3872 = vbcast.lane.b32.xlu1 %v6534_v47, 264 }
  0x34   :  { %3887 = vbcast.lane.b32.xlu0 %v6548_v49, 256 }
  0x35   :  { %5224 = vmatmul.mubr.msk.f32.gmra.mxu0 %vm155_vm1, %v6420_v27  ;;  %5244 = vmatmul.mubr.msk.f32.gmra.mxu1 %vm155_vm1, %v6370_v19 }
  0x36   :  { %5226 = vmatprep.mubr.msk.f32.mxu0 %vm155_vm1, %v6425_v28  ;;  %5246 = vmatprep.mubr.msk.f32.mxu1 %vm155_vm1, %v6375_v20 }
  0x37   :  { %3891 = vbcast.lane.b32.xlu1 %v6548_v49, 264 }
  0x38   :  { %3906 = vbcast.lane.b32.xlu0 %v6562_v51, 256 }
  0x39   :  { %5227 = vmatmul.mubr.msk.f32.gmra.mxu0 %vm155_vm1, %v6444_v31  ;;  %5247 = vmatmul.mubr.msk.f32.gmra.mxu1 %vm155_vm1, %v6396_v23 }
  0x3a   :  { %5229 = vmatprep.mubr.msk.f32.mxu0 %vm155_vm1, %v6262_v2  ;;  %5249 = vmatprep.mubr.msk.f32.mxu1 %vm155_vm1, %v6401_v24 }
  0x3b   :  { %3910 = vbcast.lane.b32.xlu1 %v6562_v51, 264 }
  0x3c   :  { %3925 = vbcast.lane.b32.xlu0 %v6576_v53, 256 }
  0x3d   :  { %5230 = vmatmul.mubr.msk.f32.gmra.mxu0 %vm155_vm1, %v6274_v5  ;;  %5250 = vmatmul.mubr.msk.f32.gmra.mxu1 %vm155_vm1, %v6420_v27 }
  0x3e   :  { %5252 = vmatprep.mubr.msk.f32.mxu1 %vm155_vm1, %v6425_v28  ;;  %5260 = vmatprep.mubr.msk.f32.mxu0 %vm155_vm1, %v6257_v1 }
  0x3f   :  { %3929 = vbcast.lane.b32.xlu1 %v6576_v53, 264 }
  0x40   :  { %3944 = vbcast.lane.b32.xlu0 %v6590_v55, 256 }
  0x41   :  { %5253 = vmatmul.mubr.msk.f32.gmra.mxu1 %vm155_vm1, %v6444_v31  ;;  %5261 = vmatmul.mubr.msk.f32.vlgmr.msra.gmra.mxu0 %vm155_vm1, %v6269_v4 }
  0x42   :  { %5255 = vmatprep.mubr.msk.f32.mxu1 %vm155_vm1, %v6262_v2  ;;  %5263 = vmatprep.mubr.msk.f32.mxu0 %vm155_vm1, %v6284_v7 }
  0x43   :  { %5311 = vmatpush3.msk.msra.mxu0 %vm204_vm0, %v6475_v38  ;;  %3948 = vbcast.lane.b32.xlu1 %v6590_v55, 264 }
  0x44   :  { %5362 = vmatprep.subr.mxu0 %v6210_v59  ;;  %3963 = vbcast.lane.b32.xlu0 %v6604_v57, 256 }
  0x45   :  { %5256 = vmatmul.mubr.msk.f32.gmra.mxu1 %vm155_vm1, %v6274_v5  ;;  %5264 = vmatmul.mubr.msk.f32.gmra.mxu0 %vm155_vm1, %v6300_v8 }
  0x46   :  { %5266 = vmatprep.mubr.msk.f32.mxu0 %vm155_vm1, %v6308_v9  ;;  %5286 = vmatprep.mubr.msk.f32.mxu1 %vm155_vm1, %v6257_v1 }
  0x47   :  { %3967 = vbcast.lane.b32.xlu1 %v6604_v57, 264 }
  0x48   :  { %3982 = vbcast.lane.b32.xlu0 %v6620_v60, 256 }
  0x49   :  { %5267 = vmatmul.mubr.msk.f32.gmra.mxu0 %vm155_vm1, %v6337_v14  ;;  %5287 = vmatmul.mubr.msk.f32.vlgmr.msra.gmra.mxu1 %vm155_vm1, %v6269_v4 }
  0x4a   :  { %5269 = vmatprep.mubr.msk.f32.mxu0 %vm155_vm1, %v6342_v15  ;;  %5289 = vmatprep.mubr.msk.f32.mxu1 %vm155_vm1, %v6284_v7 }
  0x4b   :  { %5337 = vmatpush3.msk.msra.mxu1 %vm204_vm0, %v6522_v46  ;;  %3986 = vbcast.lane.b32.xlu1 %v6620_v60, 264 }
  0x4c   :  { %3857 = vbcast.lane.b32.xlu0 %v6512_v44, 272 }
  0x4d   :  { %5270 = vmatmul.mubr.msk.f32.gmra.mxu0 %vm155_vm1, %v6370_v19  ;;  %5290 = vmatmul.mubr.msk.f32.gmra.mxu1 %vm155_vm1, %v6300_v8 }
  0x4e   :  { %5272 = vmatprep.mubr.msk.f32.mxu0 %vm155_vm1, %v6375_v20  ;;  %5292 = vmatprep.mubr.msk.f32.mxu1 %vm155_vm1, %v6308_v9 }
  0x4f   :  { %3876 = vbcast.lane.b32.xlu1 %v6534_v47, 272 }
  0x50   :  { %3895 = vbcast.lane.b32.xlu0 %v6548_v49, 272 }
  0x51   :  { %5273 = vmatmul.mubr.msk.f32.gmra.mxu0 %vm155_vm1, %v6396_v23  ;;  %5293 = vmatmul.mubr.msk.f32.gmra.mxu1 %vm155_vm1, %v6337_v14 }
  0x52   :  { %5275 = vmatprep.mubr.msk.f32.mxu0 %vm155_vm1, %v6401_v24  ;;  %5295 = vmatprep.mubr.msk.f32.mxu1 %vm155_vm1, %v6342_v15 }
  0x53   :  { %3914 = vbcast.lane.b32.xlu1 %v6562_v51, 272 }
  0x54   :  { %3933 = vbcast.lane.b32.xlu0 %v6576_v53, 272 }
  0x55   :  { %5276 = vmatmul.mubr.msk.f32.gmra.mxu0 %vm155_vm1, %v6420_v27  ;;  %5296 = vmatmul.mubr.msk.f32.gmra.mxu1 %vm155_vm1, %v6370_v19 }
  0x56   :  { %5278 = vmatprep.mubr.msk.f32.mxu0 %vm155_vm1, %v6425_v28  ;;  %5298 = vmatprep.mubr.msk.f32.mxu1 %vm155_vm1, %v6375_v20 }
  0x57   :  { %3952 = vbcast.lane.b32.xlu1 %v6590_v55, 272 }
  0x58   :  { %3971 = vbcast.lane.b32.xlu0 %v6604_v57, 272 }
  0x59   :  { %5279 = vmatmul.mubr.msk.f32.gmra.mxu0 %vm155_vm1, %v6444_v31  ;;  %5299 = vmatmul.mubr.msk.f32.gmra.mxu1 %vm155_vm1, %v6396_v23 }
  0x5a   :  { %5281 = vmatprep.mubr.msk.f32.mxu0 %vm155_vm1, %v6262_v2  ;;  %5301 = vmatprep.mubr.msk.f32.mxu1 %vm155_vm1, %v6401_v24 }
  0x5b   :  { %3990 = vbcast.lane.b32.xlu1 %v6620_v60, 272 }
  0x5c   :  { %3861 = vbcast.lane.b32.xlu0 %v6512_v44, 280 }
  0x5d   :  { %5282 = vmatmul.mubr.msk.f32.gmra.mxu0 %vm155_vm1, %v6274_v5  ;;  %5302 = vmatmul.mubr.msk.f32.gmra.mxu1 %vm155_vm1, %v6420_v27 }
  0x5e   :  { %5304 = vmatprep.mubr.msk.f32.mxu1 %vm155_vm1, %v6425_v28  ;;  %5312 = vmatprep.mubr.msk.f32.mxu0 %vm155_vm1, %v6257_v1 }
  0x5f   :  { %3880 = vbcast.lane.b32.xlu1 %v6534_v47, 280 }
  0x60   :  { %3899 = vbcast.lane.b32.xlu0 %v6548_v49, 280 }
  0x61   :  { %5305 = vmatmul.mubr.msk.f32.gmra.mxu1 %vm155_vm1, %v6444_v31  ;;  %5313 = vmatmul.mubr.msk.f32.vlgmr.msra.gmra.mxu0 %vm155_vm1, %v6269_v4 }
  0x62   :  { %5307 = vmatprep.mubr.msk.f32.mxu1 %vm155_vm1, %v6262_v2  ;;  %5315 = vmatprep.mubr.msk.f32.mxu0 %vm155_vm1, %v6284_v7 }
  0x63   :  { %5363 = vmatpush3.msra.mxu0 %v6210_v59  ;;  %3918 = vbcast.lane.b32.xlu1 %v6562_v51, 280 }
  0x64   :  { %3937 = vbcast.lane.b32.xlu0 %v6576_v53, 280 }
  0x65   :  { %5308 = vmatmul.mubr.msk.f32.gmra.mxu1 %vm155_vm1, %v6274_v5  ;;  %5316 = vmatmul.mubr.msk.f32.gmra.mxu0 %vm155_vm1, %v6300_v8 }
  0x66   :  { %5318 = vmatprep.mubr.msk.f32.mxu0 %vm155_vm1, %v6308_v9  ;;  %5338 = vmatprep.mubr.msk.f32.mxu1 %vm155_vm1, %v6257_v1  ;;  %v42_v1 = vld [vmem:[%s8057_s2] sm:$0xff] }
  0x67   :  { %3956 = vbcast.lane.b32.xlu1 %v6590_v55, 280 }
  0x68   :  { %3975 = vbcast.lane.b32.xlu0 %v6604_v57, 280 }
  0x69   :  { %5319 = vmatmul.mubr.msk.f32.gmra.mxu0 %vm155_vm1, %v6337_v14  ;;  %5339 = vmatmul.mubr.msk.f32.vlgmr.msra.gmra.mxu1 %vm155_vm1, %v6269_v4  ;;  %v44_v4 = vld [vmem:[%s8057_s2 + $0x10] sm:$0xff] }
  0x6a   :  { %5321 = vmatprep.mubr.msk.f32.mxu0 %vm155_vm1, %v6342_v15  ;;  %5341 = vmatprep.mubr.msk.f32.mxu1 %vm155_vm1, %v6284_v7  ;;  %v46_v7 = vld [vmem:[%s8057_s2 + $0x20] sm:$0xff] }
  0x6b   :  { %3994 = vbcast.lane.b32.xlu1 %v6620_v60, 280 }
  0x6c   :  { %4355 = vperm.xlu0 %5630, %v4349_v61  }
  0x6d   :  { %5322 = vmatmul.mubr.msk.f32.gmra.mxu0 %vm155_vm1, %v6370_v19  ;;  %5342 = vmatmul.mubr.msk.f32.gmra.mxu1 %vm155_vm1, %v6300_v8  ;;  %v48_v8 = vld [vmem:[%s8057_s2 + $0x30] sm:$0xff] }
  0x6e   :  { %5324 = vmatprep.mubr.msk.f32.mxu0 %vm155_vm1, %v6375_v20  ;;  %5344 = vmatprep.mubr.msk.f32.mxu1 %vm155_vm1, %v6308_v9  ;;  %v50_v9 = vld [vmem:[%s8057_s2 + $0x40] sm:$0xff] }
  0x6f   :  { %4360 = vperm.xlu1 %5631, %v4350_v62  }
  0x70   :  { %4365 = vperm.xlu0 %5630, %v4351_v63  }
  0x71   :  { %5325 = vmatmul.mubr.msk.f32.gmra.mxu0 %vm155_vm1, %v6396_v23  ;;  %5345 = vmatmul.mubr.msk.f32.gmra.mxu1 %vm155_vm1, %v6337_v14  ;;  %v55_v14 = vld [vmem:[%s8057_s2 + $0x68] sm:$0xff] }
  0x72   :  { %5327 = vmatprep.mubr.msk.f32.mxu0 %vm155_vm1, %v6401_v24  ;;  %5347 = vmatprep.mubr.msk.f32.mxu1 %vm155_vm1, %v6342_v15  ;;  %v56_v15 = vld [vmem:[%s8057_s2 + $0x70] sm:$0xff] }
  0x73   :  { %4370 = vperm.xlu1 %5631, %v4352_v0  }
  0x75   :  { %5328 = vmatmul.mubr.msk.f32.gmra.mxu0 %vm155_vm1, %v6420_v27  ;;  %5348 = vmatmul.mubr.msk.f32.gmra.mxu1 %vm155_vm1, %v6370_v19 }
  0x76   :  { %5330 = vmatprep.mubr.msk.f32.mxu0 %vm155_vm1, %v6425_v28  ;;  %5350 = vmatprep.mubr.msk.f32.mxu1 %vm155_vm1, %v6375_v20 }
  0x79   :  { %5331 = vmatmul.mubr.msk.f32.gmra.mxu0 %vm155_vm1, %v6444_v31  ;;  %5351 = vmatmul.mubr.msk.f32.gmra.mxu1 %vm155_vm1, %v6396_v23 }
  0x7a   :  { %5333 = vmatprep.mubr.msk.f32.mxu0 %vm155_vm1, %v6262_v2  ;;  %5353 = vmatprep.mubr.msk.f32.mxu1 %vm155_vm1, %v6401_v24 }
  0x7d   :  { %5334 = vmatmul.mubr.msk.f32.gmra.mxu0 %vm155_vm1, %v6274_v5  ;;  %5354 = vmatmul.mubr.msk.f32.gmra.mxu1 %vm155_vm1, %v6420_v27 }
  0x7e   :  { %5356 = vmatprep.mubr.msk.f32.mxu1 %vm155_vm1, %v6425_v28  ;;  %5364 = vmatprep.mubr.msk.f32.mxu0 %vm1555_vm2, %v42_v1 }
  0x81   :  { %5357 = vmatmul.mubr.msk.f32.gmra.mxu1 %vm155_vm1, %v6444_v31  ;;  %5365 = vmatmul.mubr.msk.f32.vlgmr.msra.gmra.mxu0 %vm1555_vm2, %v43_v3 }
  0x82   :  { %5359 = vmatprep.mubr.msk.f32.mxu1 %vm155_vm1, %v6262_v2  ;;  %5367 = vmatprep.mubr.msk.f32.mxu0 %vm1555_vm2, %v44_v4  ;;  %v47_v2 = vld [vmem:[%s8057_s2 + $0x28] sm:$0xff] }
  0x85   :  { %5360 = vmatmul.mubr.msk.f32.gmra.mxu1 %vm155_vm1, %v6274_v5  ;;  %5368 = vmatmul.mubr.msk.f32.gmra.mxu0 %vm1555_vm2, %v45_v6  ;;  %v49_v5 = vld [vmem:[%s8057_s2 + $0x38] sm:$0xff] }
  0x86   :  { %5370 = vmatprep.mubr.msk.f32.mxu0 %vm1555_vm2, %v46_v7  ;;  %5396 = vmatprep.mubr.msk.f32.mxu1 %vm1555_vm2, %v42_v1 }
  0x87   :  { %v6847_v18 = vpop.permute.xlu0 %92 }
  0x89   :  { %5371 = vmatmul.mubr.msk.f32.gmra.mxu0 %vm1555_vm2, %v47_v2 }
  0x8a   :  { %5373 = vmatprep.mubr.msk.f32.mxu0 %vm1555_vm2, %v48_v8  ;;  %v6845_v17 = vpop.permute.xlu1 %87 }
  0x8b   :  { %v6851_v20 = vpop.permute.xlu0 %112 }
  0x8d   :  { %5374 = vmatmul.mubr.msk.f32.gmra.mxu0 %vm1555_vm2, %v49_v5 }
  0x8e   :  { %5376 = vmatprep.mubr.msk.f32.mxu0 %vm1555_vm2, %v50_v9  ;;  %v6849_v19 = vpop.permute.xlu1 %107 }
  0x8f   :  { %v6855_v22 = vpop.permute.xlu0 %82 }
  0x91   :  { %5377 = vmatmul.mubr.msk.f32.gmra.mxu0 %vm1555_vm2, %v51_v10 }
  0x92   :  { %5379 = vmatprep.mubr.msk.f32.mxu0 %vm1555_vm2, %v52_v11  ;;  %v6853_v21 = vpop.permute.xlu1 %102 }
  0x93   :  { %v6859_v24 = vpop.permute.xlu0 %77 }
  0x95   :  { %5380 = vmatmul.mubr.msk.f32.gmra.mxu0 %vm1555_vm2, %v53_v12 }
  0x96   :  { %5382 = vmatprep.mubr.msk.f32.mxu0 %vm1555_vm2, %v54_v13  ;;  %v6857_v23 = vpop.permute.xlu1 %97 }
  0x97   :  { %v6863_v26 = vpop.permute.xlu0 %132 }
  0x99   :  { %5383 = vmatmul.mubr.msk.f32.gmra.mxu0 %vm1555_vm2, %v55_v14 }
  0x9a   :  { %5385 = vmatprep.mubr.msk.f32.mxu0 %vm1555_vm2, %v56_v15  ;;  %v6861_v25 = vpop.permute.xlu1 %152 }
  0x9b   :  { %v6871_v35 = vpop.permute.xlu0 %127 }
  0x9d   :  { %5386 = vmatmul.mubr.msk.f32.gmra.mxu0 %vm1555_vm2, %v57_v16 }
  0x9e   :  { %5428 = vmatprep.mubr.msk.f32.mxu0 %vm1555_vm2, %v42_v1  ;;  %v6867_v31 = vpop.permute.xlu1 %147 }
  0x9f   :  { %v6887_v50 = vpop.permute.xlu0 %122 }
  0xa2   :  { %v6907_v6 = vpop.permute.xlu1 %142 }
  0xa3   :  { %v6901_v63 = vpop.permute.xlu0 %117 }
  0xc5   :  { %v5158_v27 = vpop.f32.mrf.mxu0  ;;  %v5179_v28 = vpop.f32.mrf.mxu1 }
  0xc6   :  { %v280_v29 = vadd.f32 %v5158_v27, %v6855_v22  ;;  %v350_v30 = vadd.f32 %v5179_v28, %v6861_v25  ;;  %v6921_v27 = vpop.permute.xlu1 %137 }
  0xc7   :  { %v274_v32 = vpop.f32.mrf.mxu0  ;;  %v344_v33 = vpop.f32.mrf.mxu1 }
  0xc8   :  { %355 = vst.msk [vmem:[#allocation2 + $0x8] sm:$0xff] %vm353_vm3, %v280_v29  ;;  %v275_v34 = vadd.f32 %v274_v32, %v6859_v24  ;;  %369 = vst.msk [vmem:[#allocation2 + $0x78] sm:$0xff] %vm353_vm3, %v350_v30  ;;  %v345_v36 = vadd.f32 %v344_v33, %v6867_v31 }
  0xc9   :  { %v5161_v37 = vpop.f32.mrf.mxu0  ;;  %v5184_v38 = vpop.f32.mrf.mxu1 }
  0xca   :  { %354 = vst.msk [vmem:[#allocation2] sm:$0xff] %vm353_vm3, %v275_v34  ;;  %v290_v39 = vadd.f32 %v5161_v37, %v6847_v18  ;;  %v447_v41 = vadd.f32 %v5184_v38, %v6855_v22  ;;  %368 = vst.msk [vmem:[#allocation2 + $0x70] sm:$0xff] %vm353_vm3, %v345_v36 }
  0xcb   :  { %v284_v42 = vpop.f32.mrf.mxu0  ;;  %v441_v43 = vpop.f32.mrf.mxu1 }
  0xcc   :  { %357 = vst.msk [vmem:[#allocation2 + $0x18] sm:$0xff] %vm353_vm3, %v290_v39  ;;  %522 = vst.msk [vmem:[#allocation2 + $0x88] sm:$0xff] %vm353_vm3, %v447_v41  ;;  %v285_v44 = vadd.f32 %v284_v42, %v6845_v17  ;;  %v442_v45 = vadd.f32 %v441_v43, %v6859_v24 }
  0xcd   :  { %v5164_v46 = vpop.f32.mrf.mxu0  ;;  %v5187_v47 = vpop.f32.mrf.mxu1 }
  0xce   :  { %356 = vst.msk [vmem:[#allocation2 + $0x10] sm:$0xff] %vm353_vm3, %v285_v44  ;;  %521 = vst.msk [vmem:[#allocation2 + $0x80] sm:$0xff] %vm353_vm3, %v442_v45  ;;  %v300_v48 = vadd.f32 %v5164_v46, %v6853_v21  ;;  %v457_v49 = vadd.f32 %v5187_v47, %v6847_v18 }
  0xcf   :  { %v294_v51 = vpop.f32.mrf.mxu0  ;;  %v451_v52 = vpop.f32.mrf.mxu1 }
  0xd0   :  { %359 = vst.msk [vmem:[#allocation2 + $0x28] sm:$0xff] %vm353_vm3, %v300_v48  ;;  %524 = vst.msk [vmem:[#allocation2 + $0x98] sm:$0xff] %vm353_vm3, %v457_v49  ;;  %v295_v53 = vadd.f32 %v294_v51, %v6857_v23  ;;  %v452_v54 = vadd.f32 %v451_v52, %v6845_v17 }
  0xd1   :  { %v5167_v55 = vpop.f32.mrf.mxu0  ;;  %v5190_v56 = vpop.f32.mrf.mxu1 }
  0xd2   :  { %358 = vst.msk [vmem:[#allocation2 + $0x20] sm:$0xff] %vm353_vm3, %v295_v53  ;;  %523 = vst.msk [vmem:[#allocation2 + $0x90] sm:$0xff] %vm353_vm3, %v452_v54  ;;  %v310_v57 = vadd.f32 %v5167_v55, %v6851_v20  ;;  %v467_v58 = vadd.f32 %v5190_v56, %v6853_v21 }
  0xd3   :  { %v304_v59 = vpop.f32.mrf.mxu0  ;;  %v461_v60 = vpop.f32.mrf.mxu1 }
  0xd4   :  { %361 = vst.msk [vmem:[#allocation2 + $0x38] sm:$0xff] %vm353_vm3, %v310_v57  ;;  %526 = vst.msk [vmem:[#allocation2 + $0xa8] sm:$0xff] %vm353_vm3, %v467_v58  ;;  %v305_v61 = vadd.f32 %v304_v59, %v6849_v19  ;;  %v462_v62 = vadd.f32 %v461_v60, %v6857_v23 }
  0xd5   :  { %v5170_v0 = vpop.f32.mrf.mxu0  ;;  %v5193_v1 = vpop.f32.mrf.mxu1 }
  0xd6   :  { %360 = vst.msk [vmem:[#allocation2 + $0x30] sm:$0xff] %vm353_vm3, %v305_v61  ;;  %525 = vst.msk [vmem:[#allocation2 + $0xa0] sm:$0xff] %vm353_vm3, %v462_v62  ;;  %v320_v3 = vadd.f32 %v5170_v0, %v6887_v50  ;;  %v477_v4 = vadd.f32 %v5193_v1, %v6851_v20 }
  0xd7   :  { %v314_v7 = vpop.f32.mrf.mxu0  ;;  %v471_v2 = vpop.f32.mrf.mxu1 }
  0xd8   :  { %363 = vst.msk [vmem:[#allocation2 + $0x48] sm:$0xff] %vm353_vm3, %v320_v3  ;;  %528 = vst.msk [vmem:[#allocation2 + $0xb8] sm:$0xff] %vm353_vm3, %v477_v4  ;;  %v315_v8 = vadd.f32 %v314_v7, %v6901_v63  ;;  %v472_v5 = vadd.f32 %v471_v2, %v6849_v19 }
  0xd9   :  { %v5173_v9 = vpop.f32.mrf.mxu0  ;;  %v5196_v10 = vpop.f32.mrf.mxu1 }
  0xda   :  { %362 = vst.msk [vmem:[#allocation2 + $0x40] sm:$0xff] %vm353_vm3, %v315_v8  ;;  %527 = vst.msk [vmem:[#allocation2 + $0xb0] sm:$0xff] %vm353_vm3, %v472_v5  ;;  %v330_v11 = vadd.f32 %v5173_v9, %v6863_v26  ;;  %v487_v12 = vadd.f32 %v5196_v10, %v6887_v50 }
  0xdb   :  { %v324_v13 = vpop.f32.mrf.mxu0  ;;  %v481_v14 = vpop.f32.mrf.mxu1 }
  0xdc   :  { %365 = vst.msk [vmem:[#allocation2 + $0x58] sm:$0xff] %vm353_vm3, %v330_v11  ;;  %530 = vst.msk [vmem:[#allocation2 + $0xc8] sm:$0xff] %vm353_vm3, %v487_v12  ;;  %v325_v15 = vadd.f32 %v324_v13, %v6871_v35  ;;  %v482_v16 = vadd.f32 %v481_v14, %v6901_v63 }
  0xdd   :  { %v5176_v28 = vpop.f32.mrf.mxu0  ;;  %v5199_v29 = vpop.f32.mrf.mxu1 }
  0xde   :  { %364 = vst.msk [vmem:[#allocation2 + $0x50] sm:$0xff] %vm353_vm3, %v325_v15  ;;  %529 = vst.msk [vmem:[#allocation2 + $0xc0] sm:$0xff] %vm353_vm3, %v482_v16  ;;  %v340_v30 = vadd.f32 %v5176_v28, %v6907_v6  ;;  %v497_v32 = vadd.f32 %v5199_v29, %v6863_v26 }
  0xdf   :  { %v334_v33 = vpop.f32.mrf.mxu0  ;;  %v491_v34 = vpop.f32.mrf.mxu1 }
  0xe0   :  { %367 = vst.msk [vmem:[#allocation2 + $0x68] sm:$0xff] %vm353_vm3, %v340_v30  ;;  %532 = vst.msk [vmem:[#allocation2 + $0xd8] sm:$0xff] %vm353_vm3, %v497_v32  ;;  %v335_v36 = vadd.f32 %v334_v33, %v6921_v27  ;;  %v492_v37 = vadd.f32 %v491_v34, %v6871_v35 }
  0xe1   :  { %v5202_v38 = vpop.f32.mrf.mxu1  ;;  %v5210_v39 = vpop.f32.mrf.mxu0 }
  0xe2   :  { %366 = vst.msk [vmem:[#allocation2 + $0x60] sm:$0xff] %vm353_vm3, %v335_v36  ;;  %531 = vst.msk [vmem:[#allocation2 + $0xd0] sm:$0xff] %vm353_vm3, %v492_v37  ;;  %v507_v41 = vadd.f32 %v5202_v38, %v6907_v6  ;;  %v614_v42 = vadd.f32 %v5210_v39, %v6855_v22 }
  0xe3   :  { %v501_v43 = vpop.f32.mrf.mxu1  ;;  %v608_v44 = vpop.f32.mrf.mxu0 }
  0xe4   :  { %534 = vst.msk [vmem:[#allocation2 + $0xe8] sm:$0xff] %vm353_vm3, %v507_v41  ;;  %689 = vst.msk [vmem:[#allocation2 + $0x108] sm:$0xff] %vm353_vm3, %v614_v42  ;;  %v502_v45 = vadd.f32 %v501_v43, %v6921_v27  ;;  %v609_v46 = vadd.f32 %v608_v44, %v6859_v24 }
  0xe5   :  { %v5205_v47 = vpop.f32.mrf.mxu1  ;;  %v5213_v48 = vpop.f32.mrf.mxu0 }
  0xe6   :  { %533 = vst.msk [vmem:[#allocation2 + $0xe0] sm:$0xff] %vm353_vm3, %v502_v45  ;;  %688 = vst.msk [vmem:[#allocation2 + $0x100] sm:$0xff] %vm353_vm3, %v609_v46  ;;  %v517_v49 = vadd.f32 %v5205_v47, %v6861_v25  ;;  %v624_v51 = vadd.f32 %v5213_v48, %v6847_v18 }
  0xe7   :  { %v511_v52 = vpop.f32.mrf.mxu1  ;;  %v618_v53 = vpop.f32.mrf.mxu0 }
  0xe8   :  { %536 = vst.msk [vmem:[#allocation2 + $0xf8] sm:$0xff] %vm353_vm3, %v517_v49  ;;  %691 = vst.msk [vmem:[#allocation2 + $0x118] sm:$0xff] %vm353_vm3, %v624_v51  ;;  %v512_v54 = vadd.f32 %v511_v52, %v6867_v31  ;;  %v619_v55 = vadd.f32 %v618_v53, %v6845_v17 }
  0xe9   :  { %v5216_v56 = vpop.f32.mrf.mxu0  ;;  %v5236_v57 = vpop.f32.mrf.mxu1 }
  0xea   :  { %535 = vst.msk [vmem:[#allocation2 + $0xf0] sm:$0xff] %vm353_vm3, %v512_v54  ;;  %690 = vst.msk [vmem:[#allocation2 + $0x110] sm:$0xff] %vm353_vm3, %v619_v55  ;;  %v634_v58 = vadd.f32 %v5216_v56, %v6853_v21  ;;  %v781_v59 = vadd.f32 %v5236_v57, %v6855_v22 }
  0xeb   :  { %v628_v60 = vpop.f32.mrf.mxu0  ;;  %v775_v61 = vpop.f32.mrf.mxu1 }
  0xec   :  { %693 = vst.msk [vmem:[#allocation2 + $0x128] sm:$0xff] %vm353_vm3, %v634_v58  ;;  %856 = vst.msk [vmem:[#allocation2 + $0x188] sm:$0xff] %vm353_vm3, %v781_v59  ;;  %v629_v62 = vadd.f32 %v628_v60, %v6857_v23  ;;  %v776_v0 = vadd.f32 %v775_v61, %v6859_v24 }
  0xed   :  { %v5219_v1 = vpop.f32.mrf.mxu0  ;;  %v5239_v3 = vpop.f32.mrf.mxu1 }
  0xee   :  { %692 = vst.msk [vmem:[#allocation2 + $0x120] sm:$0xff] %vm353_vm3, %v629_v62  ;;  %855 = vst.msk [vmem:[#allocation2 + $0x180] sm:$0xff] %vm353_vm3, %v776_v0  ;;  %v644_v4 = vadd.f32 %v5219_v1, %v6851_v20  ;;  %v791_v7 = vadd.f32 %v5239_v3, %v6847_v18 }
  0xef   :  { %v638_v2 = vpop.f32.mrf.mxu0  ;;  %v785_v8 = vpop.f32.mrf.mxu1 }
  0xf0   :  { %695 = vst.msk [vmem:[#allocation2 + $0x138] sm:$0xff] %vm353_vm3, %v644_v4  ;;  %858 = vst.msk [vmem:[#allocation2 + $0x198] sm:$0xff] %vm353_vm3, %v791_v7  ;;  %v639_v5 = vadd.f32 %v638_v2, %v6849_v19  ;;  %v786_v9 = vadd.f32 %v785_v8, %v6845_v17 }
  0xf1   :  { %v5222_v10 = vpop.f32.mrf.mxu0  ;;  %v5242_v11 = vpop.f32.mrf.mxu1 }
  0xf2   :  { %694 = vst.msk [vmem:[#allocation2 + $0x130] sm:$0xff] %vm353_vm3, %v639_v5  ;;  %857 = vst.msk [vmem:[#allocation2 + $0x190] sm:$0xff] %vm353_vm3, %v786_v9  ;;  %v654_v12 = vadd.f32 %v5222_v10, %v6887_v50  ;;  %v801_v13 = vadd.f32 %v5242_v11, %v6853_v21 }
  0xf3   :  { %v648_v14 = vpop.f32.mrf.mxu0  ;;  %v795_v15 = vpop.f32.mrf.mxu1 }
  0xf4   :  { %697 = vst.msk [vmem:[#allocation2 + $0x148] sm:$0xff] %vm353_vm3, %v654_v12  ;;  %860 = vst.msk [vmem:[#allocation2 + $0x1a8] sm:$0xff] %vm353_vm3, %v801_v13  ;;  %v649_v16 = vadd.f32 %v648_v14, %v6901_v63  ;;  %v796_v28 = vadd.f32 %v795_v15, %v6857_v23 }
  0xf5   :  { %v5225_v29 = vpop.f32.mrf.mxu0  ;;  %v5245_v30 = vpop.f32.mrf.mxu1 }
  0xf6   :  { %696 = vst.msk [vmem:[#allocation2 + $0x140] sm:$0xff] %vm353_vm3, %v649_v16  ;;  %859 = vst.msk [vmem:[#allocation2 + $0x1a0] sm:$0xff] %vm353_vm3, %v796_v28  ;;  %v664_v32 = vadd.f32 %v5225_v29, %v6863_v26  ;;  %v811_v33 = vadd.f32 %v5245_v30, %v6851_v20 }
  0xf7   :  { %v658_v34 = vpop.f32.mrf.mxu0  ;;  %v805_v36 = vpop.f32.mrf.mxu1 }
  0xf8   :  { %699 = vst.msk [vmem:[#allocation2 + $0x158] sm:$0xff] %vm353_vm3, %v664_v32  ;;  %862 = vst.msk [vmem:[#allocation2 + $0x1b8] sm:$0xff] %vm353_vm3, %v811_v33  ;;  %v659_v37 = vadd.f32 %v658_v34, %v6871_v35  ;;  %v806_v38 = vadd.f32 %v805_v36, %v6849_v19 }
  0xf9   :  { %v5228_v39 = vpop.f32.mrf.mxu0  ;;  %v5248_v41 = vpop.f32.mrf.mxu1 }
  0xfa   :  { %698 = vst.msk [vmem:[#allocation2 + $0x150] sm:$0xff] %vm353_vm3, %v659_v37  ;;  %861 = vst.msk [vmem:[#allocation2 + $0x1b0] sm:$0xff] %vm353_vm3, %v806_v38  ;;  %v674_v42 = vadd.f32 %v5228_v39, %v6907_v6  ;;  %v821_v43 = vadd.f32 %v5248_v41, %v6887_v50 }
  0xfb   :  { %v668_v44 = vpop.f32.mrf.mxu0  ;;  %v815_v45 = vpop.f32.mrf.mxu1 }
  0xfc   :  { %701 = vst.msk [vmem:[#allocation2 + $0x168] sm:$0xff] %vm353_vm3, %v674_v42  ;;  %864 = vst.msk [vmem:[#allocation2 + $0x1c8] sm:$0xff] %vm353_vm3, %v821_v43  ;;  %v669_v46 = vadd.f32 %v668_v44, %v6921_v27  ;;  %v816_v47 = vadd.f32 %v815_v45, %v6901_v63 }
  0xfd   :  { %v5231_v48 = vpop.f32.mrf.mxu0  ;;  %v5251_v49 = vpop.f32.mrf.mxu1 }
  0xfe   :  { %700 = vst.msk [vmem:[#allocation2 + $0x160] sm:$0xff] %vm353_vm3, %v669_v46  ;;  %863 = vst.msk [vmem:[#allocation2 + $0x1c0] sm:$0xff] %vm353_vm3, %v816_v47  ;;  %v684_v51 = vadd.f32 %v5231_v48, %v6861_v25  ;;  %v831_v52 = vadd.f32 %v5251_v49, %v6863_v26 }
  0xff   :  { %v678_v53 = vpop.f32.mrf.mxu0  ;;  %v825_v54 = vpop.f32.mrf.mxu1 }
 0x100   :  { %703 = vst.msk [vmem:[#allocation2 + $0x178] sm:$0xff] %vm353_vm3, %v684_v51  ;;  %866 = vst.msk [vmem:[#allocation2 + $0x1d8] sm:$0xff] %vm353_vm3, %v831_v52  ;;  %v679_v55 = vadd.f32 %v678_v53, %v6867_v31  ;;  %v826_v56 = vadd.f32 %v825_v54, %v6871_v35 }
 0x101   :  { %v5254_v57 = vpop.f32.mrf.mxu1  ;;  %v5262_v58 = vpop.f32.mrf.mxu0 }
 0x102   :  { %702 = vst.msk [vmem:[#allocation2 + $0x170] sm:$0xff] %vm353_vm3, %v679_v55  ;;  %865 = vst.msk [vmem:[#allocation2 + $0x1d0] sm:$0xff] %vm353_vm3, %v826_v56  ;;  %v841_v59 = vadd.f32 %v5254_v57, %v6907_v6  ;;  %v948_v60 = vadd.f32 %v5262_v58, %v6855_v22 }
 0x103   :  { %v835_v61 = vpop.f32.mrf.mxu1  ;;  %v942_v62 = vpop.f32.mrf.mxu0 }
 0x104   :  { %868 = vst.msk [vmem:[#allocation2 + $0x1e8] sm:$0xff] %vm353_vm3, %v841_v59  ;;  %1023 = vst.msk [vmem:[#allocation2 + $0x208] sm:$0xff] %vm353_vm3, %v948_v60  ;;  %v836_v0 = vadd.f32 %v835_v61, %v6921_v27  ;;  %v943_v1 = vadd.f32 %v942_v62, %v6859_v24 }
 0x105   :  { %v5257_v3 = vpop.f32.mrf.mxu1  ;;  %v5265_v4 = vpop.f32.mrf.mxu0 }
 0x106   :  { %867 = vst.msk [vmem:[#allocation2 + $0x1e0] sm:$0xff] %vm353_vm3, %v836_v0  ;;  %1022 = vst.msk [vmem:[#allocation2 + $0x200] sm:$0xff] %vm353_vm3, %v943_v1  ;;  %v851_v7 = vadd.f32 %v5257_v3, %v6861_v25  ;;  %v958_v2 = vadd.f32 %v5265_v4, %v6847_v18 }
 0x107   :  { %v845_v8 = vpop.f32.mrf.mxu1  ;;  %v952_v5 = vpop.f32.mrf.mxu0 }
 0x108   :  { %870 = vst.msk [vmem:[#allocation2 + $0x1f8] sm:$0xff] %vm353_vm3, %v851_v7  ;;  %1025 = vst.msk [vmem:[#allocation2 + $0x218] sm:$0xff] %vm353_vm3, %v958_v2  ;;  %v846_v9 = vadd.f32 %v845_v8, %v6867_v31  ;;  %v953_v10 = vadd.f32 %v952_v5, %v6845_v17 }
 0x109   :  { %v5268_v11 = vpop.f32.mrf.mxu0  ;;  %v5288_v12 = vpop.f32.mrf.mxu1 }
 0x10a   :  { %869 = vst.msk [vmem:[#allocation2 + $0x1f0] sm:$0xff] %vm353_vm3, %v846_v9  ;;  %1024 = vst.msk [vmem:[#allocation2 + $0x210] sm:$0xff] %vm353_vm3, %v953_v10  ;;  %v968_v13 = vadd.f32 %v5268_v11, %v6853_v21  ;;  %v1115_v14 = vadd.f32 %v5288_v12, %v6855_v22 }
 0x10b   :  { %v962_v15 = vpop.f32.mrf.mxu0  ;;  %v1109_v16 = vpop.f32.mrf.mxu1 }
 0x10c   :  { %1027 = vst.msk [vmem:[#allocation2 + $0x228] sm:$0xff] %vm353_vm3, %v968_v13  ;;  %1190 = vst.msk [vmem:[#allocation2 + $0x288] sm:$0xff] %vm353_vm3, %v1115_v14  ;;  %v963_v28 = vadd.f32 %v962_v15, %v6857_v23  ;;  %v1110_v29 = vadd.f32 %v1109_v16, %v6859_v24 }
 0x10d   :  { %v5271_v30 = vpop.f32.mrf.mxu0  ;;  %v5291_v32 = vpop.f32.mrf.mxu1 }
 0x10e   :  { %1026 = vst.msk [vmem:[#allocation2 + $0x220] sm:$0xff] %vm353_vm3, %v963_v28  ;;  %1189 = vst.msk [vmem:[#allocation2 + $0x280] sm:$0xff] %vm353_vm3, %v1110_v29  ;;  %v978_v33 = vadd.f32 %v5271_v30, %v6851_v20  ;;  %v1125_v34 = vadd.f32 %v5291_v32, %v6847_v18 }
 0x10f   :  { %v972_v36 = vpop.f32.mrf.mxu0  ;;  %v1119_v37 = vpop.f32.mrf.mxu1 }
 0x110   :  { %1029 = vst.msk [vmem:[#allocation2 + $0x238] sm:$0xff] %vm353_vm3, %v978_v33  ;;  %1192 = vst.msk [vmem:[#allocation2 + $0x298] sm:$0xff] %vm353_vm3, %v1125_v34  ;;  %v973_v38 = vadd.f32 %v972_v36, %v6849_v19  ;;  %v1120_v39 = vadd.f32 %v1119_v37, %v6845_v17 }
 0x111   :  { %v5274_v41 = vpop.f32.mrf.mxu0  ;;  %v5294_v42 = vpop.f32.mrf.mxu1 }
 0x112   :  { %1028 = vst.msk [vmem:[#allocation2 + $0x230] sm:$0xff] %vm353_vm3, %v973_v38  ;;  %1191 = vst.msk [vmem:[#allocation2 + $0x290] sm:$0xff] %vm353_vm3, %v1120_v39  ;;  %v988_v43 = vadd.f32 %v5274_v41, %v6887_v50  ;;  %v1135_v44 = vadd.f32 %v5294_v42, %v6853_v21 }
 0x113   :  { %v982_v45 = vpop.f32.mrf.mxu0  ;;  %v1129_v46 = vpop.f32.mrf.mxu1 }
 0x114   :  { %1031 = vst.msk [vmem:[#allocation2 + $0x248] sm:$0xff] %vm353_vm3, %v988_v43  ;;  %1194 = vst.msk [vmem:[#allocation2 + $0x2a8] sm:$0xff] %vm353_vm3, %v1135_v44  ;;  %v983_v47 = vadd.f32 %v982_v45, %v6901_v63  ;;  %v1130_v48 = vadd.f32 %v1129_v46, %v6857_v23 }
 0x115   :  { %v5277_v49 = vpop.f32.mrf.mxu0  ;;  %v5297_v51 = vpop.f32.mrf.mxu1 }
 0x116   :  { %1030 = vst.msk [vmem:[#allocation2 + $0x240] sm:$0xff] %vm353_vm3, %v983_v47  ;;  %1193 = vst.msk [vmem:[#allocation2 + $0x2a0] sm:$0xff] %vm353_vm3, %v1130_v48  ;;  %v998_v52 = vadd.f32 %v5277_v49, %v6863_v26  ;;  %v1145_v53 = vadd.f32 %v5297_v51, %v6851_v20 }
 0x117   :  { %v992_v54 = vpop.f32.mrf.mxu0  ;;  %v1139_v55 = vpop.f32.mrf.mxu1 }
 0x118   :  { %1033 = vst.msk [vmem:[#allocation2 + $0x258] sm:$0xff] %vm353_vm3, %v998_v52  ;;  %1196 = vst.msk [vmem:[#allocation2 + $0x2b8] sm:$0xff] %vm353_vm3, %v1145_v53  ;;  %v993_v56 = vadd.f32 %v992_v54, %v6871_v35  ;;  %v1140_v57 = vadd.f32 %v1139_v55, %v6849_v19 }
 0x119   :  { %v5280_v58 = vpop.f32.mrf.mxu0  ;;  %v5300_v59 = vpop.f32.mrf.mxu1 }
 0x11a   :  { %1032 = vst.msk [vmem:[#allocation2 + $0x250] sm:$0xff] %vm353_vm3, %v993_v56  ;;  %1195 = vst.msk [vmem:[#allocation2 + $0x2b0] sm:$0xff] %vm353_vm3, %v1140_v57  ;;  %v1008_v60 = vadd.f32 %v5280_v58, %v6907_v6  ;;  %v1155_v61 = vadd.f32 %v5300_v59, %v6887_v50 }
 0x11b   :  { %v1002_v62 = vpop.f32.mrf.mxu0  ;;  %v1149_v0 = vpop.f32.mrf.mxu1 }
 0x11c   :  { %1035 = vst.msk [vmem:[#allocation2 + $0x268] sm:$0xff] %vm353_vm3, %v1008_v60  ;;  %1198 = vst.msk [vmem:[#allocation2 + $0x2c8] sm:$0xff] %vm353_vm3, %v1155_v61  ;;  %v1003_v1 = vadd.f32 %v1002_v62, %v6921_v27  ;;  %v1150_v3 = vadd.f32 %v1149_v0, %v6901_v63 }
 0x11d   :  { %v5283_v4 = vpop.f32.mrf.mxu0  ;;  %v5303_v7 = vpop.f32.mrf.mxu1 }
 0x11e   :  { %1034 = vst.msk [vmem:[#allocation2 + $0x260] sm:$0xff] %vm353_vm3, %v1003_v1  ;;  %1197 = vst.msk [vmem:[#allocation2 + $0x2c0] sm:$0xff] %vm353_vm3, %v1150_v3  ;;  %v1018_v2 = vadd.f32 %v5283_v4, %v6861_v25  ;;  %v1165_v8 = vadd.f32 %v5303_v7, %v6863_v26 }
 0x11f   :  { %v1012_v5 = vpop.f32.mrf.mxu0  ;;  %v1159_v9 = vpop.f32.mrf.mxu1 }
 0x120   :  { %1037 = vst.msk [vmem:[#allocation2 + $0x278] sm:$0xff] %vm353_vm3, %v1018_v2  ;;  %1200 = vst.msk [vmem:[#allocation2 + $0x2d8] sm:$0xff] %vm353_vm3, %v1165_v8  ;;  %v1013_v10 = vadd.f32 %v1012_v5, %v6867_v31  ;;  %v1160_v11 = vadd.f32 %v1159_v9, %v6871_v35 }
 0x121   :  { %v5306_v12 = vpop.f32.mrf.mxu1  ;;  %v5314_v13 = vpop.f32.mrf.mxu0 }
 0x122   :  { %1036 = vst.msk [vmem:[#allocation2 + $0x270] sm:$0xff] %vm353_vm3, %v1013_v10  ;;  %1199 = vst.msk [vmem:[#allocation2 + $0x2d0] sm:$0xff] %vm353_vm3, %v1160_v11  ;;  %v1175_v14 = vadd.f32 %v5306_v12, %v6907_v6  ;;  %v1282_v15 = vadd.f32 %v5314_v13, %v6855_v22 }
 0x123   :  { %v1169_v16 = vpop.f32.mrf.mxu1  ;;  %v1276_v28 = vpop.f32.mrf.mxu0 }
 0x124   :  { %1202 = vst.msk [vmem:[#allocation2 + $0x2e8] sm:$0xff] %vm353_vm3, %v1175_v14  ;;  %1357 = vst.msk [vmem:[#allocation2 + $0x308] sm:$0xff] %vm353_vm3, %v1282_v15  ;;  %v1170_v29 = vadd.f32 %v1169_v16, %v6921_v27  ;;  %v1277_v30 = vadd.f32 %v1276_v28, %v6859_v24 }
 0x125   :  { %v5309_v32 = vpop.f32.mrf.mxu1  ;;  %v5317_v33 = vpop.f32.mrf.mxu0 }
 0x126   :  { %1201 = vst.msk [vmem:[#allocation2 + $0x2e0] sm:$0xff] %vm353_vm3, %v1170_v29  ;;  %1356 = vst.msk [vmem:[#allocation2 + $0x300] sm:$0xff] %vm353_vm3, %v1277_v30  ;;  %v1185_v34 = vadd.f32 %v5309_v32, %v6861_v25  ;;  %v1292_v36 = vadd.f32 %v5317_v33, %v6847_v18  ;;  %v1540_v32 = vld [vmem:[#allocation2 + $0x8] sm:$0xff] }
 0x127   :  { %v1179_v37 = vpop.f32.mrf.mxu1  ;;  %v1286_v38 = vpop.f32.mrf.mxu0 }
 0x128   :  { %1204 = vst.msk [vmem:[#allocation2 + $0x2f8] sm:$0xff] %vm353_vm3, %v1185_v34  ;;  %1359 = vst.msk [vmem:[#allocation2 + $0x318] sm:$0xff] %vm353_vm3, %v1292_v36  ;;  %v1180_v39 = vadd.f32 %v1179_v37, %v6867_v31  ;;  %v1287_v41 = vadd.f32 %v1286_v38, %v6845_v17  ;;  %v1539_v37 = vld [vmem:[#allocation2] sm:$0xff] }
 0x129   :  { %v5320_v42 = vpop.f32.mrf.mxu0  ;;  %v5340_v43 = vpop.f32.mrf.mxu1 }
 0x12a   :  { %1203 = vst.msk [vmem:[#allocation2 + $0x2f0] sm:$0xff] %vm353_vm3, %v1180_v39  ;;  %1358 = vst.msk [vmem:[#allocation2 + $0x310] sm:$0xff] %vm353_vm3, %v1287_v41  ;;  %v1302_v44 = vadd.f32 %v5320_v42, %v6853_v21  ;;  %v1449_v45 = vadd.f32 %v5340_v43, %v6855_v22  ;;  %v1542_v43 = vld [vmem:[#allocation2 + $0x18] sm:$0xff] }
 0x12b   :  { %v1296_v46 = vpop.f32.mrf.mxu0  ;;  %v1443_v47 = vpop.f32.mrf.mxu1 }
 0x12c   :  { %1361 = vst.msk [vmem:[#allocation2 + $0x328] sm:$0xff] %vm353_vm3, %v1302_v44  ;;  %1524 = vst.msk [vmem:[#allocation2 + $0x388] sm:$0xff] %vm353_vm3, %v1449_v45  ;;  %v1297_v48 = vadd.f32 %v1296_v46, %v6857_v23  ;;  %v1444_v49 = vadd.f32 %v1443_v47, %v6859_v24 }
 0x12d   :  { %v5323_v51 = vpop.f32.mrf.mxu0  ;;  %v5343_v52 = vpop.f32.mrf.mxu1 }
 0x12e   :  { %1360 = vst.msk [vmem:[#allocation2 + $0x320] sm:$0xff] %vm353_vm3, %v1297_v48  ;;  %1523 = vst.msk [vmem:[#allocation2 + $0x380] sm:$0xff] %vm353_vm3, %v1444_v49  ;;  %v1312_v53 = vadd.f32 %v5323_v51, %v6851_v20  ;;  %v1459_v22 = vadd.f32 %v5343_v52, %v6847_v18  ;;  %v1541_v48 = vld [vmem:[#allocation2 + $0x10] sm:$0xff] }
 0x12f   :  { %v1306_v54 = vpop.f32.mrf.mxu0  ;;  %v1453_v55 = vpop.f32.mrf.mxu1 }
 0x130   :  { %1363 = vst.msk [vmem:[#allocation2 + $0x338] sm:$0xff] %vm353_vm3, %v1312_v53  ;;  %1526 = vst.msk [vmem:[#allocation2 + $0x398] sm:$0xff] %vm353_vm3, %v1459_v22  ;;  %v1307_v56 = vadd.f32 %v1306_v54, %v6849_v19  ;;  %v1454_v24 = vadd.f32 %v1453_v55, %v6845_v17  ;;  %v1544_v53 = vld [vmem:[#allocation2 + $0x28] sm:$0xff] }
 0x131   :  { %v5326_v57 = vpop.f32.mrf.mxu0  ;;  %v5346_v58 = vpop.f32.mrf.mxu1 }
 0x132   :  { %1362 = vst.msk [vmem:[#allocation2 + $0x330] sm:$0xff] %vm353_vm3, %v1307_v56  ;;  %1525 = vst.msk [vmem:[#allocation2 + $0x390] sm:$0xff] %vm353_vm3, %v1454_v24  ;;  %v1322_v59 = vadd.f32 %v5326_v57, %v6887_v50  ;;  %v1469_v18 = vadd.f32 %v5346_v58, %v6853_v21  ;;  %v1543_v56 = vld [vmem:[#allocation2 + $0x20] sm:$0xff]  ;;  %v1546_v58 = vld [vmem:[#allocation2 + $0x38] sm:$0xff] }
 0x133   :  { %v1316_v60 = vpop.f32.mrf.mxu0  ;;  %v1463_v61 = vpop.f32.mrf.mxu1 }
 0x134   :  { %1365 = vst.msk [vmem:[#allocation2 + $0x348] sm:$0xff] %vm353_vm3, %v1322_v59  ;;  %1528 = vst.msk [vmem:[#allocation2 + $0x3a8] sm:$0xff] %vm353_vm3, %v1469_v18  ;;  %v1317_v62 = vadd.f32 %v1316_v60, %v6901_v63  ;;  %v1464_v17 = vadd.f32 %v1463_v61, %v6857_v23  ;;  %v1545_v61 = vld [vmem:[#allocation2 + $0x30] sm:$0xff] }
 0x135   :  { %v5329_v0 = vpop.f32.mrf.mxu0  ;;  %v5349_v1 = vpop.f32.mrf.mxu1 }
 0x136   :  { %1364 = vst.msk [vmem:[#allocation2 + $0x340] sm:$0xff] %vm353_vm3, %v1317_v62  ;;  %1527 = vst.msk [vmem:[#allocation2 + $0x3a0] sm:$0xff] %vm353_vm3, %v1464_v17  ;;  %v1332_v3 = vadd.f32 %v5329_v0, %v6863_v26  ;;  %v1479_v21 = vadd.f32 %v5349_v1, %v6851_v20  ;;  %v1548_v0 = vld [vmem:[#allocation2 + $0x48] sm:$0xff] }
 0x137   :  { %v1326_v4 = vpop.f32.mrf.mxu0  ;;  %v1473_v7 = vpop.f32.mrf.mxu1 }
 0x138   :  { %1367 = vst.msk [vmem:[#allocation2 + $0x358] sm:$0xff] %vm353_vm3, %v1332_v3  ;;  %1530 = vst.msk [vmem:[#allocation2 + $0x3b8] sm:$0xff] %vm353_vm3, %v1479_v21  ;;  %v1327_v2 = vadd.f32 %v1326_v4, %v6871_v35  ;;  %v1474_v23 = vadd.f32 %v1473_v7, %v6849_v19  ;;  %v1547_v7 = vld [vmem:[#allocation2 + $0x40] sm:$0xff] }
 0x139   :  { %v5332_v8 = vpop.f32.mrf.mxu0  ;;  %v5352_v5 = vpop.f32.mrf.mxu1 }
 0x13a   :  { %1366 = vst.msk [vmem:[#allocation2 + $0x350] sm:$0xff] %vm353_vm3, %v1327_v2  ;;  %1529 = vst.msk [vmem:[#allocation2 + $0x3b0] sm:$0xff] %vm353_vm3, %v1474_v23  ;;  %v1342_v9 = vadd.f32 %v5332_v8, %v6907_v6  ;;  %v1489_v20 = vadd.f32 %v5352_v5, %v6887_v50 }
 0x13b   :  { %v1336_v10 = vpop.f32.mrf.mxu0  ;;  %v1483_v11 = vpop.f32.mrf.mxu1 }
 0x13c   :  { %1369 = vst.msk [vmem:[#allocation2 + $0x368] sm:$0xff] %vm353_vm3, %v1342_v9  ;;  %1532 = vst.msk [vmem:[#allocation2 + $0x3c8] sm:$0xff] %vm353_vm3, %v1489_v20  ;;  %v1337_v12 = vadd.f32 %v1336_v10, %v6921_v27  ;;  %v1484_v19 = vadd.f32 %v1483_v11, %v6901_v63  ;;  %v1550_v20 = vld [vmem:[#allocation2 + $0x58] sm:$0xff] }
 0x13d   :  { %v5335_v13 = vpop.f32.mrf.mxu0  ;;  %v5355_v14 = vpop.f32.mrf.mxu1 }
 0x13e   :  { %1368 = vst.msk [vmem:[#allocation2 + $0x360] sm:$0xff] %vm353_vm3, %v1337_v12  ;;  %1531 = vst.msk [vmem:[#allocation2 + $0x3c0] sm:$0xff] %vm353_vm3, %v1484_v19  ;;  %v1352_v15 = vadd.f32 %v5335_v13, %v6861_v25  ;;  %v1499_v50 = vadd.f32 %v5355_v14, %v6863_v26  ;;  %v1549_v14 = vld [vmem:[#allocation2 + $0x50] sm:$0xff] }
 0x13f   :  { %v1346_v16 = vpop.f32.mrf.mxu0  ;;  %v1493_v28 = vpop.f32.mrf.mxu1 }
 0x140   :  { %1371 = vst.msk [vmem:[#allocation2 + $0x378] sm:$0xff] %vm353_vm3, %v1352_v15  ;;  %1534 = vst.msk [vmem:[#allocation2 + $0x3d8] sm:$0xff] %vm353_vm3, %v1499_v50  ;;  %v1347_v29 = vadd.f32 %v1346_v16, %v6867_v31  ;;  %v1494_v63 = vadd.f32 %v1493_v28, %v6871_v35 }
 0x141   :  { %v5358_v30 = vpop.f32.mrf.mxu1  ;;  %v5366_v33 = vpop.f32.mrf.mxu0 }
 0x142   :  { %1370 = vst.msk [vmem:[#allocation2 + $0x370] sm:$0xff] %vm353_vm3, %v1347_v29  ;;  %1533 = vst.msk [vmem:[#allocation2 + $0x3d0] sm:$0xff] %vm353_vm3, %v1494_v63  ;;  %v1509_v34 = vadd.f32 %v5358_v30, %v6907_v6  ;;  %v1750_v26 = vadd.f32 %v5366_v33, %v1540_v32  ;;  %v1552_v33 = vld [vmem:[#allocation2 + $0x68] sm:$0xff] }
 0x143   :  { %v1503_v36 = vpop.f32.mrf.mxu1  ;;  %v1670_v38 = vpop.f32.mrf.mxu0 }
 0x144   :  { %1536 = vst.msk [vmem:[#allocation2 + $0x3e8] sm:$0xff] %vm353_vm3, %v1509_v34  ;;  %v4642_v39 = vmul.f32 -1.442695, %v1750_v26  ;;  %v1504_v41 = vadd.f32 %v1503_v36, %v6921_v27  ;;  %v1749_v42 = vadd.f32 %v1670_v38, %v1539_v37  ;;  %v1551_v38 = vld [vmem:[#allocation2 + $0x60] sm:$0xff] }
 0x145   :  { %v5361_v35 = vpop.f32.mrf.mxu1  ;;  %v5369_v44 = vpop.f32.mrf.mxu0 }
 0x146   :  { %5632 = vpow2.f32 %v4642_v39  ;;  %1535 = vst.msk [vmem:[#allocation2 + $0x3e0] sm:$0xff] %vm353_vm3, %v1504_v41  ;;  %v4641_v45 = vmul.f32 -1.442695, %v1749_v42  ;;  %v1519_v46 = vadd.f32 %v5361_v35, %v6861_v25  ;;  %v1752_v6 = vadd.f32 %v5369_v44, %v1542_v43  ;;  %v1554_v43 = vld [vmem:[#allocation2 + $0x78] sm:$0xff] }
 0x147   :  { %v1513_v47 = vpop.f32.mrf.mxu1  ;;  %v1680_v49 = vpop.f32.mrf.mxu0 }
 0x148   :  { %5634 = vpow2.f32 %v4641_v45  ;;  %1538 = vst.msk [vmem:[#allocation2 + $0x3f8] sm:$0xff] %vm353_vm3, %v1519_v46  ;;  %v4644_v51 = vmul.f32 -1.442695, %v1752_v6  ;;  %v1514_v27 = vadd.f32 %v1513_v47, %v6867_v31  ;;  %v1751_v52 = vadd.f32 %v1680_v49, %v1541_v48  ;;  %v1553_v47 = vld [vmem:[#allocation2 + $0x70] sm:$0xff] }
 0x149   :  { %v5372_v22 = vpop.f32.mrf.mxu0 }
 0x14a   :  { %5636 = vpow2.f32 %v4644_v51  ;;  %1537 = vst.msk [vmem:[#allocation2 + $0x3f0] sm:$0xff] %vm353_vm3, %v1514_v27  ;;  %v4643_v54 = vmul.f32 -1.442695, %v1751_v52  ;;  %v1754_v55 = vadd.f32 %v5372_v22, %v1544_v53 }
 0x14b   :  { %v1690_v25 = vpop.f32.mrf.mxu0 }
 0x14c   :  { %5638 = vpow2.f32 %v4643_v54  ;;  %v4646_v24 = vmul.f32 -1.442695, %v1754_v55  ;;  %v1753_v57 = vadd.f32 %v1690_v25, %v1543_v56 }
 0x14d   :  { %v5375_v59 = vpop.f32.mrf.mxu0 }
 0x14e   :  { %5640 = vpow2.f32 %v4646_v24  ;;  %v4645_v18 = vmul.f32 -1.442695, %v1753_v57  ;;  %v1756_v60 = vadd.f32 %v5375_v59, %v1546_v58 }
 0x14f   :  { %v1700_v31 = vpop.f32.mrf.mxu0 }
 0x150   :  { %5642 = vpow2.f32 %v4645_v18  ;;  %v4648_v62 = vmul.f32 -1.442695, %v1756_v60  ;;  %v1755_v17 = vadd.f32 %v1700_v31, %v1545_v61 }
 0x151   :  { %v5378_v1 = vpop.f32.mrf.mxu0 }
 0x152   :  { %5644 = vpow2.f32 %v4648_v62  ;;  %v4647_v3 = vmul.f32 -1.442695, %v1755_v17  ;;  %v1758_v21 = vadd.f32 %v5378_v1, %v1548_v0 }
 0x153   :  { %v5633_v4 = vpop.eup %5632  ;;  %v1710_v2 = vpop.f32.mrf.mxu0 }
 0x154   :  { %v1802_v23 = vadd.f32 1.0, %v5633_v4  ;;  %5646 = vpow2.f32 %v4647_v3  ;;  %v4650_v8 = vmul.f32 -1.442695, %v1758_v21  ;;  %v1757_v5 = vadd.f32 %v1710_v2, %v1547_v7 }
 0x155   :  { %v5635_v9 = vpop.eup %5634  ;;  %v5381_v10 = vpop.f32.mrf.mxu0 }
 0x156   :  { %5648 = vrcp.f32 %v1802_v23  ;;  %v1801_v11 = vadd.f32 1.0, %v5635_v9  ;;  %v4649_v12 = vmul.f32 -1.442695, %v1757_v5  ;;  %v1760_v19 = vadd.f32 %v5381_v10, %v1550_v20 }
 0x157   :  { %v5637_v13 = vpop.eup %5636  ;;  %5650 = vpow2.f32 %v4650_v8  ;;  %v1720_v15 = vpop.f32.mrf.mxu0 }
 0x158   :  { %5652 = vrcp.f32 %v1801_v11  ;;  %v1804_v50 = vadd.f32 1.0, %v5637_v13  ;;  %v4652_v16 = vmul.f32 -1.442695, %v1760_v19  ;;  %v1759_v28 = vadd.f32 %v1720_v15, %v1549_v14 }
 0x159   :  { %v5639_v29 = vpop.eup %5638  ;;  %5654 = vpow2.f32 %v4649_v12  ;;  %v5384_v63 = vpop.f32.mrf.mxu0 }
 0x15a   :  { %5656 = vrcp.f32 %v1804_v50  ;;  %v1803_v30 = vadd.f32 1.0, %v5639_v29  ;;  %v4651_v32 = vmul.f32 -1.442695, %v1759_v28  ;;  %v1762_v26 = vadd.f32 %v5384_v63, %v1552_v33  ;;  %v7152_v33 = vld [vmem:[%s8057_s2 + $0x8] sm:$0xff] }
 0x15b   :  { %v5641_v34 = vpop.eup %5640  ;;  %5658 = vpow2.f32 %v4652_v16  ;;  %v1730_v36 = vpop.f32.mrf.mxu0 }
 0x15c   :  { %5660 = vrcp.f32 %v1803_v30  ;;  %v1806_v37 = vadd.f32 1.0, %v5641_v34  ;;  %v1761_v41 = vadd.f32 %v1730_v36, %v1551_v38  ;;  %v7159_v34 = vld [vmem:[%s8057_s2 + $0x10] sm:$0xff]  ;;  %v7173_v36 = vld [vmem:[%s8057_s2 + $0x20] sm:$0xff] }
 0x15d   :  { %v5643_v39 = vpop.eup %5642  ;;  %5662 = vpow2.f32 %v4651_v32  ;;  %v5387_v42 = vpop.f32.mrf.mxu0  ;;  %v7187_v38 = vld [vmem:[%s8057_s2 + $0x30] sm:$0xff] }
 0x15e   :  { %5664 = vrcp.f32 %v1806_v37  ;;  %v1805_v35 = vadd.f32 1.0, %v5643_v39  ;;  %v1764_v45 = vadd.f32 %v5387_v42, %v1554_v43  ;;  %v7180_v37 = vld [vmem:[%s8057_s2 + $0x28] sm:$0xff]  ;;  %v7194_v39 = vld [vmem:[%s8057_s2 + $0x38] sm:$0xff] }
 0x15f   :  { %v5645_v44 = vpop.eup %5644  ;;  %5666 = vtanh.f32 %v1762_v26  ;;  %v1740_v46 = vpop.f32.mrf.mxu0  ;;  %v7166_v26 = vld [vmem:[%s8057_s2 + $0x18] sm:$0xff]  ;;  %v7208_v42 = vld [vmem:[%s8057_s2 + $0x48] sm:$0xff] }
 0x160   :  { %5668 = vrcp.f32 %v1805_v35  ;;  %v1808_v6 = vadd.f32 1.0, %v5645_v44  ;;  %v1763_v49 = vadd.f32 %v1740_v46, %v1553_v47  ;;  %v7215_v35 = vld [vmem:[%s8057_s2 + $0x50] sm:$0xff]  ;;  %v7222_v43 = vld [vmem:[%s8057_s2 + $0x58] sm:$0xff]  ;;  %v7229_v44 = vld [vmem:[%s8057_s2 + $0x60] sm:$0xff] }
 0x161   :  { %v5647_v48 = vpop.eup %5646  ;;  %5670 = vtanh.f32 %v1761_v41  ;;  %v7201_v41 = vld [vmem:[%s8057_s2 + $0x40] sm:$0xff]  ;;  %v7243_v46 = vld [vmem:[%s8057_s2 + $0x70] sm:$0xff] }
 0x162   :  { %5672 = vrcp.f32 %v1808_v6  ;;  %v1807_v51 = vadd.f32 1.0, %v5647_v48  ;;  %v7250_v6 = vld [vmem:[%s8057_s2 + $0x78] sm:$0xff]  ;;  %v7257_v47 = vld [vmem:[%s8057_s2] sm:$0xff]  ;;  %v1866_v48 = vld [vmem:[#allocation2 + $0x88] sm:$0xff] }
 0x163   :  { %v5649_v27 = vpop.eup %5648  ;;  %5674 = vtanh.f32 %v1764_v45  ;;  %v7236_v45 = vld [vmem:[%s8057_s2 + $0x68] sm:$0xff] }
 0x164   :  { %v5651_v52 = vpop.eup %5650  ;;  %5676 = vrcp.f32 %v1807_v51 }
 0x165   :  { %v5653_v53 = vpop.eup %5652  ;;  %5678 = vtanh.f32 %v1763_v49  ;;  %v1810_v59 = vadd.f32 1.0, %v5651_v52 }
 0x166   :  { %v5655_v22 = vpop.eup %5654 }
 0x167   :  { %v5657_v54 = vpop.eup %5656  ;;  %v1809_v62 = vadd.f32 1.0, %v5655_v22  ;;  %5680 = vrcp.f32 %v1810_v59 }
 0x168   :  { %v5659_v55 = vpop.eup %5658 }
 0x169   :  { %v5661_v56 = vpop.eup %5660  ;;  %v1812_v4 = vadd.f32 1.0, %v5659_v55 }
 0x16a   :  { %v5663_v25 = vpop.eup %5662 }
 0x16b   :  { %v5665_v24 = vpop.eup %5664  ;;  %v1811_v9 = vadd.f32 1.0, %v5663_v25 }
 0x16c   :  { %v5667_v57 = vpop.eup %5666  ;;  %v1842_v58 = vmul.f32 0.0, %v5665_v24  ;;  %v1867_v24 = vld [vmem:[#allocation2 + $0x90] sm:$0xff] }
 0x16d   :  { %v5669_v18 = vpop.eup %5668  ;;  %v1846_v60 = vmul.f32 %v5667_v57, %v5649_v27  ;;  %v1865_v27 = vld [vmem:[#allocation2 + $0x80] sm:$0xff] }
 0x16e   :  { %v5671_v61 = vpop.eup %5670  ;;  %v1841_v31 = vmul.f32 0.0, %v5669_v18  ;;  %v1870_v18 = vld [vmem:[#allocation2 + $0xa8] sm:$0xff] }
 0x16f   :  { %v5673_v17 = vpop.eup %5672  ;;  %v7133_v0 = vadd.f32 %v1846_v60, %v1842_v58  ;;  %v1845_v1 = vmul.f32 %v5671_v61, %v5653_v53 }
 0x170   :  { %v5675_v3 = vpop.eup %5674  ;;  %v1844_v21 = vmul.f32 0.0, %v5673_v17 }
 0x171   :  { %v5677_v7 = vpop.eup %5676  ;;  %v7135_v2 = vadd.f32 %v1845_v1, %v1841_v31  ;;  %v1848_v23 = vmul.f32 %v5675_v3, %v5657_v54  ;;  %5682 = vtanh.f32 %v7133_v0  ;;  %v1868_v54 = vld [vmem:[#allocation2 + $0x98] sm:$0xff] }
 0x172   :  { %v5679_v8 = vpop.eup %5678  ;;  %v1843_v5 = vmul.f32 0.0, %v5677_v7  ;;  %5684 = vrcp.f32 %v1809_v62  ;;  %v1869_v62 = vld [vmem:[#allocation2 + $0xa0] sm:$0xff] }
 0x173   :  { %v7138_v20 = vadd.f32 %v1848_v23, %v1844_v21  ;;  %v1847_v10 = vmul.f32 %v5679_v8, %v5661_v56  ;;  %5686 = vtanh.f32 %v7135_v2  ;;  %v1872_v21 = vld [vmem:[#allocation2 + $0xb8] sm:$0xff]  ;;  %v1871_v8 = vld [vmem:[#allocation2 + $0xb0] sm:$0xff] }
 0x174   :  { %5688 = vrcp.f32 %v1812_v4  ;;  %v5681_v12 = vpop.eup %5680 }
 0x175   :  { %v7141_v11 = vadd.f32 %v1847_v10, %v1843_v5  ;;  %5690 = vtanh.f32 %v7138_v20 }
 0x176   :  { %5692 = vrcp.f32 %v1811_v9 }
 0x177   :  { %5694 = vtanh.f32 %v7141_v11 }
 0x17e   :  { %v5683_v19 = vpop.eup %5682 }
 0x17f   :  { %v5685_v13 = vpop.eup %5684  ;;  %v1858_v14 = vmul.f32 %v5683_v19, %v5681_v12  ;;  %v1874_v12 = vld [vmem:[#allocation2 + $0xc8] sm:$0xff] }
 0x180   :  { %v5687_v15 = vpop.eup %5686 }
 0x181   :  { %v5689_v50 = vpop.eup %5688  ;;  %1862 = vst.msk [vmem:[#allocation3 + $0x8] sm:$0xff] %vm353_vm3, %v1858_v14  ;;  %v1857_v16 = vmul.f32 %v5687_v15, %v5685_v13 }
 0x182   :  { %v5691_v28 = vpop.eup %5690 }
 0x183   :  { %v5693_v29 = vpop.eup %5692  ;;  %v1860_v63 = vmul.f32 %v5691_v28, %v5689_v50  ;;  %1861 = vst.msk [vmem:[#allocation3] sm:$0xff] %vm353_vm3, %v1857_v16  ;;  %v1873_v50 = vld [vmem:[#allocation2 + $0xc0] sm:$0xff] }
 0x184   :  { %v5695_v30 = vpop.eup %5694 }
 0x185   :  { %1864 = vst.msk [vmem:[#allocation3 + $0x18] sm:$0xff] %vm353_vm3, %v1860_v63  ;;  %5388 = vmatprep.subr.mxu1 %v1860_v63  ;;  %v1859_v32 = vmul.f32 %v5695_v30, %v5693_v29 }
 0x186   :  { %5389 = vmatpush3.msra.mxu1 %v1860_v63 }
 0x187   :  { %1863 = vst.msk [vmem:[#allocation3 + $0x10] sm:$0xff] %vm353_vm3, %v1859_v32  ;;  %5390 = vmatprep.subr.mxu1 %v1859_v32 }
 0x188   :  { %5391 = vmatpush3.msra.mxu1 %v1859_v32  ;;  %v1876_v32 = vld [vmem:[#allocation2 + $0xd8] sm:$0xff] }
 0x189   :  { %5392 = vmatprep.subr.mxu1 %v1858_v14 }
 0x18a   :  { %5393 = vmatpush3.msra.mxu1 %v1858_v14 }
 0x18b   :  { %5394 = vmatprep.subr.mxu1 %v1857_v16 }
 0x18c   :  { %5395 = vmatpush3.msra.mxu1 %v1857_v16 }
 0x18d   :  { %5397 = vmatmul.mubr.msk.f32.vlgmr.msra.gmra.mxu1 %vm1555_vm2, %v7152_v33 }
 0x18e   :  { %5399 = vmatprep.mubr.msk.f32.mxu1 %vm1555_vm2, %v7159_v34 }
 0x191   :  { %5400 = vmatmul.mubr.msk.f32.gmra.mxu1 %vm1555_vm2, %v7166_v26 }
 0x192   :  { %5402 = vmatprep.mubr.msk.f32.mxu1 %vm1555_vm2, %v7173_v36 }
 0x195   :  { %5403 = vmatmul.mubr.msk.f32.gmra.mxu1 %vm1555_vm2, %v7180_v37 }
 0x196   :  { %5405 = vmatprep.mubr.msk.f32.mxu1 %vm1555_vm2, %v7187_v38 }
 0x199   :  { %5406 = vmatmul.mubr.msk.f32.gmra.mxu1 %vm1555_vm2, %v7194_v39 }
 0x19a   :  { %5408 = vmatprep.mubr.msk.f32.mxu1 %vm1555_vm2, %v7201_v41 }
 0x19d   :  { %5409 = vmatmul.mubr.msk.f32.gmra.mxu1 %vm1555_vm2, %v7208_v42 }
 0x19e   :  { %5411 = vmatprep.mubr.msk.f32.mxu1 %vm1555_vm2, %v7215_v35 }
 0x1a1   :  { %5412 = vmatmul.mubr.msk.f32.gmra.mxu1 %vm1555_vm2, %v7222_v43 }
 0x1a2   :  { %5414 = vmatprep.mubr.msk.f32.mxu1 %vm1555_vm2, %v7229_v44 }
 0x1a5   :  { %5415 = vmatmul.mubr.msk.f32.gmra.mxu1 %vm1555_vm2, %v7236_v45 }
 0x1a6   :  { %5417 = vmatprep.mubr.msk.f32.mxu1 %vm1555_vm2, %v7243_v46 }
 0x1a9   :  { %5418 = vmatmul.mubr.msk.f32.gmra.mxu1 %vm1555_vm2, %v7250_v6 }
 0x1aa   :  { %5460 = vmatprep.mubr.msk.f32.mxu1 %vm1555_vm2, %v7257_v47 }
 0x24d   :  { %v5398_v49 = vpop.f32.mrf.mxu1 }
 0x24e   :  { %v2027_v51 = vadd.f32 %v5398_v49, %v1866_v48 }
 0x24f   :  { %v1947_v52 = vpop.f32.mrf.mxu1 }
 0x250   :  { %v4670_v53 = vmul.f32 -1.442695, %v2027_v51  ;;  %v2026_v22 = vadd.f32 %v1947_v52, %v1865_v27 }
 0x251   :  { %v5401_v55 = vpop.f32.mrf.mxu1 }
 0x252   :  { %5696 = vpow2.f32 %v4670_v53  ;;  %v4669_v56 = vmul.f32 -1.442695, %v2026_v22  ;;  %v2029_v25 = vadd.f32 %v5401_v55, %v1868_v54  ;;  %v1875_v53 = vld [vmem:[#allocation2 + $0xd0] sm:$0xff] }
 0x253   :  { %v1957_v57 = vpop.f32.mrf.mxu1 }
 0x254   :  { %5698 = vpow2.f32 %v4669_v56  ;;  %v4672_v58 = vmul.f32 -1.442695, %v2029_v25  ;;  %v2028_v59 = vadd.f32 %v1957_v57, %v1867_v24 }
 0x255   :  { %v5404_v60 = vpop.f32.mrf.mxu1 }
 0x256   :  { %5700 = vpow2.f32 %v4672_v58  ;;  %v4671_v61 = vmul.f32 -1.442695, %v2028_v59  ;;  %v2031_v31 = vadd.f32 %v5404_v60, %v1870_v18  ;;  %v1878_v59 = vld [vmem:[#allocation2 + $0xe8] sm:$0xff] }
 0x257   :  { %v1967_v17 = vpop.f32.mrf.mxu1 }
 0x258   :  { %5702 = vpow2.f32 %v4671_v61  ;;  %v4674_v1 = vmul.f32 -1.442695, %v2031_v31  ;;  %v2030_v3 = vadd.f32 %v1967_v17, %v1869_v62  ;;  %v1877_v62 = vld [vmem:[#allocation2 + $0xe0] sm:$0xff] }
 0x259   :  { %v5407_v4 = vpop.f32.mrf.mxu1 }
 0x25a   :  { %5704 = vpow2.f32 %v4674_v1  ;;  %v4673_v7 = vmul.f32 -1.442695, %v2030_v3  ;;  %v2033_v23 = vadd.f32 %v5407_v4, %v1872_v21  ;;  %v1880_v4 = vld [vmem:[#allocation2 + $0xf8] sm:$0xff] }
 0x25b   :  { %v1977_v5 = vpop.f32.mrf.mxu1 }
 0x25c   :  { %5706 = vpow2.f32 %v4673_v7  ;;  %v4676_v9 = vmul.f32 -1.442695, %v2033_v23  ;;  %v2032_v10 = vadd.f32 %v1977_v5, %v1871_v8 }
 0x25d   :  { %v5410_v19 = vpop.f32.mrf.mxu1 }
 0x25e   :  { %5708 = vpow2.f32 %v4676_v9  ;;  %v4675_v13 = vmul.f32 -1.442695, %v2032_v10  ;;  %v2035_v14 = vadd.f32 %v5410_v19, %v1874_v12  ;;  %v1879_v9 = vld [vmem:[#allocation2 + $0xf0] sm:$0xff] }
 0x25f   :  { %v5697_v15 = vpop.eup %5696  ;;  %v1987_v16 = vpop.f32.mrf.mxu1 }
 0x260   :  { %v2079_v28 = vadd.f32 1.0, %v5697_v15  ;;  %5710 = vpow2.f32 %v4675_v13  ;;  %v4678_v29 = vmul.f32 -1.442695, %v2035_v14  ;;  %v2034_v63 = vadd.f32 %v1987_v16, %v1873_v50 }
 0x261   :  { %v5699_v30 = vpop.eup %5698  ;;  %v5413_v48 = vpop.f32.mrf.mxu1 }
 0x262   :  { %5712 = vrcp.f32 %v2079_v28  ;;  %v2078_v49 = vadd.f32 1.0, %v5699_v30  ;;  %v4677_v51 = vmul.f32 -1.442695, %v2034_v63  ;;  %v2037_v27 = vadd.f32 %v5413_v48, %v1876_v32 }
 0x263   :  { %v5701_v52 = vpop.eup %5700  ;;  %5714 = vpow2.f32 %v4678_v29  ;;  %v1997_v22 = vpop.f32.mrf.mxu1 }
 0x264   :  { %5716 = vrcp.f32 %v2078_v49  ;;  %v2081_v54 = vadd.f32 1.0, %v5701_v52  ;;  %v4680_v55 = vmul.f32 -1.442695, %v2037_v27  ;;  %v2036_v56 = vadd.f32 %v1997_v22, %v1875_v53 }
 0x265   :  { %v5703_v25 = vpop.eup %5702  ;;  %5718 = vpow2.f32 %v4677_v51  ;;  %v5416_v24 = vpop.f32.mrf.mxu1 }
 0x266   :  { %5720 = vrcp.f32 %v2081_v54  ;;  %v2080_v57 = vadd.f32 1.0, %v5703_v25  ;;  %v4679_v58 = vmul.f32 -1.442695, %v2036_v56  ;;  %v2039_v60 = vadd.f32 %v5416_v24, %v1878_v59 }
 0x267   :  { %v5705_v18 = vpop.eup %5704  ;;  %5722 = vpow2.f32 %v4680_v55  ;;  %v2007_v61 = vpop.f32.mrf.mxu1 }
 0x268   :  { %5724 = vrcp.f32 %v2080_v57  ;;  %v2083_v31 = vadd.f32 1.0, %v5705_v18  ;;  %v2038_v1 = vadd.f32 %v2007_v61, %v1877_v62 }
 0x269   :  { %v5707_v17 = vpop.eup %5706  ;;  %5726 = vpow2.f32 %v4679_v58  ;;  %v5419_v3 = vpop.f32.mrf.mxu1 }
 0x26a   :  { %5728 = vrcp.f32 %v2083_v31  ;;  %v2082_v21 = vadd.f32 1.0, %v5707_v17  ;;  %v2041_v23 = vadd.f32 %v5419_v3, %v1880_v4 }
 0x26b   :  { %v5709_v7 = vpop.eup %5708  ;;  %5730 = vtanh.f32 %v2039_v60  ;;  %v2017_v8 = vpop.f32.mrf.mxu1 }
 0x26c   :  { %5732 = vrcp.f32 %v2082_v21  ;;  %v2085_v5 = vadd.f32 1.0, %v5709_v7  ;;  %v2040_v12 = vadd.f32 %v2017_v8, %v1879_v9 }
 0x26d   :  { %v5711_v10 = vpop.eup %5710  ;;  %5734 = vtanh.f32 %v2038_v1 }
 0x26e   :  { %5736 = vrcp.f32 %v2085_v5  ;;  %v2084_v19 = vadd.f32 1.0, %v5711_v10  ;;  %v2144_v10 = vld [vmem:[#allocation2 + $0x108] sm:$0xff] }
 0x26f   :  { %v5713_v13 = vpop.eup %5712  ;;  %5738 = vtanh.f32 %v2041_v23 }
 0x270   :  { %v5715_v14 = vpop.eup %5714  ;;  %5740 = vrcp.f32 %v2084_v19 }
 0x271   :  { %v5717_v15 = vpop.eup %5716  ;;  %5742 = vtanh.f32 %v2040_v12  ;;  %v2087_v48 = vadd.f32 1.0, %v5715_v14 }
 0x272   :  { %v5719_v50 = vpop.eup %5718 }
 0x273   :  { %v5721_v16 = vpop.eup %5720  ;;  %v2086_v53 = vadd.f32 1.0, %v5719_v50  ;;  %5744 = vrcp.f32 %v2087_v48 }
 0x274   :  { %v5723_v28 = vpop.eup %5722 }
 0x275   :  { %v5725_v29 = vpop.eup %5724  ;;  %v2089_v24 = vadd.f32 1.0, %v5723_v28 }
 0x276   :  { %v5727_v63 = vpop.eup %5726 }
 0x277   :  { %v5729_v30 = vpop.eup %5728  ;;  %v2088_v60 = vadd.f32 1.0, %v5727_v63 }
 0x278   :  { %v5731_v32 = vpop.eup %5730  ;;  %v2119_v49 = vmul.f32 %v5729_v30, %v7133_v0  ;;  %v2145_v30 = vld [vmem:[#allocation2 + $0x110] sm:$0xff] }
 0x279   :  { %v5733_v51 = vpop.eup %5732  ;;  %v2123_v27 = vmul.f32 %v5731_v32, %v5713_v13  ;;  %v2143_v13 = vld [vmem:[#allocation2 + $0x100] sm:$0xff] }
 0x27a   :  { %v5735_v52 = vpop.eup %5734  ;;  %v2118_v22 = vmul.f32 %v5733_v51, %v7135_v2  ;;  %v2148_v51 = vld [vmem:[#allocation2 + $0x128] sm:$0xff] }
 0x27b   :  { %v5737_v54 = vpop.eup %5736  ;;  %v7263_v55 = vadd.f32 %v2123_v27, %v2119_v49  ;;  %v2122_v56 = vmul.f32 %v5735_v52, %v5717_v15 }
 0x27c   :  { %v5739_v25 = vpop.eup %5738  ;;  %v2121_v57 = vmul.f32 %v5737_v54, %v7138_v20 }
 0x27d   :  { %v5741_v58 = vpop.eup %5740  ;;  %v7266_v59 = vadd.f32 %v2122_v56, %v2118_v22  ;;  %v2125_v18 = vmul.f32 %v5739_v25, %v5721_v16  ;;  %5746 = vtanh.f32 %v7263_v55  ;;  %v2146_v16 = vld [vmem:[#allocation2 + $0x118] sm:$0xff]  ;;  %v2147_v22 = vld [vmem:[#allocation2 + $0x120] sm:$0xff] }
 0x27e   :  { %v5743_v0 = vpop.eup %5742  ;;  %5748 = vrcp.f32 %v2086_v53  ;;  %v2120_v2 = vmul.f32 %v5741_v58, %v7141_v11 }
 0x27f   :  { %v7270_v61 = vadd.f32 %v2125_v18, %v2121_v57  ;;  %v2124_v31 = vmul.f32 %v5743_v0, %v5725_v29  ;;  %5750 = vtanh.f32 %v7266_v59  ;;  %v2149_v0 = vld [vmem:[#allocation2 + $0x130] sm:$0xff] }
 0x280   :  { %5752 = vrcp.f32 %v2089_v24  ;;  %v5745_v20 = vpop.eup %5744  ;;  %v2150_v24 = vld [vmem:[#allocation2 + $0x138] sm:$0xff] }
 0x281   :  { %v7273_v62 = vadd.f32 %v2124_v31, %v2120_v2  ;;  %5754 = vtanh.f32 %v7270_v61 }
 0x282   :  { %5756 = vrcp.f32 %v2088_v60 }
 0x283   :  { %5758 = vtanh.f32 %v7273_v62 }
 0x28a   :  { %v5747_v17 = vpop.eup %5746 }
 0x28b   :  { %v5749_v1 = vpop.eup %5748  ;;  %v2135_v3 = vmul.f32 %v5747_v17, %v5745_v20  ;;  %v2152_v20 = vld [vmem:[#allocation2 + $0x148] sm:$0xff] }
 0x28c   :  { %v5751_v21 = vpop.eup %5750 }
 0x28d   :  { %v5753_v4 = vpop.eup %5752  ;;  %2140 = vst.msk [vmem:[#allocation3 + $0x28] sm:$0xff] %vm353_vm3, %v2135_v3  ;;  %v2134_v11 = vmul.f32 %v5751_v21, %v5749_v1 }
 0x28e   :  { %v5755_v7 = vpop.eup %5754 }
 0x28f   :  { %v5757_v23 = vpop.eup %5756  ;;  %v2137_v8 = vmul.f32 %v5755_v7, %v5753_v4  ;;  %2139 = vst.msk [vmem:[#allocation3 + $0x20] sm:$0xff] %vm353_vm3, %v2134_v11  ;;  %v2151_v4 = vld [vmem:[#allocation2 + $0x140] sm:$0xff] }
 0x290   :  { %v5759_v5 = vpop.eup %5758 }
 0x291   :  { %2142 = vst.msk [vmem:[#allocation3 + $0x38] sm:$0xff] %vm353_vm3, %v2137_v8  ;;  %5420 = vmatprep.subr.mxu0 %v2137_v8  ;;  %v2136_v9 = vmul.f32 %v5759_v5, %v5757_v23 }
 0x292   :  { %5421 = vmatpush3.msra.mxu0 %v2137_v8 }
 0x293   :  { %2141 = vst.msk [vmem:[#allocation3 + $0x30] sm:$0xff] %vm353_vm3, %v2136_v9  ;;  %5422 = vmatprep.subr.mxu0 %v2136_v9 }
 0x294   :  { %5423 = vmatpush3.msra.mxu0 %v2136_v9  ;;  %v2154_v9 = vld [vmem:[#allocation2 + $0x158] sm:$0xff] }
 0x295   :  { %5424 = vmatprep.subr.mxu0 %v2135_v3 }
 0x296   :  { %5425 = vmatpush3.msra.mxu0 %v2135_v3 }
 0x297   :  { %5426 = vmatprep.subr.mxu0 %v2134_v11 }
 0x298   :  { %5427 = vmatpush3.msra.mxu0 %v2134_v11 }
 0x299   :  { %5429 = vmatmul.mubr.msk.f32.vlgmr.msra.gmra.mxu0 %vm1555_vm2, %v7152_v33 }
 0x29a   :  { %5431 = vmatprep.mubr.msk.f32.mxu0 %vm1555_vm2, %v7159_v34 }
 0x29d   :  { %5432 = vmatmul.mubr.msk.f32.gmra.mxu0 %vm1555_vm2, %v7166_v26 }
 0x29e   :  { %5434 = vmatprep.mubr.msk.f32.mxu0 %vm1555_vm2, %v7173_v36 }
 0x2a1   :  { %5435 = vmatmul.mubr.msk.f32.gmra.mxu0 %vm1555_vm2, %v7180_v37 }
 0x2a2   :  { %5437 = vmatprep.mubr.msk.f32.mxu0 %vm1555_vm2, %v7187_v38 }
 0x2a5   :  { %5438 = vmatmul.mubr.msk.f32.gmra.mxu0 %vm1555_vm2, %v7194_v39 }
 0x2a6   :  { %5440 = vmatprep.mubr.msk.f32.mxu0 %vm1555_vm2, %v7201_v41 }
 0x2a9   :  { %5441 = vmatmul.mubr.msk.f32.gmra.mxu0 %vm1555_vm2, %v7208_v42 }
 0x2aa   :  { %5443 = vmatprep.mubr.msk.f32.mxu0 %vm1555_vm2, %v7215_v35 }
 0x2ad   :  { %5444 = vmatmul.mubr.msk.f32.gmra.mxu0 %vm1555_vm2, %v7222_v43 }
 0x2ae   :  { %5446 = vmatprep.mubr.msk.f32.mxu0 %vm1555_vm2, %v7229_v44 }
 0x2b1   :  { %5447 = vmatmul.mubr.msk.f32.gmra.mxu0 %vm1555_vm2, %v7236_v45 }
 0x2b2   :  { %5449 = vmatprep.mubr.msk.f32.mxu0 %vm1555_vm2, %v7243_v46 }
 0x2b5   :  { %5450 = vmatmul.mubr.msk.f32.gmra.mxu0 %vm1555_vm2, %v7250_v6 }
 0x2b6   :  { %5492 = vmatprep.mubr.msk.f32.mxu0 %vm1555_vm2, %v7257_v47 }
 0x359   :  { %v5430_v12 = vpop.f32.mrf.mxu0 }
 0x35a   :  { %v2305_v19 = vadd.f32 %v5430_v12, %v2144_v10 }
 0x35b   :  { %v2225_v14 = vpop.f32.mrf.mxu0 }
 0x35c   :  { %v4698_v15 = vmul.f32 -1.442695, %v2305_v19  ;;  %v2304_v50 = vadd.f32 %v2225_v14, %v2143_v13 }
 0x35d   :  { %v5433_v28 = vpop.f32.mrf.mxu0 }
 0x35e   :  { %5760 = vpow2.f32 %v4698_v15  ;;  %v4697_v29 = vmul.f32 -1.442695, %v2304_v50  ;;  %v2307_v63 = vadd.f32 %v5433_v28, %v2146_v16  ;;  %v2153_v15 = vld [vmem:[#allocation2 + $0x150] sm:$0xff] }
 0x35f   :  { %v2235_v32 = vpop.f32.mrf.mxu0 }
 0x360   :  { %5762 = vpow2.f32 %v4697_v29  ;;  %v4700_v48 = vmul.f32 -1.442695, %v2307_v63  ;;  %v2306_v49 = vadd.f32 %v2235_v32, %v2145_v30 }
 0x361   :  { %v5436_v27 = vpop.f32.mrf.mxu0 }
 0x362   :  { %5764 = vpow2.f32 %v4700_v48  ;;  %v4699_v52 = vmul.f32 -1.442695, %v2306_v49  ;;  %v2309_v53 = vadd.f32 %v5436_v27, %v2148_v51  ;;  %v2156_v49 = vld [vmem:[#allocation2 + $0x168] sm:$0xff] }
 0x363   :  { %v2245_v54 = vpop.f32.mrf.mxu0 }
 0x364   :  { %5766 = vpow2.f32 %v4699_v52  ;;  %v4702_v56 = vmul.f32 -1.442695, %v2309_v53  ;;  %v2308_v25 = vadd.f32 %v2245_v54, %v2147_v22  ;;  %v2155_v22 = vld [vmem:[#allocation2 + $0x160] sm:$0xff] }
 0x365   :  { %v5439_v57 = vpop.f32.mrf.mxu0 }
 0x366   :  { %5768 = vpow2.f32 %v4702_v56  ;;  %v4701_v58 = vmul.f32 -1.442695, %v2308_v25  ;;  %v2311_v18 = vadd.f32 %v5439_v57, %v2150_v24  ;;  %v2158_v57 = vld [vmem:[#allocation2 + $0x178] sm:$0xff] }
 0x367   :  { %v2255_v60 = vpop.f32.mrf.mxu0 }
 0x368   :  { %5770 = vpow2.f32 %v4701_v58  ;;  %v4704_v2 = vmul.f32 -1.442695, %v2311_v18  ;;  %v2310_v31 = vadd.f32 %v2255_v60, %v2149_v0 }
 0x369   :  { %v5442_v17 = vpop.f32.mrf.mxu0 }
 0x36a   :  { %5772 = vpow2.f32 %v4704_v2  ;;  %v4703_v1 = vmul.f32 -1.442695, %v2310_v31  ;;  %v2313_v3 = vadd.f32 %v5442_v17, %v2152_v20  ;;  %v2157_v2 = vld [vmem:[#allocation2 + $0x170] sm:$0xff] }
 0x36b   :  { %v5761_v21 = vpop.eup %5760  ;;  %v2265_v11 = vpop.f32.mrf.mxu0 }
 0x36c   :  { %v2357_v7 = vadd.f32 1.0, %v5761_v21  ;;  %5774 = vpow2.f32 %v4703_v1  ;;  %v4706_v23 = vmul.f32 -1.442695, %v2313_v3  ;;  %v2312_v8 = vadd.f32 %v2265_v11, %v2151_v4 }
 0x36d   :  { %v5763_v5 = vpop.eup %5762  ;;  %v5445_v10 = vpop.f32.mrf.mxu0 }
 0x36e   :  { %5776 = vrcp.f32 %v2357_v7  ;;  %v2356_v12 = vadd.f32 1.0, %v5763_v5  ;;  %v4705_v19 = vmul.f32 -1.442695, %v2312_v8  ;;  %v2315_v13 = vadd.f32 %v5445_v10, %v2154_v9 }
 0x36f   :  { %v5765_v14 = vpop.eup %5764  ;;  %5778 = vpow2.f32 %v4706_v23  ;;  %v2275_v50 = vpop.f32.mrf.mxu0 }
 0x370   :  { %5780 = vrcp.f32 %v2356_v12  ;;  %v2359_v16 = vadd.f32 1.0, %v5765_v14  ;;  %v4708_v28 = vmul.f32 -1.442695, %v2315_v13  ;;  %v2314_v29 = vadd.f32 %v2275_v50, %v2153_v15 }
 0x371   :  { %v5767_v63 = vpop.eup %5766  ;;  %5782 = vpow2.f32 %v4705_v19  ;;  %v5448_v30 = vpop.f32.mrf.mxu0 }
 0x372   :  { %5784 = vrcp.f32 %v2359_v16  ;;  %v2358_v32 = vadd.f32 1.0, %v5767_v63  ;;  %v4707_v48 = vmul.f32 -1.442695, %v2314_v29  ;;  %v2317_v27 = vadd.f32 %v5448_v30, %v2156_v49 }
 0x373   :  { %v5769_v51 = vpop.eup %5768  ;;  %5786 = vpow2.f32 %v4708_v28  ;;  %v2285_v52 = vpop.f32.mrf.mxu0 }
 0x374   :  { %5788 = vrcp.f32 %v2358_v32  ;;  %v2361_v53 = vadd.f32 1.0, %v5769_v51  ;;  %v2316_v56 = vadd.f32 %v2285_v52, %v2155_v22 }
 0x375   :  { %v5771_v54 = vpop.eup %5770  ;;  %5790 = vpow2.f32 %v4707_v48  ;;  %v5451_v25 = vpop.f32.mrf.mxu0 }
 0x376   :  { %5792 = vrcp.f32 %v2361_v53  ;;  %v2360_v24 = vadd.f32 1.0, %v5771_v54  ;;  %v2319_v18 = vadd.f32 %v5451_v25, %v2158_v57 }
 0x377   :  { %v5773_v58 = vpop.eup %5772  ;;  %5794 = vtanh.f32 %v2317_v27  ;;  %v2295_v0 = vpop.f32.mrf.mxu0 }
 0x378   :  { %5796 = vrcp.f32 %v2360_v24  ;;  %v2363_v60 = vadd.f32 1.0, %v5773_v58  ;;  %v2318_v20 = vadd.f32 %v2295_v0, %v2157_v2 }
 0x379   :  { %v5775_v31 = vpop.eup %5774  ;;  %5798 = vtanh.f32 %v2316_v56 }
 0x37a   :  { %5800 = vrcp.f32 %v2363_v60  ;;  %v2362_v17 = vadd.f32 1.0, %v5775_v31  ;;  %v2426_v31 = vld [vmem:[#allocation2 + $0x1a8] sm:$0xff] }
 0x37b   :  { %v5777_v1 = vpop.eup %5776  ;;  %5802 = vtanh.f32 %v2319_v18 }
 0x37c   :  { %v5779_v3 = vpop.eup %5778  ;;  %5804 = vrcp.f32 %v2362_v17 }
 0x37d   :  { %v5781_v21 = vpop.eup %5780  ;;  %5806 = vtanh.f32 %v2318_v20  ;;  %v2365_v10 = vadd.f32 1.0, %v5779_v3 }
 0x37e   :  { %v5783_v4 = vpop.eup %5782 }
 0x37f   :  { %v5785_v11 = vpop.eup %5784  ;;  %v2364_v15 = vadd.f32 1.0, %v5783_v4  ;;  %5808 = vrcp.f32 %v2365_v10 }
 0x380   :  { %v5787_v7 = vpop.eup %5786 }
 0x381   :  { %v5789_v23 = vpop.eup %5788  ;;  %v2367_v30 = vadd.f32 1.0, %v5787_v7 }
 0x382   :  { %v5791_v8 = vpop.eup %5790 }
 0x383   :  { %v5793_v5 = vpop.eup %5792  ;;  %v2366_v27 = vadd.f32 1.0, %v5791_v8 }
 0x384   :  { %v5795_v9 = vpop.eup %5794  ;;  %v2397_v12 = vmul.f32 %v5793_v5, %v7263_v55  ;;  %v2427_v5 = vld [vmem:[#allocation2 + $0x1b0] sm:$0xff] }
 0x385   :  { %v5797_v19 = vpop.eup %5796  ;;  %v2401_v13 = vmul.f32 %v5795_v9, %v5777_v1  ;;  %v2425_v1 = vld [vmem:[#allocation2 + $0x1a0] sm:$0xff] }
 0x386   :  { %v5799_v14 = vpop.eup %5798  ;;  %v2396_v50 = vmul.f32 %v5797_v19, %v7266_v59  ;;  %v2430_v19 = vld [vmem:[#allocation2 + $0x1c8] sm:$0xff] }
 0x387   :  { %v5801_v16 = vpop.eup %5800  ;;  %v7315_v28 = vadd.f32 %v2401_v13, %v2397_v12  ;;  %v2400_v29 = vmul.f32 %v5799_v14, %v5781_v21 }
 0x388   :  { %v5803_v63 = vpop.eup %5802  ;;  %v2399_v32 = vmul.f32 %v5801_v16, %v7270_v61  ;;  %v2429_v16 = vld [vmem:[#allocation2 + $0x1c0] sm:$0xff] }
 0x389   :  { %v5805_v48 = vpop.eup %5804  ;;  %v7318_v49 = vadd.f32 %v2400_v29, %v2396_v50  ;;  %v2403_v51 = vmul.f32 %v5803_v63, %v5785_v11  ;;  %5810 = vtanh.f32 %v7315_v28  ;;  %v2428_v11 = vld [vmem:[#allocation2 + $0x1b8] sm:$0xff] }
 0x38a   :  { %v5807_v55 = vpop.eup %5806  ;;  %5812 = vrcp.f32 %v2364_v15  ;;  %v2398_v59 = vmul.f32 %v5805_v48, %v7273_v62 }
 0x38b   :  { %v7322_v52 = vadd.f32 %v2403_v51, %v2399_v32  ;;  %v2402_v53 = vmul.f32 %v5807_v55, %v5789_v23  ;;  %5814 = vtanh.f32 %v7318_v49  ;;  %v2432_v51 = vld [vmem:[#allocation2 + $0x1d8] sm:$0xff] }
 0x38c   :  { %5816 = vrcp.f32 %v2367_v30  ;;  %v5809_v61 = vpop.eup %5808 }
 0x38d   :  { %v7325_v22 = vadd.f32 %v2402_v53, %v2398_v59  ;;  %5818 = vtanh.f32 %v7322_v52 }
 0x38e   :  { %5820 = vrcp.f32 %v2366_v27 }
 0x38f   :  { %5822 = vtanh.f32 %v7325_v22 }
 0x396   :  { %v5811_v54 = vpop.eup %5810 }
 0x397   :  { %v5813_v56 = vpop.eup %5812  ;;  %v2413_v25 = vmul.f32 %v5811_v54, %v5809_v61  ;;  %v2431_v54 = vld [vmem:[#allocation2 + $0x1d0] sm:$0xff] }
 0x398   :  { %v5815_v24 = vpop.eup %5814 }
 0x399   :  { %v5817_v57 = vpop.eup %5816  ;;  %2418 = vst.msk [vmem:[#allocation3 + $0x48] sm:$0xff] %vm353_vm3, %v2413_v25  ;;  %v2412_v62 = vmul.f32 %v5815_v24, %v5813_v56 }
 0x39a   :  { %v5819_v58 = vpop.eup %5818 }
 0x39b   :  { %v5821_v18 = vpop.eup %5820  ;;  %v2415_v0 = vmul.f32 %v5819_v58, %v5817_v57  ;;  %2417 = vst.msk [vmem:[#allocation3 + $0x40] sm:$0xff] %vm353_vm3, %v2412_v62 }
 0x39c   :  { %v5823_v60 = vpop.eup %5822 }
 0x39d   :  { %2420 = vst.msk [vmem:[#allocation3 + $0x58] sm:$0xff] %vm353_vm3, %v2415_v0  ;;  %5452 = vmatprep.subr.mxu1 %v2415_v0  ;;  %v2414_v2 = vmul.f32 %v5823_v60, %v5821_v18  ;;  %v2434_v60 = vld [vmem:[#allocation2 + $0x1e8] sm:$0xff] }
 0x39e   :  { %5453 = vmatpush3.msra.mxu1 %v2415_v0 }
 0x39f   :  { %2419 = vst.msk [vmem:[#allocation3 + $0x50] sm:$0xff] %vm353_vm3, %v2414_v2  ;;  %5454 = vmatprep.subr.mxu1 %v2414_v2 }
 0x3a0   :  { %5455 = vmatpush3.msra.mxu1 %v2414_v2 }
 0x3a1   :  { %5456 = vmatprep.subr.mxu1 %v2413_v25 }
 0x3a2   :  { %5457 = vmatpush3.msra.mxu1 %v2413_v25 }
 0x3a3   :  { %5458 = vmatprep.subr.mxu1 %v2412_v62 }
 0x3a4   :  { %5459 = vmatpush3.msra.mxu1 %v2412_v62 }
 0x3a5   :  { %5461 = vmatmul.mubr.msk.f32.vlgmr.msra.gmra.mxu1 %vm1555_vm2, %v7152_v33  ;;  %v2422_v33 = vld [vmem:[#allocation2 + $0x188] sm:$0xff] }
 0x3a6   :  { %5463 = vmatprep.mubr.msk.f32.mxu1 %vm1555_vm2, %v7159_v34 }
 0x3a9   :  { %5464 = vmatmul.mubr.msk.f32.gmra.mxu1 %vm1555_vm2, %v7166_v26 }
 0x3aa   :  { %5466 = vmatprep.mubr.msk.f32.mxu1 %vm1555_vm2, %v7173_v36  ;;  %v2421_v36 = vld [vmem:[#allocation2 + $0x180] sm:$0xff] }
 0x3ad   :  { %5467 = vmatmul.mubr.msk.f32.gmra.mxu1 %vm1555_vm2, %v7180_v37 }
 0x3ae   :  { %5469 = vmatprep.mubr.msk.f32.mxu1 %vm1555_vm2, %v7187_v38 }
 0x3b1   :  { %5470 = vmatmul.mubr.msk.f32.gmra.mxu1 %vm1555_vm2, %v7194_v39 }
 0x3b2   :  { %5472 = vmatprep.mubr.msk.f32.mxu1 %vm1555_vm2, %v7201_v41  ;;  %v2424_v41 = vld [vmem:[#allocation2 + $0x198] sm:$0xff] }
 0x3b5   :  { %5473 = vmatmul.mubr.msk.f32.gmra.mxu1 %vm1555_vm2, %v7208_v42 }
 0x3b6   :  { %5475 = vmatprep.mubr.msk.f32.mxu1 %vm1555_vm2, %v7215_v35 }
 0x3b9   :  { %5476 = vmatmul.mubr.msk.f32.gmra.mxu1 %vm1555_vm2, %v7222_v43 }
 0x3ba   :  { %5478 = vmatprep.mubr.msk.f32.mxu1 %vm1555_vm2, %v7229_v44  ;;  %v2423_v44 = vld [vmem:[#allocation2 + $0x190] sm:$0xff] }
 0x3bd   :  { %5479 = vmatmul.mubr.msk.f32.gmra.mxu1 %vm1555_vm2, %v7236_v45 }
 0x3be   :  { %5481 = vmatprep.mubr.msk.f32.mxu1 %vm1555_vm2, %v7243_v46 }
 0x3c1   :  { %5482 = vmatmul.mubr.msk.f32.gmra.mxu1 %vm1555_vm2, %v7250_v6 }
 0x3c2   :  { %5524 = vmatprep.mubr.msk.f32.mxu1 %vm1555_vm2, %v7257_v47 }
 0x465   :  { %v5462_v34 = vpop.f32.mrf.mxu1 }
 0x466   :  { %v2583_v26 = vadd.f32 %v5462_v34, %v2422_v33 }
 0x467   :  { %v2503_v37 = vpop.f32.mrf.mxu1 }
 0x468   :  { %v4726_v38 = vmul.f32 -1.442695, %v2583_v26  ;;  %v2582_v39 = vadd.f32 %v2503_v37, %v2421_v36  ;;  %v2433_v36 = vld [vmem:[#allocation2 + $0x1e0] sm:$0xff] }
 0x469   :  { %v5465_v42 = vpop.f32.mrf.mxu1 }
 0x46a   :  { %5824 = vpow2.f32 %v4726_v38  ;;  %v4725_v35 = vmul.f32 -1.442695, %v2582_v39  ;;  %v2585_v43 = vadd.f32 %v5465_v42, %v2424_v41  ;;  %v2436_v42 = vld [vmem:[#allocation2 + $0x1f8] sm:$0xff] }
 0x46b   :  { %v2513_v45 = vpop.f32.mrf.mxu1 }
 0x46c   :  { %5826 = vpow2.f32 %v4725_v35  ;;  %v4728_v46 = vmul.f32 -1.442695, %v2585_v43  ;;  %v2584_v6 = vadd.f32 %v2513_v45, %v2423_v44 }
 0x46d   :  { %v5468_v20 = vpop.f32.mrf.mxu1 }
 0x46e   :  { %5828 = vpow2.f32 %v4728_v46  ;;  %v4727_v47 = vmul.f32 -1.442695, %v2584_v6  ;;  %v2587_v17 = vadd.f32 %v5468_v20, %v2426_v31  ;;  %v2435_v46 = vld [vmem:[#allocation2 + $0x1f0] sm:$0xff] }
 0x46f   :  { %v2523_v3 = vpop.f32.mrf.mxu1 }
 0x470   :  { %5830 = vpow2.f32 %v4727_v47  ;;  %v4730_v21 = vmul.f32 -1.442695, %v2587_v17  ;;  %v2586_v4 = vadd.f32 %v2523_v3, %v2425_v1 }
 0x471   :  { %v5471_v7 = vpop.f32.mrf.mxu1 }
 0x472   :  { %5832 = vpow2.f32 %v4730_v21  ;;  %v4729_v23 = vmul.f32 -1.442695, %v2586_v4  ;;  %v2589_v8 = vadd.f32 %v5471_v7, %v2428_v11 }
 0x473   :  { %v2533_v9 = vpop.f32.mrf.mxu1 }
 0x474   :  { %5834 = vpow2.f32 %v4729_v23  ;;  %v4732_v10 = vmul.f32 -1.442695, %v2589_v8  ;;  %v2588_v12 = vadd.f32 %v2533_v9, %v2427_v5 }
 0x475   :  { %v5474_v13 = vpop.f32.mrf.mxu1 }
 0x476   :  { %5836 = vpow2.f32 %v4732_v10  ;;  %v4731_v14 = vmul.f32 -1.442695, %v2588_v12  ;;  %v2591_v15 = vadd.f32 %v5474_v13, %v2430_v19 }
 0x477   :  { %v5825_v50 = vpop.eup %5824  ;;  %v2543_v29 = vpop.f32.mrf.mxu1 }
 0x478   :  { %v2635_v63 = vadd.f32 1.0, %v5825_v50  ;;  %5838 = vpow2.f32 %v4731_v14  ;;  %v4734_v30 = vmul.f32 -1.442695, %v2591_v15  ;;  %v2590_v32 = vadd.f32 %v2543_v29, %v2429_v16 }
 0x479   :  { %v5827_v48 = vpop.eup %5826  ;;  %v5477_v55 = vpop.f32.mrf.mxu1 }
 0x47a   :  { %5840 = vrcp.f32 %v2635_v63  ;;  %v2634_v27 = vadd.f32 1.0, %v5827_v48  ;;  %v4733_v59 = vmul.f32 -1.442695, %v2590_v32  ;;  %v2593_v53 = vadd.f32 %v5477_v55, %v2432_v51 }
 0x47b   :  { %v5829_v61 = vpop.eup %5828  ;;  %5842 = vpow2.f32 %v4734_v30  ;;  %v2553_v56 = vpop.f32.mrf.mxu1 }
 0x47c   :  { %5844 = vrcp.f32 %v2634_v27  ;;  %v2637_v25 = vadd.f32 1.0, %v5829_v61  ;;  %v4736_v24 = vmul.f32 -1.442695, %v2593_v53  ;;  %v2592_v57 = vadd.f32 %v2553_v56, %v2431_v54 }
 0x47d   :  { %v5831_v62 = vpop.eup %5830  ;;  %5846 = vpow2.f32 %v4733_v59  ;;  %v5480_v58 = vpop.f32.mrf.mxu1 }
 0x47e   :  { %5848 = vrcp.f32 %v2637_v25  ;;  %v2636_v18 = vadd.f32 1.0, %v5831_v62  ;;  %v4735_v0 = vmul.f32 -1.442695, %v2592_v57  ;;  %v2595_v33 = vadd.f32 %v5480_v58, %v2434_v60  ;;  %v7388_v60 = vld [vmem:[%s8057_s2 + $0x8] sm:$0xff] }
 0x47f   :  { %v5833_v2 = vpop.eup %5832  ;;  %5850 = vpow2.f32 %v4736_v24  ;;  %v2563_v34 = vpop.f32.mrf.mxu1 }
 0x480   :  { %5852 = vrcp.f32 %v2636_v18  ;;  %v2639_v26 = vadd.f32 1.0, %v5833_v2  ;;  %v2594_v38 = vadd.f32 %v2563_v34, %v2433_v36  ;;  %v7395_v2 = vld [vmem:[%s8057_s2 + $0x10] sm:$0xff]  ;;  %v7409_v34 = vld [vmem:[%s8057_s2 + $0x20] sm:$0xff] }
 0x481   :  { %v5835_v37 = vpop.eup %5834  ;;  %5854 = vpow2.f32 %v4735_v0  ;;  %v5483_v39 = vpop.f32.mrf.mxu1  ;;  %v7423_v36 = vld [vmem:[%s8057_s2 + $0x30] sm:$0xff] }
 0x482   :  { %5856 = vrcp.f32 %v2639_v26  ;;  %v2638_v41 = vadd.f32 1.0, %v5835_v37  ;;  %v2597_v43 = vadd.f32 %v5483_v39, %v2436_v42  ;;  %v7416_v26 = vld [vmem:[%s8057_s2 + $0x28] sm:$0xff]  ;;  %v7430_v37 = vld [vmem:[%s8057_s2 + $0x38] sm:$0xff] }
 0x483   :  { %v5837_v35 = vpop.eup %5836  ;;  %5858 = vtanh.f32 %v2595_v33  ;;  %v2573_v44 = vpop.f32.mrf.mxu1  ;;  %v7402_v33 = vld [vmem:[%s8057_s2 + $0x18] sm:$0xff]  ;;  %v7444_v39 = vld [vmem:[%s8057_s2 + $0x48] sm:$0xff] }
 0x484   :  { %5860 = vrcp.f32 %v2638_v41  ;;  %v2641_v45 = vadd.f32 1.0, %v5837_v35  ;;  %v2596_v31 = vadd.f32 %v2573_v44, %v2435_v46  ;;  %v7451_v41 = vld [vmem:[%s8057_s2 + $0x50] sm:$0xff]  ;;  %v7458_v42 = vld [vmem:[%s8057_s2 + $0x58] sm:$0xff]  ;;  %v7465_v35 = vld [vmem:[%s8057_s2 + $0x60] sm:$0xff] }
 0x485   :  { %v5839_v6 = vpop.eup %5838  ;;  %5862 = vtanh.f32 %v2594_v38  ;;  %v7437_v38 = vld [vmem:[%s8057_s2 + $0x40] sm:$0xff]  ;;  %v7479_v44 = vld [vmem:[%s8057_s2 + $0x70] sm:$0xff] }
 0x486   :  { %5864 = vrcp.f32 %v2641_v45  ;;  %v2640_v20 = vadd.f32 1.0, %v5839_v6  ;;  %v7486_v45 = vld [vmem:[%s8057_s2 + $0x78] sm:$0xff]  ;;  %v7493_v46 = vld [vmem:[%s8057_s2] sm:$0xff]  ;;  %v2700_v6 = vld [vmem:[#allocation2 + $0x208] sm:$0xff] }
 0x487   :  { %v5841_v47 = vpop.eup %5840  ;;  %5866 = vtanh.f32 %v2597_v43  ;;  %v7472_v43 = vld [vmem:[%s8057_s2 + $0x68] sm:$0xff] }
 0x488   :  { %v5843_v17 = vpop.eup %5842  ;;  %5868 = vrcp.f32 %v2640_v20 }
 0x489   :  { %v5845_v1 = vpop.eup %5844  ;;  %5870 = vtanh.f32 %v2596_v31  ;;  %v2643_v5 = vadd.f32 1.0, %v5843_v17 }
 0x48a   :  { %v5847_v3 = vpop.eup %5846 }
 0x48b   :  { %v5849_v21 = vpop.eup %5848  ;;  %v2642_v13 = vadd.f32 1.0, %v5847_v3  ;;  %5872 = vrcp.f32 %v2643_v5 }
 0x48c   :  { %v5851_v4 = vpop.eup %5850 }
 0x48d   :  { %v5853_v11 = vpop.eup %5852  ;;  %v2645_v63 = vadd.f32 1.0, %v5851_v4 }
 0x48e   :  { %v5855_v7 = vpop.eup %5854 }
 0x48f   :  { %v5857_v23 = vpop.eup %5856  ;;  %v2644_v55 = vadd.f32 1.0, %v5855_v7 }
 0x490   :  { %v5859_v8 = vpop.eup %5858  ;;  %v2675_v9 = vmul.f32 %v5857_v23, %v7315_v28  ;;  %v2701_v23 = vld [vmem:[#allocation2 + $0x210] sm:$0xff] }
 0x491   :  { %v5861_v10 = vpop.eup %5860  ;;  %v2679_v12 = vmul.f32 %v5859_v8, %v5841_v47  ;;  %v2699_v47 = vld [vmem:[#allocation2 + $0x200] sm:$0xff] }
 0x492   :  { %v5863_v19 = vpop.eup %5862  ;;  %v2674_v14 = vmul.f32 %v5861_v10, %v7318_v49  ;;  %v2704_v10 = vld [vmem:[#allocation2 + $0x228] sm:$0xff] }
 0x493   :  { %v5865_v15 = vpop.eup %5864  ;;  %v7367_v50 = vadd.f32 %v2679_v12, %v2675_v9  ;;  %v2678_v16 = vmul.f32 %v5863_v19, %v5845_v1 }
 0x494   :  { %v5867_v29 = vpop.eup %5866  ;;  %v2677_v30 = vmul.f32 %v5865_v15, %v7322_v52 }
 0x495   :  { %v5869_v32 = vpop.eup %5868  ;;  %v7370_v48 = vadd.f32 %v2678_v16, %v2674_v14  ;;  %v2681_v51 = vmul.f32 %v5867_v29, %v5849_v21  ;;  %5874 = vtanh.f32 %v7367_v50  ;;  %v2702_v21 = vld [vmem:[#allocation2 + $0x218] sm:$0xff]  ;;  %v2703_v14 = vld [vmem:[#allocation2 + $0x220] sm:$0xff] }
 0x496   :  { %v5871_v28 = vpop.eup %5870  ;;  %5876 = vrcp.f32 %v2642_v13  ;;  %v2676_v49 = vmul.f32 %v5869_v32, %v7325_v22 }
 0x497   :  { %v7374_v27 = vadd.f32 %v2681_v51, %v2677_v30  ;;  %v2680_v59 = vmul.f32 %v5871_v28, %v5853_v11  ;;  %5878 = vtanh.f32 %v7370_v48  ;;  %v2705_v28 = vld [vmem:[#allocation2 + $0x230] sm:$0xff] }
 0x498   :  { %5880 = vrcp.f32 %v2645_v63  ;;  %v5873_v52 = vpop.eup %5872  ;;  %v2706_v63 = vld [vmem:[#allocation2 + $0x238] sm:$0xff] }
 0x499   :  { %v7377_v53 = vadd.f32 %v2680_v59, %v2676_v49  ;;  %5882 = vtanh.f32 %v7374_v27 }
 0x49a   :  { %5884 = vrcp.f32 %v2644_v55 }
 0x49b   :  { %5886 = vtanh.f32 %v7377_v53 }
 0x4a2   :  { %v5875_v61 = vpop.eup %5874 }
 0x4a3   :  { %v5877_v54 = vpop.eup %5876  ;;  %v2691_v56 = vmul.f32 %v5875_v61, %v5873_v52  ;;  %v2708_v52 = vld [vmem:[#allocation2 + $0x248] sm:$0xff] }
 0x4a4   :  { %v5879_v25 = vpop.eup %5878 }
 0x4a5   :  { %v5881_v24 = vpop.eup %5880  ;;  %2696 = vst.msk [vmem:[#allocation3 + $0x68] sm:$0xff] %vm353_vm3, %v2691_v56  ;;  %v2690_v22 = vmul.f32 %v5879_v25, %v5877_v54 }
 0x4a6   :  { %v5883_v57 = vpop.eup %5882 }
 0x4a7   :  { %v5885_v62 = vpop.eup %5884  ;;  %v2693_v58 = vmul.f32 %v5883_v57, %v5881_v24  ;;  %2695 = vst.msk [vmem:[#allocation3 + $0x60] sm:$0xff] %vm353_vm3, %v2690_v22  ;;  %v2707_v24 = vld [vmem:[#allocation2 + $0x240] sm:$0xff] }
 0x4a8   :  { %v5887_v18 = vpop.eup %5886 }
 0x4a9   :  { %2698 = vst.msk [vmem:[#allocation3 + $0x78] sm:$0xff] %vm353_vm3, %v2693_v58  ;;  %5484 = vmatprep.subr.mxu0 %v2693_v58  ;;  %v2692_v0 = vmul.f32 %v5887_v18, %v5885_v62 }
 0x4aa   :  { %5485 = vmatpush3.msra.mxu0 %v2693_v58 }
 0x4ab   :  { %2697 = vst.msk [vmem:[#allocation3 + $0x70] sm:$0xff] %vm353_vm3, %v2692_v0  ;;  %5486 = vmatprep.subr.mxu0 %v2692_v0 }
 0x4ac   :  { %5487 = vmatpush3.msra.mxu0 %v2692_v0  ;;  %v2710_v0 = vld [vmem:[#allocation2 + $0x258] sm:$0xff] }
 0x4ad   :  { %5488 = vmatprep.subr.mxu0 %v2691_v56 }
 0x4ae   :  { %5489 = vmatpush3.msra.mxu0 %v2691_v56 }
 0x4af   :  { %5490 = vmatprep.subr.mxu0 %v2690_v22 }
 0x4b0   :  { %5491 = vmatpush3.msra.mxu0 %v2690_v22 }
 0x4b1   :  { %5493 = vmatmul.mubr.msk.f32.vlgmr.msra.gmra.mxu0 %vm1555_vm2, %v7388_v60 }
 0x4b2   :  { %5495 = vmatprep.mubr.msk.f32.mxu0 %vm1555_vm2, %v7395_v2 }
 0x4b5   :  { %5496 = vmatmul.mubr.msk.f32.gmra.mxu0 %vm1555_vm2, %v7402_v33 }
 0x4b6   :  { %5498 = vmatprep.mubr.msk.f32.mxu0 %vm1555_vm2, %v7409_v34 }
 0x4b9   :  { %5499 = vmatmul.mubr.msk.f32.gmra.mxu0 %vm1555_vm2, %v7416_v26 }
 0x4ba   :  { %5501 = vmatprep.mubr.msk.f32.mxu0 %vm1555_vm2, %v7423_v36 }
 0x4bd   :  { %5502 = vmatmul.mubr.msk.f32.gmra.mxu0 %vm1555_vm2, %v7430_v37 }
 0x4be   :  { %5504 = vmatprep.mubr.msk.f32.mxu0 %vm1555_vm2, %v7437_v38 }
 0x4c1   :  { %5505 = vmatmul.mubr.msk.f32.gmra.mxu0 %vm1555_vm2, %v7444_v39 }
 0x4c2   :  { %5507 = vmatprep.mubr.msk.f32.mxu0 %vm1555_vm2, %v7451_v41 }
 0x4c5   :  { %5508 = vmatmul.mubr.msk.f32.gmra.mxu0 %vm1555_vm2, %v7458_v42 }
 0x4c6   :  { %5510 = vmatprep.mubr.msk.f32.mxu0 %vm1555_vm2, %v7465_v35 }
 0x4c9   :  { %5511 = vmatmul.mubr.msk.f32.gmra.mxu0 %vm1555_vm2, %v7472_v43 }
 0x4ca   :  { %5513 = vmatprep.mubr.msk.f32.mxu0 %vm1555_vm2, %v7479_v44 }
 0x4cd   :  { %5514 = vmatmul.mubr.msk.f32.gmra.mxu0 %vm1555_vm2, %v7486_v45 }
 0x4ce   :  { %5556 = vmatprep.mubr.msk.f32.mxu0 %vm1555_vm2, %v7493_v46 }
 0x571   :  { %v5494_v31 = vpop.f32.mrf.mxu0 }
 0x572   :  { %v2861_v20 = vadd.f32 %v5494_v31, %v2700_v6 }
 0x573   :  { %v2781_v17 = vpop.f32.mrf.mxu0 }
 0x574   :  { %v4754_v1 = vmul.f32 -1.442695, %v2861_v20  ;;  %v2860_v3 = vadd.f32 %v2781_v17, %v2699_v47 }
 0x575   :  { %v5497_v4 = vpop.f32.mrf.mxu0 }
 0x576   :  { %5888 = vpow2.f32 %v4754_v1  ;;  %v4753_v11 = vmul.f32 -1.442695, %v2860_v3  ;;  %v2863_v7 = vadd.f32 %v5497_v4, %v2702_v21  ;;  %v2709_v1 = vld [vmem:[#allocation2 + $0x250] sm:$0xff] }
 0x577   :  { %v2791_v8 = vpop.f32.mrf.mxu0 }
 0x578   :  { %5890 = vpow2.f32 %v4753_v11  ;;  %v4756_v5 = vmul.f32 -1.442695, %v2863_v7  ;;  %v2862_v9 = vadd.f32 %v2791_v8, %v2701_v23 }
 0x579   :  { %v5500_v12 = vpop.f32.mrf.mxu0 }
 0x57a   :  { %5892 = vpow2.f32 %v4756_v5  ;;  %v4755_v19 = vmul.f32 -1.442695, %v2862_v9  ;;  %v2865_v13 = vadd.f32 %v5500_v12, %v2704_v10  ;;  %v2712_v9 = vld [vmem:[#allocation2 + $0x268] sm:$0xff] }
 0x57b   :  { %v2801_v15 = vpop.f32.mrf.mxu0 }
 0x57c   :  { %5894 = vpow2.f32 %v4755_v19  ;;  %v4758_v16 = vmul.f32 -1.442695, %v2865_v13  ;;  %v2864_v29 = vadd.f32 %v2801_v15, %v2703_v14  ;;  %v2711_v14 = vld [vmem:[#allocation2 + $0x260] sm:$0xff] }
 0x57d   :  { %v5503_v30 = vpop.f32.mrf.mxu0 }
 0x57e   :  { %5896 = vpow2.f32 %v4758_v16  ;;  %v4757_v32 = vmul.f32 -1.442695, %v2864_v29  ;;  %v2867_v51 = vadd.f32 %v5503_v30, %v2706_v63  ;;  %v2714_v30 = vld [vmem:[#allocation2 + $0x278] sm:$0xff] }
 0x57f   :  { %v2811_v55 = vpop.f32.mrf.mxu0 }
 0x580   :  { %5898 = vpow2.f32 %v4757_v32  ;;  %v4760_v49 = vmul.f32 -1.442695, %v2867_v51  ;;  %v2866_v59 = vadd.f32 %v2811_v55, %v2705_v28 }
 0x581   :  { %v5506_v61 = vpop.f32.mrf.mxu0 }
 0x582   :  { %5900 = vpow2.f32 %v4760_v49  ;;  %v4759_v54 = vmul.f32 -1.442695, %v2866_v59  ;;  %v2869_v56 = vadd.f32 %v5506_v61, %v2708_v52  ;;  %v2713_v49 = vld [vmem:[#allocation2 + $0x270] sm:$0xff] }
 0x583   :  { %v5889_v25 = vpop.eup %5888  ;;  %v2821_v22 = vpop.f32.mrf.mxu0 }
 0x584   :  { %v2913_v57 = vadd.f32 1.0, %v5889_v25  ;;  %5902 = vpow2.f32 %v4759_v54  ;;  %v4762_v62 = vmul.f32 -1.442695, %v2869_v56  ;;  %v2868_v58 = vadd.f32 %v2821_v22, %v2707_v24 }
 0x585   :  { %v5891_v18 = vpop.eup %5890  ;;  %v5509_v6 = vpop.f32.mrf.mxu0 }
 0x586   :  { %5904 = vrcp.f32 %v2913_v57  ;;  %v2912_v31 = vadd.f32 1.0, %v5891_v18  ;;  %v4761_v20 = vmul.f32 -1.442695, %v2868_v58  ;;  %v2871_v47 = vadd.f32 %v5509_v6, %v2710_v0 }
 0x587   :  { %v5893_v17 = vpop.eup %5892  ;;  %5906 = vpow2.f32 %v4762_v62  ;;  %v2831_v3 = vpop.f32.mrf.mxu0 }
 0x588   :  { %5908 = vrcp.f32 %v2912_v31  ;;  %v2915_v21 = vadd.f32 1.0, %v5893_v17  ;;  %v4764_v4 = vmul.f32 -1.442695, %v2871_v47  ;;  %v2870_v11 = vadd.f32 %v2831_v3, %v2709_v1 }
 0x589   :  { %v5895_v7 = vpop.eup %5894  ;;  %5910 = vpow2.f32 %v4761_v20  ;;  %v5512_v23 = vpop.f32.mrf.mxu0 }
 0x58a   :  { %5912 = vrcp.f32 %v2915_v21  ;;  %v2914_v8 = vadd.f32 1.0, %v5895_v7  ;;  %v4763_v5 = vmul.f32 -1.442695, %v2870_v11  ;;  %v2873_v12 = vadd.f32 %v5512_v23, %v2712_v9 }
 0x58b   :  { %v5897_v10 = vpop.eup %5896  ;;  %5914 = vpow2.f32 %v4764_v4  ;;  %v2841_v19 = vpop.f32.mrf.mxu0 }
 0x58c   :  { %5916 = vrcp.f32 %v2914_v8  ;;  %v2917_v13 = vadd.f32 1.0, %v5897_v10  ;;  %v2872_v16 = vadd.f32 %v2841_v19, %v2711_v14 }
 0x58d   :  { %v5899_v15 = vpop.eup %5898  ;;  %5918 = vpow2.f32 %v4763_v5  ;;  %v5515_v29 = vpop.f32.mrf.mxu0 }
 0x58e   :  { %5920 = vrcp.f32 %v2917_v13  ;;  %v2916_v63 = vadd.f32 1.0, %v5899_v15  ;;  %v2875_v51 = vadd.f32 %v5515_v29, %v2714_v30 }
 0x58f   :  { %v5901_v32 = vpop.eup %5900  ;;  %5922 = vtanh.f32 %v2873_v12  ;;  %v2851_v28 = vpop.f32.mrf.mxu0 }
 0x590   :  { %5924 = vrcp.f32 %v2916_v63  ;;  %v2919_v55 = vadd.f32 1.0, %v5901_v32  ;;  %v2874_v52 = vadd.f32 %v2851_v28, %v2713_v49 }
 0x591   :  { %v5903_v59 = vpop.eup %5902  ;;  %5926 = vtanh.f32 %v2872_v16 }
 0x592   :  { %5928 = vrcp.f32 %v2919_v55  ;;  %v2918_v61 = vadd.f32 1.0, %v5903_v59  ;;  %v2978_v59 = vld [vmem:[#allocation2 + $0x288] sm:$0xff] }
 0x593   :  { %v5905_v54 = vpop.eup %5904  ;;  %5930 = vtanh.f32 %v2875_v51 }
 0x594   :  { %v5907_v56 = vpop.eup %5906  ;;  %5932 = vrcp.f32 %v2918_v61 }
 0x595   :  { %v5909_v25 = vpop.eup %5908  ;;  %5934 = vtanh.f32 %v2874_v52  ;;  %v2921_v6 = vadd.f32 1.0, %v5907_v56 }
 0x596   :  { %v5911_v24 = vpop.eup %5910 }
 0x597   :  { %v5913_v22 = vpop.eup %5912  ;;  %v2920_v1 = vadd.f32 1.0, %v5911_v24  ;;  %5936 = vrcp.f32 %v2921_v6 }
 0x598   :  { %v5915_v57 = vpop.eup %5914 }
 0x599   :  { %v5917_v62 = vpop.eup %5916  ;;  %v2923_v23 = vadd.f32 1.0, %v5915_v57 }
 0x59a   :  { %v5919_v58 = vpop.eup %5918 }
 0x59b   :  { %v5921_v18 = vpop.eup %5920  ;;  %v2922_v12 = vadd.f32 1.0, %v5919_v58 }
 0x59c   :  { %v5923_v0 = vpop.eup %5922  ;;  %v2953_v31 = vmul.f32 %v5921_v18, %v7367_v50  ;;  %v2979_v18 = vld [vmem:[#allocation2 + $0x290] sm:$0xff] }
 0x59d   :  { %v5925_v20 = vpop.eup %5924  ;;  %v2957_v47 = vmul.f32 %v5923_v0, %v5905_v54  ;;  %v2977_v54 = vld [vmem:[#allocation2 + $0x280] sm:$0xff] }
 0x59e   :  { %v5927_v17 = vpop.eup %5926  ;;  %v2952_v3 = vmul.f32 %v5925_v20, %v7370_v48  ;;  %v2982_v20 = vld [vmem:[#allocation2 + $0x2a8] sm:$0xff] }
 0x59f   :  { %v5929_v21 = vpop.eup %5928  ;;  %v7499_v4 = vadd.f32 %v2957_v47, %v2953_v31  ;;  %v2956_v11 = vmul.f32 %v5927_v17, %v5909_v25 }
 0x5a0   :  { %v5931_v7 = vpop.eup %5930  ;;  %v2955_v8 = vmul.f32 %v5929_v21, %v7374_v27 }
 0x5a1   :  { %v5933_v5 = vpop.eup %5932  ;;  %v7502_v9 = vadd.f32 %v2956_v11, %v2952_v3  ;;  %v2959_v10 = vmul.f32 %v5931_v7, %v5913_v22  ;;  %5938 = vtanh.f32 %v7499_v4  ;;  %v2980_v22 = vld [vmem:[#allocation2 + $0x298] sm:$0xff] }
 0x5a2   :  { %v5935_v50 = vpop.eup %5934  ;;  %5940 = vrcp.f32 %v2920_v1  ;;  %v2954_v48 = vmul.f32 %v5933_v5, %v7377_v53  ;;  %v2981_v1 = vld [vmem:[#allocation2 + $0x2a0] sm:$0xff]  ;;  %v2984_v7 = vld [vmem:[#allocation2 + $0x2b8] sm:$0xff] }
 0x5a3   :  { %v7506_v19 = vadd.f32 %v2959_v10, %v2955_v8  ;;  %v2958_v13 = vmul.f32 %v5935_v50, %v5917_v62  ;;  %5942 = vtanh.f32 %v7502_v9  ;;  %v2983_v10 = vld [vmem:[#allocation2 + $0x2b0] sm:$0xff] }
 0x5a4   :  { %5944 = vrcp.f32 %v2923_v23  ;;  %v5937_v27 = vpop.eup %5936 }
 0x5a5   :  { %v7509_v14 = vadd.f32 %v2958_v13, %v2954_v48  ;;  %5946 = vtanh.f32 %v7506_v19  ;;  %v2986_v13 = vld [vmem:[#allocation2 + $0x2c8] sm:$0xff] }
 0x5a6   :  { %5948 = vrcp.f32 %v2922_v12 }
 0x5a7   :  { %5950 = vtanh.f32 %v7509_v14 }
 0x5ae   :  { %v5939_v15 = vpop.eup %5938 }
 0x5af   :  { %v5941_v16 = vpop.eup %5940  ;;  %v2969_v29 = vmul.f32 %v5939_v15, %v5937_v27 }
 0x5b0   :  { %v5943_v63 = vpop.eup %5942 }
 0x5b1   :  { %v5945_v30 = vpop.eup %5944  ;;  %2974 = vst.msk [vmem:[#allocation3 + $0x88] sm:$0xff] %vm353_vm3, %v2969_v29  ;;  %v2968_v53 = vmul.f32 %v5943_v63, %v5941_v16  ;;  %v2985_v63 = vld [vmem:[#allocation2 + $0x2c0] sm:$0xff] }
 0x5b2   :  { %v5947_v32 = vpop.eup %5946 }
 0x5b3   :  { %v5949_v51 = vpop.eup %5948  ;;  %v2971_v28 = vmul.f32 %v5947_v32, %v5945_v30  ;;  %2973 = vst.msk [vmem:[#allocation3 + $0x80] sm:$0xff] %vm353_vm3, %v2968_v53 }
 0x5b4   :  { %v5951_v55 = vpop.eup %5950 }
 0x5b5   :  { %2976 = vst.msk [vmem:[#allocation3 + $0x98] sm:$0xff] %vm353_vm3, %v2971_v28  ;;  %5516 = vmatprep.subr.mxu1 %v2971_v28  ;;  %v2970_v49 = vmul.f32 %v5951_v55, %v5949_v51  ;;  %v2988_v55 = vld [vmem:[#allocation2 + $0x2d8] sm:$0xff] }
 0x5b6   :  { %5517 = vmatpush3.msra.mxu1 %v2971_v28 }
 0x5b7   :  { %2975 = vst.msk [vmem:[#allocation3 + $0x90] sm:$0xff] %vm353_vm3, %v2970_v49  ;;  %5518 = vmatprep.subr.mxu1 %v2970_v49 }
 0x5b8   :  { %5519 = vmatpush3.msra.mxu1 %v2970_v49 }
 0x5b9   :  { %5520 = vmatprep.subr.mxu1 %v2969_v29 }
 0x5ba   :  { %5521 = vmatpush3.msra.mxu1 %v2969_v29 }
 0x5bb   :  { %5522 = vmatprep.subr.mxu1 %v2968_v53 }
 0x5bc   :  { %5523 = vmatpush3.msra.mxu1 %v2968_v53 }
 0x5bd   :  { %5525 = vmatmul.mubr.msk.f32.vlgmr.msra.gmra.mxu1 %vm1555_vm2, %v7388_v60 }
 0x5be   :  { %5527 = vmatprep.mubr.msk.f32.mxu1 %vm1555_vm2, %v7395_v2 }
 0x5c1   :  { %5528 = vmatmul.mubr.msk.f32.gmra.mxu1 %vm1555_vm2, %v7402_v33 }
 0x5c2   :  { %5530 = vmatprep.mubr.msk.f32.mxu1 %vm1555_vm2, %v7409_v34 }
 0x5c5   :  { %5531 = vmatmul.mubr.msk.f32.gmra.mxu1 %vm1555_vm2, %v7416_v26 }
 0x5c6   :  { %5533 = vmatprep.mubr.msk.f32.mxu1 %vm1555_vm2, %v7423_v36 }
 0x5c9   :  { %5534 = vmatmul.mubr.msk.f32.gmra.mxu1 %vm1555_vm2, %v7430_v37 }
 0x5ca   :  { %5536 = vmatprep.mubr.msk.f32.mxu1 %vm1555_vm2, %v7437_v38 }
 0x5cd   :  { %5537 = vmatmul.mubr.msk.f32.gmra.mxu1 %vm1555_vm2, %v7444_v39 }
 0x5ce   :  { %5539 = vmatprep.mubr.msk.f32.mxu1 %vm1555_vm2, %v7451_v41 }
 0x5d1   :  { %5540 = vmatmul.mubr.msk.f32.gmra.mxu1 %vm1555_vm2, %v7458_v42 }
 0x5d2   :  { %5542 = vmatprep.mubr.msk.f32.mxu1 %vm1555_vm2, %v7465_v35 }
 0x5d5   :  { %5543 = vmatmul.mubr.msk.f32.gmra.mxu1 %vm1555_vm2, %v7472_v43 }
 0x5d6   :  { %5545 = vmatprep.mubr.msk.f32.mxu1 %vm1555_vm2, %v7479_v44 }
 0x5d9   :  { %5546 = vmatmul.mubr.msk.f32.gmra.mxu1 %vm1555_vm2, %v7486_v45 }
 0x5da   :  { %5588 = vmatprep.mubr.msk.f32.mxu1 %vm1555_vm2, %v7493_v46 }
 0x67d   :  { %v5526_v52 = vpop.f32.mrf.mxu1 }
 0x67e   :  { %v3139_v61 = vadd.f32 %v5526_v52, %v2978_v59 }
 0x67f   :  { %v3059_v56 = vpop.f32.mrf.mxu1 }
 0x680   :  { %v4782_v25 = vmul.f32 -1.442695, %v3139_v61  ;;  %v3138_v24 = vadd.f32 %v3059_v56, %v2977_v54  ;;  %v2987_v56 = vld [vmem:[#allocation2 + $0x2d0] sm:$0xff] }
 0x681   :  { %v5529_v57 = vpop.f32.mrf.mxu1 }
 0x682   :  { %5952 = vpow2.f32 %v4782_v25  ;;  %v4781_v62 = vmul.f32 -1.442695, %v3138_v24  ;;  %v3141_v58 = vadd.f32 %v5529_v57, %v2980_v22 }
 0x683   :  { %v3069_v0 = vpop.f32.mrf.mxu1 }
 0x684   :  { %5954 = vpow2.f32 %v4781_v62  ;;  %v4784_v6 = vmul.f32 -1.442695, %v3141_v58  ;;  %v3140_v31 = vadd.f32 %v3069_v0, %v2979_v18 }
 0x685   :  { %v5532_v47 = vpop.f32.mrf.mxu1 }
 0x686   :  { %5956 = vpow2.f32 %v4784_v6  ;;  %v4783_v46 = vmul.f32 -1.442695, %v3140_v31  ;;  %v3143_v17 = vadd.f32 %v5532_v47, %v2982_v20  ;;  %v2990_v6 = vld [vmem:[#allocation2 + $0x2e8] sm:$0xff] }
 0x687   :  { %v3079_v3 = vpop.f32.mrf.mxu1 }
 0x688   :  { %5958 = vpow2.f32 %v4783_v46  ;;  %v4786_v21 = vmul.f32 -1.442695, %v3143_v17  ;;  %v3142_v11 = vadd.f32 %v3079_v3, %v2981_v1  ;;  %v2989_v17 = vld [vmem:[#allocation2 + $0x2e0] sm:$0xff] }
 0x689   :  { %v5535_v23 = vpop.f32.mrf.mxu1 }
 0x68a   :  { %5960 = vpow2.f32 %v4786_v21  ;;  %v4785_v8 = vmul.f32 -1.442695, %v3142_v11  ;;  %v3145_v5 = vadd.f32 %v5535_v23, %v2984_v7  ;;  %v2992_v7 = vld [vmem:[#allocation2 + $0x2f8] sm:$0xff] }
 0x68b   :  { %v3089_v50 = vpop.f32.mrf.mxu1 }
 0x68c   :  { %5962 = vpow2.f32 %v4785_v8  ;;  %v4788_v12 = vmul.f32 -1.442695, %v3145_v5  ;;  %v3144_v48 = vadd.f32 %v3089_v50, %v2983_v10  ;;  %v2991_v50 = vld [vmem:[#allocation2 + $0x2f0] sm:$0xff] }
 0x68d   :  { %v5538_v27 = vpop.f32.mrf.mxu1 }
 0x68e   :  { %5964 = vpow2.f32 %v4788_v12  ;;  %v4787_v15 = vmul.f32 -1.442695, %v3144_v48  ;;  %v3147_v16 = vadd.f32 %v5538_v27, %v2986_v13 }
 0x68f   :  { %v5953_v29 = vpop.eup %5952  ;;  %v3099_v30 = vpop.f32.mrf.mxu1 }
 0x690   :  { %v3191_v53 = vadd.f32 1.0, %v5953_v29  ;;  %5966 = vpow2.f32 %v4787_v15  ;;  %v4790_v32 = vmul.f32 -1.442695, %v3147_v16  ;;  %v3146_v51 = vadd.f32 %v3099_v30, %v2985_v63 }
 0x691   :  { %v5955_v28 = vpop.eup %5954  ;;  %v5541_v49 = vpop.f32.mrf.mxu1 }
 0x692   :  { %5968 = vrcp.f32 %v3191_v53  ;;  %v3190_v59 = vadd.f32 1.0, %v5955_v28  ;;  %v4789_v52 = vmul.f32 -1.442695, %v3146_v51  ;;  %v3149_v61 = vadd.f32 %v5541_v49, %v2988_v55 }
 0x693   :  { %v5957_v54 = vpop.eup %5956  ;;  %5970 = vpow2.f32 %v4790_v32  ;;  %v3109_v25 = vpop.f32.mrf.mxu1 }
 0x694   :  { %5972 = vrcp.f32 %v3190_v59  ;;  %v3193_v24 = vadd.f32 1.0, %v5957_v54  ;;  %v4792_v22 = vmul.f32 -1.442695, %v3149_v61  ;;  %v3148_v57 = vadd.f32 %v3109_v25, %v2987_v56 }
 0x695   :  { %v5959_v62 = vpop.eup %5958  ;;  %5974 = vpow2.f32 %v4789_v52  ;;  %v5544_v58 = vpop.f32.mrf.mxu1 }
 0x696   :  { %5976 = vrcp.f32 %v3193_v24  ;;  %v3192_v18 = vadd.f32 1.0, %v5959_v62  ;;  %v4791_v0 = vmul.f32 -1.442695, %v3148_v57  ;;  %v3151_v20 = vadd.f32 %v5544_v58, %v2990_v6 }
 0x697   :  { %v5961_v31 = vpop.eup %5960  ;;  %5978 = vpow2.f32 %v4792_v22  ;;  %v3119_v47 = vpop.f32.mrf.mxu1 }
 0x698   :  { %5980 = vrcp.f32 %v3192_v18  ;;  %v3195_v46 = vadd.f32 1.0, %v5961_v31  ;;  %v3150_v3 = vadd.f32 %v3119_v47, %v2989_v17 }
 0x699   :  { %v5963_v1 = vpop.eup %5962  ;;  %5982 = vpow2.f32 %v4791_v0  ;;  %v5547_v21 = vpop.f32.mrf.mxu1 }
 0x69a   :  { %5984 = vrcp.f32 %v3195_v46  ;;  %v3194_v11 = vadd.f32 1.0, %v5963_v1  ;;  %v3153_v8 = vadd.f32 %v5547_v21, %v2992_v7 }
 0x69b   :  { %v5965_v23 = vpop.eup %5964  ;;  %5986 = vtanh.f32 %v3151_v20  ;;  %v3129_v5 = vpop.f32.mrf.mxu1 }
 0x69c   :  { %5988 = vrcp.f32 %v3194_v11  ;;  %v3197_v10 = vadd.f32 1.0, %v5965_v23  ;;  %v3152_v48 = vadd.f32 %v3129_v5, %v2991_v50 }
 0x69d   :  { %v5967_v12 = vpop.eup %5966  ;;  %5990 = vtanh.f32 %v3150_v3 }
 0x69e   :  { %5992 = vrcp.f32 %v3197_v10  ;;  %v3196_v13 = vadd.f32 1.0, %v5967_v12  ;;  %v3260_v12 = vld [vmem:[#allocation2 + $0x328] sm:$0xff] }
 0x69f   :  { %v5969_v27 = vpop.eup %5968  ;;  %5994 = vtanh.f32 %v3153_v8 }
 0x6a0   :  { %v5971_v15 = vpop.eup %5970  ;;  %5996 = vrcp.f32 %v3196_v13 }
 0x6a1   :  { %v5973_v16 = vpop.eup %5972  ;;  %5998 = vtanh.f32 %v3152_v48  ;;  %v3199_v55 = vadd.f32 1.0, %v5971_v15 }
 0x6a2   :  { %v5975_v29 = vpop.eup %5974 }
 0x6a3   :  { %v5977_v63 = vpop.eup %5976  ;;  %v3198_v54 = vadd.f32 1.0, %v5975_v29  ;;  %6000 = vrcp.f32 %v3199_v55 }
 0x6a4   :  { %v5979_v30 = vpop.eup %5978 }
 0x6a5   :  { %v5981_v53 = vpop.eup %5980  ;;  %v3201_v62 = vadd.f32 1.0, %v5979_v30 }
 0x6a6   :  { %v5983_v32 = vpop.eup %5982 }
 0x6a7   :  { %v5985_v51 = vpop.eup %5984  ;;  %v3200_v31 = vadd.f32 1.0, %v5983_v32 }
 0x6a8   :  { %v5987_v28 = vpop.eup %5986  ;;  %v3231_v49 = vmul.f32 %v5985_v51, %v7499_v4  ;;  %v3261_v51 = vld [vmem:[#allocation2 + $0x330] sm:$0xff] }
 0x6a9   :  { %v5989_v59 = vpop.eup %5988  ;;  %v3235_v52 = vmul.f32 %v5987_v28, %v5969_v27  ;;  %v3259_v27 = vld [vmem:[#allocation2 + $0x320] sm:$0xff] }
 0x6aa   :  { %v5991_v61 = vpop.eup %5990  ;;  %v3230_v56 = vmul.f32 %v5989_v59, %v7502_v9  ;;  %v3264_v59 = vld [vmem:[#allocation2 + $0x348] sm:$0xff] }
 0x6ab   :  { %v5993_v25 = vpop.eup %5992  ;;  %v7551_v24 = vadd.f32 %v3235_v52, %v3231_v49  ;;  %v3234_v22 = vmul.f32 %v5991_v61, %v5973_v16 }
 0x6ac   :  { %v5995_v57 = vpop.eup %5994  ;;  %v3233_v58 = vmul.f32 %v5993_v25, %v7506_v19  ;;  %v3263_v25 = vld [vmem:[#allocation2 + $0x340] sm:$0xff] }
 0x6ad   :  { %v5997_v18 = vpop.eup %5996  ;;  %v7554_v0 = vadd.f32 %v3234_v22, %v3230_v56  ;;  %v3237_v6 = vmul.f32 %v5995_v57, %v5977_v63  ;;  %6002 = vtanh.f32 %v7551_v24  ;;  %v3262_v63 = vld [vmem:[#allocation2 + $0x338] sm:$0xff] }
 0x6ae   :  { %v5999_v4 = vpop.eup %5998  ;;  %6004 = vrcp.f32 %v3198_v54  ;;  %v3232_v9 = vmul.f32 %v5997_v18, %v7509_v14 }
 0x6af   :  { %v7558_v20 = vadd.f32 %v3237_v6, %v3233_v58  ;;  %v3236_v47 = vmul.f32 %v5999_v4, %v5981_v53  ;;  %6006 = vtanh.f32 %v7554_v0  ;;  %v3266_v6 = vld [vmem:[#allocation2 + $0x358] sm:$0xff] }
 0x6b0   :  { %6008 = vrcp.f32 %v3201_v62  ;;  %v6001_v19 = vpop.eup %6000 }
 0x6b1   :  { %v7561_v46 = vadd.f32 %v3236_v47, %v3232_v9  ;;  %6010 = vtanh.f32 %v7558_v20 }
 0x6b2   :  { %6012 = vrcp.f32 %v3200_v31 }
 0x6b3   :  { %6014 = vtanh.f32 %v7561_v46 }
 0x6ba   :  { %v6003_v17 = vpop.eup %6002 }
 0x6bb   :  { %v6005_v1 = vpop.eup %6004  ;;  %v3247_v3 = vmul.f32 %v6003_v17, %v6001_v19  ;;  %v3265_v17 = vld [vmem:[#allocation2 + $0x350] sm:$0xff] }
 0x6bc   :  { %v6007_v21 = vpop.eup %6006 }
 0x6bd   :  { %v6009_v11 = vpop.eup %6008  ;;  %3252 = vst.msk [vmem:[#allocation3 + $0xa8] sm:$0xff] %vm353_vm3, %v3247_v3  ;;  %v3246_v14 = vmul.f32 %v6007_v21, %v6005_v1 }
 0x6be   :  { %v6011_v7 = vpop.eup %6010 }
 0x6bf   :  { %v6013_v23 = vpop.eup %6012  ;;  %v3249_v8 = vmul.f32 %v6011_v7, %v6009_v11  ;;  %3251 = vst.msk [vmem:[#allocation3 + $0xa0] sm:$0xff] %vm353_vm3, %v3246_v14 }
 0x6c0   :  { %v6015_v5 = vpop.eup %6014 }
 0x6c1   :  { %3254 = vst.msk [vmem:[#allocation3 + $0xb8] sm:$0xff] %vm353_vm3, %v3249_v8  ;;  %5548 = vmatprep.subr.mxu0 %v3249_v8  ;;  %v3248_v10 = vmul.f32 %v6015_v5, %v6013_v23  ;;  %v3268_v5 = vld [vmem:[#allocation2 + $0x368] sm:$0xff] }
 0x6c2   :  { %5549 = vmatpush3.msra.mxu0 %v3249_v8 }
 0x6c3   :  { %3253 = vst.msk [vmem:[#allocation3 + $0xb0] sm:$0xff] %vm353_vm3, %v3248_v10  ;;  %5550 = vmatprep.subr.mxu0 %v3248_v10 }
 0x6c4   :  { %5551 = vmatpush3.msra.mxu0 %v3248_v10 }
 0x6c5   :  { %5552 = vmatprep.subr.mxu0 %v3247_v3 }
 0x6c6   :  { %5553 = vmatpush3.msra.mxu0 %v3247_v3 }
 0x6c7   :  { %5554 = vmatprep.subr.mxu0 %v3246_v14 }
 0x6c8   :  { %5555 = vmatpush3.msra.mxu0 %v3246_v14 }
 0x6c9   :  { %5557 = vmatmul.mubr.msk.f32.vlgmr.msra.gmra.mxu0 %vm1555_vm2, %v7388_v60  ;;  %v3256_v60 = vld [vmem:[#allocation2 + $0x308] sm:$0xff] }
 0x6ca   :  { %5559 = vmatprep.mubr.msk.f32.mxu0 %vm1555_vm2, %v7395_v2 }
 0x6cd   :  { %5560 = vmatmul.mubr.msk.f32.gmra.mxu0 %vm1555_vm2, %v7402_v33 }
 0x6ce   :  { %5562 = vmatprep.mubr.msk.f32.mxu0 %vm1555_vm2, %v7409_v34  ;;  %v3255_v34 = vld [vmem:[#allocation2 + $0x300] sm:$0xff] }
 0x6d1   :  { %5563 = vmatmul.mubr.msk.f32.gmra.mxu0 %vm1555_vm2, %v7416_v26 }
 0x6d2   :  { %5565 = vmatprep.mubr.msk.f32.mxu0 %vm1555_vm2, %v7423_v36 }
 0x6d5   :  { %5566 = vmatmul.mubr.msk.f32.gmra.mxu0 %vm1555_vm2, %v7430_v37 }
 0x6d6   :  { %5568 = vmatprep.mubr.msk.f32.mxu0 %vm1555_vm2, %v7437_v38  ;;  %v3258_v38 = vld [vmem:[#allocation2 + $0x318] sm:$0xff] }
 0x6d9   :  { %5569 = vmatmul.mubr.msk.f32.gmra.mxu0 %vm1555_vm2, %v7444_v39 }
 0x6da   :  { %5571 = vmatprep.mubr.msk.f32.mxu0 %vm1555_vm2, %v7451_v41 }
 0x6dd   :  { %5572 = vmatmul.mubr.msk.f32.gmra.mxu0 %vm1555_vm2, %v7458_v42 }
 0x6de   :  { %5574 = vmatprep.mubr.msk.f32.mxu0 %vm1555_vm2, %v7465_v35  ;;  %v3257_v35 = vld [vmem:[#allocation2 + $0x310] sm:$0xff] }
 0x6e1   :  { %5575 = vmatmul.mubr.msk.f32.gmra.mxu0 %vm1555_vm2, %v7472_v43 }
 0x6e2   :  { %5577 = vmatprep.mubr.msk.f32.mxu0 %vm1555_vm2, %v7479_v44 }
 0x6e5   :  { %5578 = vmatmul.mubr.msk.f32.gmra.mxu0 %vm1555_vm2, %v7486_v45 }
 0x789   :  { %v5558_v2 = vpop.f32.mrf.mxu0 }
 0x78a   :  { %v3417_v33 = vadd.f32 %v5558_v2, %v3256_v60 }
 0x78b   :  { %v3337_v26 = vpop.f32.mrf.mxu0 }
 0x78c   :  { %v4810_v36 = vmul.f32 -1.442695, %v3417_v33  ;;  %v3416_v37 = vadd.f32 %v3337_v26, %v3255_v34  ;;  %v3267_v34 = vld [vmem:[#allocation2 + $0x360] sm:$0xff] }
 0x78d   :  { %v5561_v39 = vpop.f32.mrf.mxu0 }
 0x78e   :  { %6016 = vpow2.f32 %v4810_v36  ;;  %v4809_v41 = vmul.f32 -1.442695, %v3416_v37  ;;  %v3419_v42 = vadd.f32 %v5561_v39, %v3258_v38  ;;  %v3270_v39 = vld [vmem:[#allocation2 + $0x378] sm:$0xff] }
 0x78f   :  { %v3347_v43 = vpop.f32.mrf.mxu0 }
 0x790   :  { %6018 = vpow2.f32 %v4809_v41  ;;  %v4812_v50 = vmul.f32 -1.442695, %v3419_v42  ;;  %v3418_v44 = vadd.f32 %v3347_v43, %v3257_v35 }
 0x791   :  { %v5564_v48 = vpop.f32.mrf.mxu0 }
 0x792   :  { %6020 = vpow2.f32 %v4812_v50  ;;  %v4811_v45 = vmul.f32 -1.442695, %v3418_v44  ;;  %v3421_v13 = vadd.f32 %v5564_v48, %v3260_v12  ;;  %v3269_v50 = vld [vmem:[#allocation2 + $0x370] sm:$0xff] }
 0x793   :  { %v3357_v15 = vpop.f32.mrf.mxu0 }
 0x794   :  { %6022 = vpow2.f32 %v4811_v45  ;;  %v4814_v16 = vmul.f32 -1.442695, %v3421_v13  ;;  %v3420_v29 = vadd.f32 %v3357_v15, %v3259_v27 }
 0x795   :  { %v5567_v30 = vpop.f32.mrf.mxu0 }
 0x796   :  { %6024 = vpow2.f32 %v4814_v16  ;;  %v4813_v53 = vmul.f32 -1.442695, %v3420_v29  ;;  %v3423_v32 = vadd.f32 %v5567_v30, %v3262_v63 }
 0x797   :  { %v3367_v28 = vpop.f32.mrf.mxu0 }
 0x798   :  { %6026 = vpow2.f32 %v4813_v53  ;;  %v4816_v55 = vmul.f32 -1.442695, %v3423_v32  ;;  %v3422_v49 = vadd.f32 %v3367_v28, %v3261_v51 }
 0x799   :  { %v5570_v52 = vpop.f32.mrf.mxu0 }
 0x79a   :  { %6028 = vpow2.f32 %v4816_v55  ;;  %v4815_v61 = vmul.f32 -1.442695, %v3422_v49  ;;  %v3425_v54 = vadd.f32 %v5570_v52, %v3264_v59 }
 0x79b   :  { %v6017_v56 = vpop.eup %6016  ;;  %v3377_v22 = vpop.f32.mrf.mxu0 }
 0x79c   :  { %v3469_v57 = vadd.f32 1.0, %v6017_v56  ;;  %6030 = vpow2.f32 %v4815_v61  ;;  %v4818_v62 = vmul.f32 -1.442695, %v3425_v54  ;;  %v3424_v58 = vadd.f32 %v3377_v22, %v3263_v25 }
 0x79d   :  { %v6019_v18 = vpop.eup %6018  ;;  %v5573_v4 = vpop.f32.mrf.mxu0 }
 0x79e   :  { %6032 = vrcp.f32 %v3469_v57  ;;  %v3468_v31 = vadd.f32 1.0, %v6019_v18  ;;  %v4817_v9 = vmul.f32 -1.442695, %v3424_v58  ;;  %v3427_v47 = vadd.f32 %v5573_v4, %v3266_v6 }
 0x79f   :  { %v6021_v19 = vpop.eup %6020  ;;  %6034 = vpow2.f32 %v4818_v62  ;;  %v3387_v1 = vpop.f32.mrf.mxu0 }
 0x7a0   :  { %6036 = vrcp.f32 %v3468_v31  ;;  %v3471_v3 = vadd.f32 1.0, %v6021_v19  ;;  %v4820_v21 = vmul.f32 -1.442695, %v3427_v47  ;;  %v3426_v11 = vadd.f32 %v3387_v1, %v3265_v17 }
 0x7a1   :  { %v6023_v14 = vpop.eup %6022  ;;  %6038 = vpow2.f32 %v4817_v9  ;;  %v5576_v7 = vpop.f32.mrf.mxu0 }
 0x7a2   :  { %6040 = vrcp.f32 %v3471_v3  ;;  %v3470_v23 = vadd.f32 1.0, %v6023_v14  ;;  %v4819_v8 = vmul.f32 -1.442695, %v3426_v11  ;;  %v3429_v60 = vadd.f32 %v5576_v7, %v3268_v5  ;;  %v6194_v5 = vld [vmem:[%s8057_s2 + $0x8] sm:$0xff] }
 0x7a3   :  { %v6025_v10 = vpop.eup %6024  ;;  %6042 = vpow2.f32 %v4820_v21  ;;  %v3397_v2 = vpop.f32.mrf.mxu0 }
 0x7a4   :  { %6044 = vrcp.f32 %v3470_v23  ;;  %v3473_v33 = vadd.f32 1.0, %v6025_v10  ;;  %v3428_v36 = vadd.f32 %v3397_v2, %v3267_v34  ;;  %v6195_v10 = vld [vmem:[%s8057_s2 + $0x10] sm:$0xff]  ;;  %v6197_v2 = vld [vmem:[%s8057_s2 + $0x20] sm:$0xff] }
 0x7a5   :  { %v6027_v26 = vpop.eup %6026  ;;  %6046 = vpow2.f32 %v4819_v8  ;;  %v5579_v37 = vpop.f32.mrf.mxu0  ;;  %v6199_v34 = vld [vmem:[%s8057_s2 + $0x30] sm:$0xff] }
 0x7a6   :  { %6048 = vrcp.f32 %v3473_v33  ;;  %v3472_v38 = vadd.f32 1.0, %v6027_v26  ;;  %v3431_v42 = vadd.f32 %v5579_v37, %v3270_v39  ;;  %v6198_v33 = vld [vmem:[%s8057_s2 + $0x28] sm:$0xff]  ;;  %v6200_v26 = vld [vmem:[%s8057_s2 + $0x38] sm:$0xff] }
 0x7a7   :  { %v6029_v41 = vpop.eup %6028  ;;  %6050 = vtanh.f32 %v3429_v60  ;;  %v3407_v35 = vpop.f32.mrf.mxu0  ;;  %v6196_v60 = vld [vmem:[%s8057_s2 + $0x18] sm:$0xff]  ;;  %v6202_v37 = vld [vmem:[%s8057_s2 + $0x48] sm:$0xff] }
 0x7a8   :  { %6052 = vrcp.f32 %v3472_v38  ;;  %v3475_v43 = vadd.f32 1.0, %v6029_v41  ;;  %v3430_v12 = vadd.f32 %v3407_v35, %v3269_v50  ;;  %v6203_v38 = vld [vmem:[%s8057_s2 + $0x50] sm:$0xff]  ;;  %v6204_v39 = vld [vmem:[%s8057_s2 + $0x58] sm:$0xff]  ;;  %v6205_v41 = vld [vmem:[%s8057_s2 + $0x60] sm:$0xff]  ;;  %v7679_v50 = vpop.permute.xlu0 %3849 }
 0x7a9   :  { %v6031_v44 = vpop.eup %6030  ;;  %6054 = vtanh.f32 %v3428_v36  ;;  %v6201_v36 = vld [vmem:[%s8057_s2 + $0x40] sm:$0xff]  ;;  %v6207_v35 = vld [vmem:[%s8057_s2 + $0x70] sm:$0xff] }
 0x7aa   :  { %6056 = vrcp.f32 %v3475_v43  ;;  %v3474_v48 = vadd.f32 1.0, %v6031_v44  ;;  %v6208_v43 = vld [vmem:[%s8057_s2 + $0x78] sm:$0xff]  ;;  %v7681_v44 = vpop.permute.xlu1 %3853 }
 0x7ab   :  { %v6033_v45 = vpop.eup %6032  ;;  %6058 = vtanh.f32 %v3431_v42  ;;  %v6206_v42 = vld [vmem:[%s8057_s2 + $0x68] sm:$0xff] }
 0x7ac   :  { %v6035_v13 = vpop.eup %6034  ;;  %6060 = vrcp.f32 %v3474_v48 }
 0x7ad   :  { %v6037_v27 = vpop.eup %6036  ;;  %6062 = vtanh.f32 %v3430_v12  ;;  %v3477_v51 = vadd.f32 1.0, %v6035_v13  ;;  %v7683_v12 = vpop.permute.xlu0 %3868 }
 0x7ae   :  { %v6039_v15 = vpop.eup %6038  ;;  %v7685_v48 = vpop.permute.xlu1 %3872 }
 0x7af   :  { %v6041_v16 = vpop.eup %6040  ;;  %v3476_v52 = vadd.f32 1.0, %v6039_v15  ;;  %6064 = vrcp.f32 %v3477_v51  ;;  %v3533_v51 = vld [vmem:[#allocation2 + $0x380] sm:$0xff] }
 0x7b0   :  { %v6043_v29 = vpop.eup %6042 }
 0x7b1   :  { %v6045_v63 = vpop.eup %6044  ;;  %v3479_v57 = vadd.f32 1.0, %v6043_v29 }
 0x7b2   :  { %v6047_v30 = vpop.eup %6046  ;;  %v7689_v13 = vpop.permute.xlu1 %3891 }
 0x7b3   :  { %v6049_v53 = vpop.eup %6048  ;;  %v3478_v4 = vadd.f32 1.0, %v6047_v30 }
 0x7b4   :  { %v6051_v32 = vpop.eup %6050  ;;  %v3509_v28 = vmul.f32 %v6049_v53, %v7551_v24 }
 0x7b5   :  { %v6053_v55 = vpop.eup %6052  ;;  %v3513_v49 = vmul.f32 %v6051_v32, %v6033_v45  ;;  %v7687_v45 = vpop.permute.xlu0 %3887 }
 0x7b6   :  { %v6055_v59 = vpop.eup %6054  ;;  %v3508_v61 = vmul.f32 %v6053_v55, %v7554_v0  ;;  %v7693_v15 = vpop.permute.xlu1 %3910 }
 0x7b7   :  { %v6057_v54 = vpop.eup %6056  ;;  %v7601_v56 = vadd.f32 %v3513_v49, %v3509_v28  ;;  %v3512_v25 = vmul.f32 %v6055_v59, %v6037_v27  ;;  %v3536_v59 = vld [vmem:[#allocation2 + $0x398] sm:$0xff] }
 0x7b8   :  { %v6059_v22 = vpop.eup %6058  ;;  %v3511_v62 = vmul.f32 %v6057_v54, %v7558_v20 }
 0x7b9   :  { %v6061_v58 = vpop.eup %6060  ;;  %v7604_v18 = vadd.f32 %v3512_v25, %v3508_v61  ;;  %v3515_v6 = vmul.f32 %v6059_v22, %v6041_v16  ;;  %6066 = vtanh.f32 %v7601_v56  ;;  %v7691_v27 = vpop.permute.xlu0 %3906  ;;  %v3535_v22 = vld [vmem:[#allocation2 + $0x390] sm:$0xff] }
 0x7ba   :  { %v6063_v24 = vpop.eup %6062  ;;  %6068 = vrcp.f32 %v3476_v52  ;;  %v3510_v0 = vmul.f32 %v6061_v58, %v7561_v46  ;;  %v7697_v29 = vpop.permute.xlu1 %3929 }
 0x7bb   :  { %v7608_v31 = vadd.f32 %v3515_v6, %v3511_v62  ;;  %v3514_v9 = vmul.f32 %v6063_v24, %v6045_v63  ;;  %6070 = vtanh.f32 %v7604_v18  ;;  %v3534_v63 = vld [vmem:[#allocation2 + $0x388] sm:$0xff] }
 0x7bc   :  { %6072 = vrcp.f32 %v3479_v57  ;;  %v6065_v20 = vpop.eup %6064  ;;  %v3538_v24 = vld [vmem:[#allocation2 + $0x3a8] sm:$0xff] }
 0x7bd   :  { %v7611_v47 = vadd.f32 %v3514_v9, %v3510_v0  ;;  %6074 = vtanh.f32 %v7608_v31  ;;  %v7695_v16 = vpop.permute.xlu0 %3925 }
 0x7be   :  { %6076 = vrcp.f32 %v3478_v4  ;;  %v7701_v61 = vpop.permute.xlu1 %3948 }
 0x7bf   :  { %6078 = vtanh.f32 %v7611_v47 }
 0x7c1   :  { %v7699_v53 = vpop.permute.xlu0 %3944 }
 0x7c5   :  { %v7703_v62 = vpop.permute.xlu0 %3963 }
 0x7c6   :  { %v6067_v19 = vpop.eup %6066 }
 0x7c7   :  { %v6069_v17 = vpop.eup %6068  ;;  %v3525_v1 = vmul.f32 %v6067_v19, %v6065_v20  ;;  %v3537_v20 = vld [vmem:[#allocation2 + $0x3a0] sm:$0xff] }
 0x7c8   :  { %v6071_v3 = vpop.eup %6070 }
 0x7c9   :  { %v6073_v21 = vpop.eup %6072  ;;  %3530 = vst.msk [vmem:[#allocation3 + $0xc8] sm:$0xff] %vm353_vm3, %v3525_v1  ;;  %v3524_v46 = vmul.f32 %v6071_v3, %v6069_v17  ;;  %v7705_v17 = vpop.permute.xlu1 %3967 }
 0x7ca   :  { %v6075_v11 = vpop.eup %6074 }
 0x7cb   :  { %v6077_v14 = vpop.eup %6076  ;;  %v3527_v7 = vmul.f32 %v6075_v11, %v6073_v21  ;;  %3529 = vst.msk [vmem:[#allocation3 + $0xc0] sm:$0xff] %vm353_vm3, %v3524_v46  ;;  %v3540_v21 = vld [vmem:[#allocation2 + $0x3b8] sm:$0xff]  ;;  %v7707_v11 = vpop.permute.xlu0 %3982 }
 0x7cc   :  { %v6079_v23 = vpop.eup %6078 }
 0x7cd   :  { %3532 = vst.msk [vmem:[#allocation3 + $0xd8] sm:$0xff] %vm353_vm3, %v3527_v7  ;;  %5580 = vmatprep.subr.mxu1 %v3527_v7  ;;  %v3526_v8 = vmul.f32 %v6079_v23, %v6077_v14  ;;  %v3539_v23 = vld [vmem:[#allocation2 + $0x3b0] sm:$0xff] }
 0x7ce   :  { %5581 = vmatpush3.msra.mxu1 %v3527_v7 }
 0x7cf   :  { %3531 = vst.msk [vmem:[#allocation3 + $0xd0] sm:$0xff] %vm353_vm3, %v3526_v8  ;;  %5582 = vmatprep.subr.mxu1 %v3526_v8 }
 0x7d0   :  { %5583 = vmatpush3.msra.mxu1 %v3526_v8 }
 0x7d1   :  { %5584 = vmatprep.subr.mxu1 %v3525_v1 }
 0x7d2   :  { %5585 = vmatpush3.msra.mxu1 %v3525_v1 }
 0x7d3   :  { %5586 = vmatprep.subr.mxu1 %v3524_v46 }
 0x7d4   :  { %5587 = vmatpush3.msra.mxu1 %v3524_v46 }
 0x7d5   :  { %5589 = vmatmul.mubr.msk.f32.vlgmr.msra.gmra.mxu1 %vm1555_vm2, %v6194_v5 }
 0x7d6   :  { %5591 = vmatprep.mubr.msk.f32.mxu1 %vm1555_vm2, %v6195_v10 }
 0x7d9   :  { %5592 = vmatmul.mubr.msk.f32.gmra.mxu1 %vm1555_vm2, %v6196_v60  ;;  %v3542_v60 = vld [vmem:[#allocation2 + $0x3c8] sm:$0xff] }
 0x7da   :  { %5594 = vmatprep.mubr.msk.f32.mxu1 %vm1555_vm2, %v6197_v2 }
 0x7dd   :  { %5595 = vmatmul.mubr.msk.f32.gmra.mxu1 %vm1555_vm2, %v6198_v33  ;;  %v7709_v33 = vpop.permute.xlu1 %3986 }
 0x7de   :  { %5597 = vmatprep.mubr.msk.f32.mxu1 %vm1555_vm2, %v6199_v34 }
 0x7e1   :  { %5598 = vmatmul.mubr.msk.f32.gmra.mxu1 %vm1555_vm2, %v6200_v26 }
 0x7e2   :  { %5600 = vmatprep.mubr.msk.f32.mxu1 %vm1555_vm2, %v6201_v36 }
 0x7e5   :  { %5601 = vmatmul.mubr.msk.f32.gmra.mxu1 %vm1555_vm2, %v6202_v37  ;;  %v3541_v37 = vld [vmem:[#allocation2 + $0x3c0] sm:$0xff] }
 0x7e6   :  { %5603 = vmatprep.mubr.msk.f32.mxu1 %vm1555_vm2, %v6203_v38 }
 0x7e9   :  { %5604 = vmatmul.mubr.msk.f32.gmra.mxu1 %vm1555_vm2, %v6204_v39  ;;  %v7711_v39 = vpop.permute.xlu0 %3857 }
 0x7ea   :  { %5606 = vmatprep.mubr.msk.f32.mxu1 %vm1555_vm2, %v6205_v41 }
 0x7ed   :  { %5607 = vmatmul.mubr.msk.f32.gmra.mxu1 %vm1555_vm2, %v6206_v42 }
 0x7ee   :  { %5609 = vmatprep.mubr.msk.f32.mxu1 %vm1555_vm2, %v6207_v35 }
 0x7f1   :  { %5610 = vmatmul.mubr.msk.f32.gmra.mxu1 %vm1555_vm2, %v6208_v43 }
 0x895   :  { %v5590_v30 = vpop.f32.mrf.mxu1 }
 0x896   :  { %v3695_v32 = vadd.f32 %v5590_v30, %v3534_v63  ;;  %v3544_v63 = vld [vmem:[#allocation2 + $0x3d8] sm:$0xff] }
 0x897   :  { %v3615_v28 = vpop.f32.mrf.mxu1 }
 0x898   :  { %v4838_v55 = vmul.f32 -1.442695, %v3695_v32  ;;  %v3694_v49 = vadd.f32 %v3615_v28, %v3533_v51 }
 0x899   :  { %v5593_v52 = vpop.f32.mrf.mxu1 }
 0x89a   :  { %6080 = vpow2.f32 %v4838_v55  ;;  %v4837_v54 = vmul.f32 -1.442695, %v3694_v49  ;;  %v3697_v25 = vadd.f32 %v5593_v52, %v3536_v59  ;;  %v3543_v49 = vld [vmem:[#allocation2 + $0x3d0] sm:$0xff]  ;;  %v7713_v52 = vpop.permute.xlu1 %3876 }
 0x89b   :  { %v3625_v57 = vpop.f32.mrf.mxu1 }
 0x89c   :  { %6082 = vpow2.f32 %v4837_v54  ;;  %v4840_v58 = vmul.f32 -1.442695, %v3697_v25  ;;  %v3696_v6 = vadd.f32 %v3625_v57, %v3535_v22 }
 0x89d   :  { %v5596_v4 = vpop.f32.mrf.mxu1 }
 0x89e   :  { %6084 = vpow2.f32 %v4840_v58  ;;  %v4839_v0 = vmul.f32 -1.442695, %v3696_v6  ;;  %v3699_v9 = vadd.f32 %v5596_v4, %v3538_v24  ;;  %v7715_v6 = vpop.permute.xlu0 %3895 }
 0x89f   :  { %v3635_v19 = vpop.f32.mrf.mxu1 }
 0x8a0   :  { %6086 = vpow2.f32 %v4839_v0  ;;  %v4842_v1 = vmul.f32 -1.442695, %v3699_v9  ;;  %v3698_v3 = vadd.f32 %v3635_v19, %v3537_v20  ;;  %v3546_v0 = vld [vmem:[#allocation2 + $0x3e8] sm:$0xff] }
 0x8a1   :  { %v5599_v46 = vpop.f32.mrf.mxu1 }
 0x8a2   :  { %6088 = vpow2.f32 %v4842_v1  ;;  %v4841_v14 = vmul.f32 -1.442695, %v3698_v3  ;;  %v3701_v7 = vadd.f32 %v5599_v46, %v3540_v21  ;;  %v3545_v3 = vld [vmem:[#allocation2 + $0x3e0] sm:$0xff] }
 0x8a3   :  { %v3645_v8 = vpop.f32.mrf.mxu1 }
 0x8a4   :  { %6090 = vpow2.f32 %v4841_v14  ;;  %v4844_v5 = vmul.f32 -1.442695, %v3701_v7  ;;  %v3700_v10 = vadd.f32 %v3645_v8, %v3539_v23  ;;  %v7717_v7 = vpop.permute.xlu1 %3914  ;;  %v3548_v8 = vld [vmem:[#allocation2 + $0x3f8] sm:$0xff] }
 0x8a5   :  { %v5602_v2 = vpop.f32.mrf.mxu1 }
 0x8a6   :  { %6092 = vpow2.f32 %v4844_v5  ;;  %v4843_v34 = vmul.f32 -1.442695, %v3700_v10  ;;  %v3703_v26 = vadd.f32 %v5602_v2, %v3542_v60  ;;  %v7719_v2 = vpop.permute.xlu0 %3933 }
 0x8a7   :  { %v6081_v36 = vpop.eup %6080  ;;  %v3655_v38 = vpop.f32.mrf.mxu1 }
 0x8a8   :  { %v3747_v41 = vadd.f32 1.0, %v6081_v36  ;;  %6094 = vpow2.f32 %v4843_v34  ;;  %v4846_v42 = vmul.f32 -1.442695, %v3703_v26  ;;  %v3702_v35 = vadd.f32 %v3655_v38, %v3541_v37  ;;  %v3547_v26 = vld [vmem:[#allocation2 + $0x3f0] sm:$0xff] }
 0x8a9   :  { %v6083_v43 = vpop.eup %6082  ;;  %v5605_v30 = vpop.f32.mrf.mxu1 }
 0x8aa   :  { %6096 = vrcp.f32 %v3747_v41  ;;  %v3746_v32 = vadd.f32 1.0, %v6083_v43  ;;  %v4845_v51 = vmul.f32 -1.442695, %v3702_v35  ;;  %v3705_v28 = vadd.f32 %v5605_v30, %v3544_v63  ;;  %v7721_v35 = vpop.permute.xlu1 %3952  ;;  %v7723_v30 = vpop.permute.xlu0 %3971 }
 0x8ab   :  { %v6085_v55 = vpop.eup %6084  ;;  %6098 = vpow2.f32 %v4846_v42  ;;  %v3665_v59 = vpop.f32.mrf.mxu1 }
 0x8ac   :  { %6100 = vrcp.f32 %v3746_v32  ;;  %v3749_v54 = vadd.f32 1.0, %v6085_v55  ;;  %v4848_v25 = vmul.f32 -1.442695, %v3705_v28  ;;  %v3704_v22 = vadd.f32 %v3665_v59, %v3543_v49  ;;  %v7725_v32 = vld [vmem:[#allocation3 + $0x8] sm:$0xff]  ;;  %v7727_v28 = vld [vmem:[#allocation3] sm:$0xff]  ;;  %v7729_v49 = vld [vmem:[#allocation3 + $0x10] sm:$0xff] }
 0x8ad   :  { %v6087_v57 = vpop.eup %6086  ;;  %6102 = vpow2.f32 %v4845_v51  ;;  %v5608_v58 = vpop.f32.mrf.mxu1 }
 0x8ae   :  { %6104 = vrcp.f32 %v3749_v54  ;;  %v3748_v24 = vadd.f32 1.0, %v6087_v57  ;;  %v4847_v4 = vmul.f32 -1.442695, %v3704_v22  ;;  %v3707_v20 = vadd.f32 %v5608_v58, %v3546_v0  ;;  %v7731_v54 = vld [vmem:[#allocation3 + $0x20] sm:$0xff]  ;;  %v7735_v57 = vpop.permute.xlu1 %3990 }
 0x8af   :  { %v6089_v9 = vpop.eup %6088  ;;  %6106 = vpow2.f32 %v4848_v25  ;;  %v3675_v19 = vpop.f32.mrf.mxu1  ;;  %8068 = vst [vmem:[#allocation4_spill] sm:$0xff] %v7731_v54  ;;  %v3997_v25 = vmul.f32 %v7681_v44, %v7725_v32  ;;  %v3996_v58 = vmul.f32 %v7679_v50, %v7727_v28  ;;  %v3998_v0 = vmul.f32 %v7711_v39, %v7729_v49 }
 0x8b0   :  { %6108 = vrcp.f32 %v3748_v24  ;;  %v3751_v1 = vadd.f32 1.0, %v6089_v9  ;;  %v3706_v46 = vadd.f32 %v3675_v19, %v3545_v3  ;;  %v7744_v3 = vld [vmem:[#allocation3 + $0x28] sm:$0xff]  ;;  %v4000_v44 = vmul.f32 %v7683_v12, %v7731_v54 }
 0x8b1   :  { %v6091_v21 = vpop.eup %6090  ;;  %6110 = vpow2.f32 %v4847_v4  ;;  %v5611_v14 = vpop.f32.mrf.mxu1  ;;  %v7739_v4 = vld [vmem:[#allocation3 + $0x18] sm:$0xff]  ;;  %v4029_v50 = vsel %vm353_vm3, %v3997_v25, 0.0  ;;  %v4001_v12 = vmul.f32 %v7685_v48, %v7744_v3 }
 0x8b2   :  { %6112 = vrcp.f32 %v3751_v1  ;;  %v3750_v23 = vadd.f32 1.0, %v6091_v21  ;;  %v3709_v10 = vadd.f32 %v5611_v14, %v3548_v8 }
 0x8b3   :  { %v6093_v5 = vpop.eup %6092  ;;  %6114 = vtanh.f32 %v3707_v20  ;;  %v3685_v60 = vpop.f32.mrf.mxu1 }
 0x8b4   :  { %6116 = vrcp.f32 %v3750_v23  ;;  %v3753_v34 = vadd.f32 1.0, %v6093_v5  ;;  %v3708_v37 = vadd.f32 %v3685_v60, %v3547_v26  ;;  %v3862_v20 = vpop.permute.xlu0 %3861  ;;  %v7750_v5 = vld [vmem:[#allocation3 + $0x30] sm:$0xff]  ;;  %v4031_v26 = vsel %vm353_vm3, %v3998_v0, 0.0 }
 0x8b5   :  { %v6095_v36 = vpop.eup %6094  ;;  %6118 = vtanh.f32 %v3706_v46  ;;  %v7753_v39 = vmul.f32 %v3862_v20, %v7739_v4 }
 0x8b6   :  { %6120 = vrcp.f32 %v3753_v34  ;;  %v3752_v38 = vadd.f32 1.0, %v6095_v36 }
 0x8b7   :  { %v6097_v41 = vpop.eup %6096  ;;  %6122 = vtanh.f32 %v3709_v10 }
 0x8b8   :  { %v6099_v42 = vpop.eup %6098  ;;  %6124 = vrcp.f32 %v3752_v38 }
 0x8b9   :  { %v6101_v43 = vpop.eup %6100  ;;  %6126 = vtanh.f32 %v3708_v37  ;;  %v3755_v19 = vadd.f32 1.0, %v6099_v42  ;;  %v3881_v37 = vpop.permute.xlu1 %3880 }
 0x8ba   :  { %v6103_v63 = vpop.eup %6102 }
 0x8bb   :  { %v6105_v51 = vpop.eup %6104  ;;  %v3754_v23 = vadd.f32 1.0, %v6103_v63  ;;  %6128 = vrcp.f32 %v3755_v19 }
 0x8bc   :  { %v6107_v55 = vpop.eup %6106 }
 0x8bd   :  { %v6109_v59 = vpop.eup %6108  ;;  %v3757_v38 = vadd.f32 1.0, %v6107_v55 }
 0x8be   :  { %v6111_v22 = vpop.eup %6110 }
 0x8bf   :  { %v6113_v24 = vpop.eup %6112  ;;  %v3756_v0 = vadd.f32 1.0, %v6111_v22  ;;  %v7779_v22 = vld [vmem:[#allocation3 + $0xb0] sm:$0xff] }
 0x8c0   :  { %v6115_v9 = vpop.eup %6114  ;;  %v3787_v1 = vmul.f32 %v6113_v24, %v7601_v56  ;;  %v4028_v56 = vsel %vm353_vm3, %v3996_v58, 0.0  ;;  %v7761_v58 = vld [vmem:[#allocation3 + $0x38] sm:$0xff]  ;;  %v7765_v24 = vpop.permute.xlu0 %3899 }
 0x8c1   :  { %v6117_v21 = vpop.eup %6116  ;;  %v3791_v46 = vmul.f32 %v6115_v9, %v6097_v41  ;;  %v4041_v41 = vsel %vm353_vm3, %v4000_v44, 0.0  ;;  %v7768_v9 = vld [vmem:[#allocation3 + $0xa0] sm:$0xff] }
 0x8c2   :  { %v6119_v14 = vpop.eup %6118  ;;  %v3786_v8 = vmul.f32 %v6117_v21, %v7604_v18  ;;  %8069 = vst [vmem:[#allocation5_spill] sm:$0xff] %v7768_v9  ;;  %v7774_v44 = vld [vmem:[#allocation3 + $0x80] sm:$0xff]  ;;  %v7777_v21 = vld [vmem:[#allocation3 + $0xa8] sm:$0xff] }
 0x8c3   :  { %v6121_v10 = vpop.eup %6120  ;;  %v3795_v60 = vadd.f32 %v3791_v46, %v3787_v1  ;;  %v3790_v34 = vmul.f32 %v6119_v14, %v6101_v43  ;;  %v4002_v43 = vmul.f32 %v7713_v52, %v7750_v5  ;;  %v7770_v1 = vld [vmem:[#allocation3 + $0x40] sm:$0xff]  ;;  %8071 = vst [vmem:[#allocation7_spill] sm:$0xff] %v7774_v44  ;;  %v4042_v52 = vsel %vm353_vm3, %v4001_v12, 0.0  ;;  %8072 = vst [vmem:[#allocation8_spill] sm:$0xff] %v7777_v21  ;;  %v7799_v12 = vld [vmem:[#allocation3 + $0x90] sm:$0xff] }
 0x8c4   :  { %v6123_v36 = vpop.eup %6122  ;;  %v3789_v18 = vmul.f32 %v6121_v10, %v7608_v31  ;;  %v4030_v31 = vadd.f32 %v4029_v50, %v4028_v56  ;;  %8070 = vst [vmem:[#allocation6_spill] sm:$0xff] %v7770_v1  ;;  %v7784_v46 = vmul.f32 %v3881_v37, %v7761_v58  ;;  %v7792_v56 = vld [vmem:[#allocation3 + $0x88] sm:$0xff]  ;;  %v4016_v10 = vmul.f32 %v7699_v53, %v7768_v9  ;;  %v7859_v9 = vld [vmem:[#allocation3 + $0x78] sm:$0xff] }
 0x8c5   :  { %v6125_v42 = vpop.eup %6124  ;;  %6130 = vtanh.f32 %v3795_v60  ;;  %v3794_v63 = vadd.f32 %v3790_v34, %v3786_v8  ;;  %v3793_v25 = vmul.f32 %v6123_v36, %v6105_v51  ;;  %v7772_v51 = vld [vmem:[#allocation3 + $0x48] sm:$0xff]  ;;  %v7790_v8 = vld [vmem:[#allocation3 + $0x60] sm:$0xff]  ;;  %v4044_v60 = vsel %vm353_vm3, %v4002_v43, 0.0  ;;  %v7797_v34 = vpop.permute.xlu1 %3918  ;;  %v7803_v36 = vld [vmem:[#allocation3 + $0xd0] sm:$0xff] }
 0x8c6   :  { %v6127_v48 = vpop.eup %6126  ;;  %6132 = vrcp.f32 %v3754_v23  ;;  %v3788_v55 = vmul.f32 %v6125_v42, %v7611_v47  ;;  %v7781_v47 = vld [vmem:[#allocation3 + $0xc0] sm:$0xff]  ;;  %v7786_v50 = vadd.f32 %v4031_v26, %v4030_v31  ;;  %v7788_v23 = vld [vmem:[#allocation3 + $0x50] sm:$0xff]  ;;  %8074 = vst [vmem:[#allocation10_spill] sm:$0xff] %v7790_v8  ;;  %v7801_v26 = vld [vmem:[#allocation3 + $0xc8] sm:$0xff]  ;;  %v4004_v37 = vmul.f32 %v7687_v45, %v7770_v1 }
 0x8c7   :  { %6134 = vtanh.f32 %v3794_v63  ;;  %v3797_v20 = vadd.f32 %v3793_v25, %v3789_v18  ;;  %v3792_v19 = vmul.f32 %v6127_v48, %v6109_v59  ;;  %8073 = vst [vmem:[#allocation9_spill] sm:$0xff] %v7781_v47  ;;  %v4043_v59 = vadd.f32 %v4042_v52, %v4041_v41  ;;  %8075 = vst [vmem:[#allocation11_spill] sm:$0xff] %v7801_v26  ;;  %v7811_v18 = vld [vmem:[#allocation3 + $0x68] sm:$0xff]  ;;  %v7813_v41 = vld [vmem:[#allocation3 + $0x70] sm:$0xff]  ;;  %v3938_v25 = vpop.permute.xlu0 %3937 }
 0x8c8   :  { %6136 = vrcp.f32 %v3757_v38  ;;  %v4005_v38 = vmul.f32 %v7689_v13, %v7772_v51  ;;  %v4012_v53 = vmul.f32 %v7695_v16, %v7774_v44  ;;  %v4017_v42 = vmul.f32 %v7701_v61, %v7777_v21  ;;  %v7846_v52 = vld [vmem:[#allocation3 + $0x98] sm:$0xff] }
 0x8c9   :  { %6138 = vtanh.f32 %v3797_v20  ;;  %v3796_v14 = vadd.f32 %v3792_v19, %v3788_v55  ;;  %v4018_v63 = vmul.f32 %v7721_v35, %v7779_v22  ;;  %v4020_v45 = vmul.f32 %v7703_v62, %v7781_v47  ;;  %v7834_v55 = vld [vmem:[#allocation3 + $0xb8] sm:$0xff]  ;;  %v3957_v19 = vpop.permute.xlu1 %3956 }
 0x8ca   :  { %6140 = vrcp.f32 %v3756_v0  ;;  %v4006_v13 = vmul.f32 %v7715_v6, %v7788_v23  ;;  %v4008_v16 = vmul.f32 %v7691_v27, %v7790_v8  ;;  %v4013_v43 = vmul.f32 %v7697_v29, %v7792_v56  ;;  %v7857_v47 = vld [vmem:[#allocation3 + $0x58] sm:$0xff] }
 0x8cb   :  { %6142 = vtanh.f32 %v3796_v14  ;;  %v4045_v48 = vadd.f32 %v4044_v60, %v4043_v59  ;;  %v4014_v61 = vmul.f32 %v7719_v2, %v7799_v12  ;;  %v4021_v35 = vmul.f32 %v7705_v17, %v7801_v26  ;;  %v7848_v59 = vld [vmem:[#allocation3 + $0xd8] sm:$0xff]  ;;  %v6129_v60 = vpop.eup %6128 }
 0x8cc   :  { %v4022_v62 = vmul.f32 %v7723_v30, %v7803_v36  ;;  %v4093_v0 = vsel %vm353_vm3, %v4016_v10, 0.0  ;;  %v4009_v27 = vmul.f32 %v7693_v15, %v7811_v18  ;;  %v4010_v29 = vmul.f32 %v7717_v7, %v7813_v41 }
 0x8cd   :  { %v4054_v6 = vsel %vm353_vm3, %v4004_v37, 0.0  ;;  %v4055_v2 = vsel %vm353_vm3, %v4005_v38, 0.0  ;;  %v4080_v31 = vsel %vm353_vm3, %v4012_v53, 0.0  ;;  %v4094_v17 = vsel %vm353_vm3, %v4017_v42, 0.0 }
 0x8ce   :  { %v4096_v30 = vsel %vm353_vm3, %v4018_v63, 0.0  ;;  %v4106_v20 = vsel %vm353_vm3, %v4020_v45, 0.0  ;;  %v4057_v15 = vsel %vm353_vm3, %v4006_v13, 0.0  ;;  %v4067_v7 = vsel %vm353_vm3, %v4008_v16, 0.0  ;;  %v3976_v45 = vpop.permute.xlu0 %3975 }
 0x8cf   :  { %v4081_v14 = vsel %vm353_vm3, %v4013_v43, 0.0  ;;  %v4095_v10 = vadd.f32 %v4094_v17, %v4093_v0  ;;  %v4019_v37 = vmul.f32 %v3957_v19, %v7834_v55  ;;  %v4083_v38 = vsel %vm353_vm3, %v4014_v61, 0.0 }
 0x8d0   :  { %v4107_v53 = vsel %vm353_vm3, %v4021_v35, 0.0  ;;  %v4109_v42 = vsel %vm353_vm3, %v4022_v62, 0.0  ;;  %v4068_v13 = vsel %vm353_vm3, %v4009_v27, 0.0  ;;  %v4082_v16 = vadd.f32 %v4081_v14, %v4080_v31 }
 0x8d1   :  { %v4097_v43 = vadd.f32 %v4096_v30, %v4095_v10  ;;  %v4108_v0 = vadd.f32 %v4107_v53, %v4106_v20  ;;  %v4015_v19 = vmul.f32 %v3938_v25, %v7846_v52  ;;  %v4023_v61 = vmul.f32 %v3976_v45, %v7848_v59 }
 0x8d2   :  { %v6131_v63 = vpop.eup %6130  ;;  %v4070_v35 = vsel %vm353_vm3, %v4010_v29, 0.0  ;;  %v4056_v8 = vadd.f32 %v4055_v2, %v4054_v6  ;;  %v4069_v26 = vadd.f32 %v4068_v13, %v4067_v7  ;;  %v4084_v1 = vadd.f32 %v4083_v38, %v4082_v16  ;;  %v4345_v13 = vld [vmem:[%s8058_s5] sm:$0xff] }
 0x8d3   :  { %v6133_v17 = vpop.eup %6132  ;;  %v3803_v44 = vmul.f32 %v6131_v63, %v6129_v60  ;;  %v4110_v21 = vadd.f32 %v4109_v42, %v4108_v0  ;;  %v4007_v31 = vmul.f32 %v7765_v24, %v7857_v47  ;;  %v4011_v30 = vmul.f32 %v7797_v34, %v7859_v9  ;;  %5620 = vmatprep.mubr.msk.f32.mxu0 %vm1555_vm2, %v4345_v13 }
 0x8d4   :  { %v6135_v62 = vpop.eup %6134  ;;  %v4098_v25 = vsel %vm353_vm3, %v4019_v37, 0.0  ;;  %v4058_v14 = vadd.f32 %v4057_v15, %v4056_v8  ;;  %v4071_v29 = vadd.f32 %v4070_v35, %v4069_v26  ;;  %v4085_v7 = vsel %vm353_vm3, %v4015_v19, 0.0 }
 0x8d5   :  { %v6137_v54 = vpop.eup %6136  ;;  %3808 = vst.msk [vmem:[#allocation3 + $0xe8] sm:$0xff] %vm353_vm3, %v3803_v44  ;;  %v3802_v27 = vmul.f32 %v6135_v62, %v6133_v17  ;;  %v4099_v10 = vadd.f32 %v4098_v25, %v4097_v43  ;;  %v4046_v44 = vsel %vm353_vm3, %v7784_v46, 0.0  ;;  %v4111_v24 = vsel %vm353_vm3, %v4023_v61, 0.0  ;;  %v3995_v25 = vpop.permute.xlu1 %3994 }
 0x8d6   :  { %v6139_v20 = vpop.eup %6138  ;;  %v4033_v34 = vsel %vm353_vm3, %v7753_v39, 0.0  ;;  %v4047_v37 = vadd.f32 %v4046_v44, %v4045_v48  ;;  %v4086_v38 = vadd.f32 %v4085_v7, %v4084_v1  ;;  %v4112_v8 = vadd.f32 %v4111_v24, %v4110_v21 }
 0x8d7   :  { %v6141_v6 = vpop.eup %6140  ;;  %3807 = vst.msk [vmem:[#allocation3 + $0xe0] sm:$0xff] %vm353_vm3, %v3802_v27  ;;  %v3805_v2 = vmul.f32 %v6139_v20, %v6137_v54  ;;  %v4034_v15 = vadd.f32 %v4033_v34, %v7786_v50  ;;  %v4059_v54 = vsel %vm353_vm3, %v4007_v31, 0.0  ;;  %v4072_v46 = vsel %vm353_vm3, %v4011_v30, 0.0 }
 0x8d8   :  { %v6143_v60 = vpop.eup %6142  ;;  %v4060_v53 = vadd.f32 %v4059_v54, %v4058_v14  ;;  %v4073_v42 = vadd.f32 %v4072_v46, %v4071_v29  ;;  %v4100_v63 = vrot.slane %v4099_v10, 4  ;;  %v4048_v39 = vrot.slane %v4047_v37, 4 }
 0x8d9   :  { %3810 = vst.msk [vmem:[#allocation3 + $0xf8] sm:$0xff] %vm353_vm3, %v3805_v2  ;;  %v3804_v26 = vmul.f32 %v6143_v60, %v6141_v6  ;;  %v4087_v48 = vrot.slane %v4086_v38, 4  ;;  %v4113_v1 = vrot.slane %v4112_v8, 4  ;;  %v4035_v21 = vrot.slane %v4034_v15, 4 }
 0x8da   :  { %v4061_v16 = vrot.slane %v4060_v53, 4  ;;  %v4074_v43 = vrot.slane %v4073_v42, 4  ;;  %v4101_v0 = vadd.f32 %v4100_v63, %v4099_v10  ;;  %v4049_v35 = vadd.f32 %v4048_v39, %v4047_v37 }
 0x8db   :  { %3809 = vst.msk [vmem:[#allocation3 + $0xf0] sm:$0xff] %vm353_vm3, %v3804_v26  ;;  %v4088_v62 = vadd.f32 %v4087_v48, %v4086_v38  ;;  %v4114_v27 = vadd.f32 %v4113_v1, %v4112_v8  ;;  %v4036_v31 = vadd.f32 %v4035_v21, %v4034_v15 }
 0x8dc   :  { %v7883_v45 = vld [vmem:[#allocation3 + $0xe8] sm:$0xff]  ;;  %v4062_v14 = vadd.f32 %v4061_v16, %v4060_v53  ;;  %v4075_v29 = vadd.f32 %v4074_v43, %v4073_v42  ;;  %v4102_v10 = vrot.slane %v4101_v0, 2  ;;  %v4050_v2 = vrot.slane %v4049_v35, 2 }
 0x8dd   :  { %v4025_v19 = vmul.f32 %v7709_v33, %v7883_v45  ;;  %v4089_v44 = vrot.slane %v4088_v62, 2  ;;  %v4115_v7 = vrot.slane %v4114_v27, 2  ;;  %v4037_v60 = vrot.slane %v4036_v31, 2 }
 0x8de   :  { %v7888_v50 = vld [vmem:[#allocation3 + $0xe0] sm:$0xff]  ;;  %v4063_v37 = vrot.slane %v4062_v14, 2  ;;  %v4076_v38 = vrot.slane %v4075_v29, 2  ;;  %v4103_v8 = vadd.f32 %v4102_v10, %v4101_v0  ;;  %v4051_v54 = vadd.f32 %v4050_v2, %v4049_v35 }
 0x8df   :  { %v4024_v17 = vmul.f32 %v7707_v11, %v7888_v50  ;;  %v4120_v33 = vsel %vm353_vm3, %v4025_v19, 0.0  ;;  %v4090_v46 = vadd.f32 %v4089_v44, %v4088_v62  ;;  %v4038_v42 = vadd.f32 %v4037_v60, %v4036_v31 }
 0x8e0   :  { %v7895_v61 = vld [vmem:[#allocation3 + $0xf8] sm:$0xff]  ;;  %v4064_v63 = vadd.f32 %v4063_v37, %v4062_v14  ;;  %v4077_v39 = vadd.f32 %v4076_v38, %v4075_v29  ;;  %v4104_v48 = vrot.slane %v4103_v8, 1  ;;  %v4052_v21 = vrot.slane %v4051_v54, 1 }
 0x8e1   :  { %v4119_v30 = vsel %vm353_vm3, %v4024_v17, 0.0  ;;  %v4027_v6 = vmul.f32 %v3995_v25, %v7895_v61  ;;  %v4091_v13 = vrot.slane %v4090_v46, 1  ;;  %v4039_v17 = vrot.slane %v4038_v42, 1 }
 0x8e2   :  { %v7898_v20 = vld [vmem:[#allocation3 + $0xf0] sm:$0xff]  ;;  %v4121_v24 = vadd.f32 %v4120_v33, %v4119_v30  ;;  %v4065_v19 = vrot.slane %v4064_v63, 1  ;;  %v4078_v30 = vrot.slane %v4077_v39, 1  ;;  %v4105_v0 = vadd.f32 %v4104_v48, %v4103_v8 }
 0x8e3   :  { %v4026_v11 = vmul.f32 %v7735_v57, %v7898_v20  ;;  %v4124_v15 = vsel %vm353_vm3, %v4027_v6, 0.0  ;;  %v4116_v57 = vadd.f32 %v4115_v7, %v4114_v27  ;;  %v4053_v10 = vadd.f32 %v4052_v21, %v4051_v54 }
 0x8e4   :  { %v4040_v27 = vadd.f32 %v4039_v17, %v4038_v42  ;;  %v4066_v6 = vadd.f32 %v4065_v19, %v4064_v63  ;;  %v4079_v31 = vadd.f32 %v4078_v30, %v4077_v39  ;;  %v4138_v29 = vsel %vm353_vm3, %v4105_v0, -inf }
 0x8e5   :  { %v4122_v34 = vsel %vm353_vm3, %v4026_v11, 0.0  ;;  %v4117_v16 = vrot.slane %v4116_v57, 1  ;;  %v4092_v11 = vadd.f32 %v4091_v13, %v4090_v46  ;;  %v4133_v2 = vsel %vm353_vm3, %v4053_v10, -inf }
 0x8e6   :  { %v4123_v26 = vadd.f32 %v4122_v34, %v4121_v24  ;;  %v4139_v24 = vmax.f32 %v4133_v2, %v4138_v29  ;;  %v4132_v60 = vsel %vm353_vm3, %v4040_v27, -inf  ;;  %v4134_v34 = vsel %vm353_vm3, %v4066_v6, -inf }
 0x8e7   :  { %v4118_v35 = vadd.f32 %v4117_v16, %v4116_v57  ;;  %v4136_v44 = vsel %vm353_vm3, %v4092_v11, -inf  ;;  %v4135_v37 = vsel %vm353_vm3, %v4079_v31, -inf }
 0x8e8   :  { %v4125_v53 = vadd.f32 %v4124_v15, %v4123_v26  ;;  %v4137_v8 = vmax.f32 %v4132_v60, %v4136_v44 }
 0x8e9   :  { %v4140_v7 = vsel %vm353_vm3, %v4118_v35, -inf }
 0x8ea   :  { %v4126_v1 = vrot.slane %v4125_v53, 4  ;;  %v4141_v26 = vmax.f32 %v4134_v34, %v4140_v7  ;;  %v4144_v54 = vmax.f32 %v4137_v8, %v4139_v24 }
 0x8ec   :  { %v4127_v43 = vadd.f32 %v4126_v1, %v4125_v53 }
 0x8ee   :  { %v4128_v25 = vrot.slane %v4127_v43, 2 }
 0x8f0   :  { %v4129_v62 = vadd.f32 %v4128_v25, %v4127_v43 }
 0x8f2   :  { %v4130_v14 = vrot.slane %v4129_v62, 1 }
 0x8f4   :  { %v4131_v33 = vadd.f32 %v4130_v14, %v4129_v62 }
 0x8f6   :  { %v4142_v38 = vsel %vm353_vm3, %v4131_v33, -inf }
 0x8f7   :  { %v4143_v15 = vmax.f32 %v4135_v37, %v4142_v38 }
 0x8f9   :  { %v4145_v46 = vmax.f32 %v4141_v26, %v4143_v15 }
 0x8fb   :  { %v4146_v57 = vmax.f32 %v4144_v54, %v4145_v46 }
 0x8fd   :  { %v4147_v53 = vsub.f32 %v4040_v27, %v4146_v57  ;;  %v4148_v42 = vsub.f32 %v4053_v10, %v4146_v57  ;;  %v4149_v63 = vsub.f32 %v4066_v6, %v4146_v57  ;;  %v4150_v39 = vsub.f32 %v4079_v31, %v4146_v57 }
 0x8fe   :  { %v4151_v48 = vsub.f32 %v4092_v11, %v4146_v57  ;;  %v4152_v1 = vsub.f32 %v4105_v0, %v4146_v57  ;;  %v4153_v21 = vsub.f32 %v4118_v35, %v4146_v57  ;;  %v4154_v17 = vsub.f32 %v4131_v33, %v4146_v57 }
 0x8ff   :  { %v4155_v13 = vmul.f32 1.442695, %v4147_v53  ;;  %v4157_v16 = vmul.f32 1.442695, %v4148_v42  ;;  %v4159_v43 = vmul.f32 1.442695, %v4149_v63 }
 0x900   :  { %v4161_v19 = vmul.f32 1.442695, %v4150_v39  ;;  %v4163_v30 = vmul.f32 1.442695, %v4151_v48  ;;  %v4165_v25 = vmul.f32 1.442695, %v4152_v1 }
 0x901   :  { %6144 = vpow2.f32 %v4155_v13  ;;  %v4167_v62 = vmul.f32 1.442695, %v4153_v21  ;;  %v4169_v14 = vmul.f32 1.442695, %v4154_v17 }
 0x902   :  { %6146 = vpow2.f32 %v4157_v16 }
 0x903   :  { %6148 = vpow2.f32 %v4159_v43 }
 0x904   :  { %6150 = vpow2.f32 %v4161_v19 }
 0x905   :  { %6152 = vpow2.f32 %v4163_v30 }
 0x906   :  { %6154 = vpow2.f32 %v4165_v25 }
 0x907   :  { %6156 = vpow2.f32 %v4167_v62 }
 0x908   :  { %6158 = vpow2.f32 %v4169_v14 }
 0x90e   :  { %v6145_v10 = vpop.eup %6144 }
 0x90f   :  { %v6147_v0 = vpop.eup %6146 }
 0x910   :  { %v6149_v11 = vpop.eup %6148  ;;  %v4179_v35 = vrot.slane %v6147_v0, 7 }
 0x911   :  { %v6151_v27 = vpop.eup %6150  ;;  %v4182_v6 = vrot.slane %v6149_v11, 6 }
 0x912   :  { %v6153_v31 = vpop.eup %6152  ;;  %v4181_v29 = vsel %vm4180_vm4, %v4179_v35, %v6145_v10  ;;  %v4185_v33 = vrot.slane %v6151_v27, 5 }
 0x913   :  { %v6155_v2 = vpop.eup %6154  ;;  %v4184_v44 = vsel %vm4183_vm5, %v4182_v6, %v4181_v29  ;;  %v4188_v7 = vrot.slane %v6153_v31, 4 }
 0x914   :  { %v6157_v24 = vpop.eup %6156  ;;  %v4187_v60 = vsel %vm4186_vm6, %v4185_v33, %v4184_v44  ;;  %v4191_v34 = vrot.slane %v6155_v2, 3 }
 0x915   :  { %v6159_v37 = vpop.eup %6158  ;;  %v4190_v38 = vsel %vm4189_vm7, %v4188_v7, %v4187_v60  ;;  %v4194_v8 = vrot.slane %v6157_v24, 2 }
 0x916   :  { %v4193_v26 = vsel %vm4192_vm8, %v4191_v34, %v4190_v38  ;;  %v4197_v15 = vrot.slane %v6159_v37, 1 }
 0x917   :  { %v4196_v54 = vsel %vm4195_vm9, %v4194_v8, %v4193_v26 }
 0x918   :  { %v4199_v46 = vsel %vm4198_vm10, %v4197_v15, %v4196_v54 }
 0x919   :  { %v4201_v57 = vsel %vm353_vm3, %v4199_v46, 0.0 }
 0x91a   :  { %v4202_v53 = vrot.slane %v4201_v57, 4 }
 0x91c   :  { %v4203_v42 = vadd.f32 %v4202_v53, %v4201_v57 }
 0x91e   :  { %v4204_v63 = vrot.slane %v4203_v42, 2 }
 0x920   :  { %v4205_v39 = vadd.f32 %v4204_v63, %v4203_v42 }
 0x922   :  { %v4206_v48 = vrot.slane %v4205_v39, 1 }
 0x924   :  { %v4207_v1 = vadd.f32 %v4206_v48, %v4205_v39 }
 0x926   :  { %v4211_v21 = vrot.slane %v4207_v1, %v6489_v40 }
 0x928   :  { %6160 = vrcp.f32 %v4211_v21 }
 0x935   :  { %v6161_v13 = vpop.eup %6160 }
 0x936   :  { %v4213_v16 = vmul.f32 %v6161_v13, %v6145_v10  ;;  %v4214_v43 = vmul.f32 %v6161_v13, %v6147_v0  ;;  %v4215_v17 = vmul.f32 %v6161_v13, %v6149_v11  ;;  %v4216_v19 = vmul.f32 %v6161_v13, %v6151_v27 }
 0x937   :  { %v4217_v30 = vmul.f32 %v6161_v13, %v6153_v31  ;;  %v4218_v25 = vmul.f32 %v6161_v13, %v6155_v2  ;;  %v4219_v62 = vmul.f32 %v6161_v13, %v6157_v24  ;;  %v4220_v33 = vmul.f32 %v6161_v13, %v6159_v37 }
 0x938   :  { %v4224_v14 = vrot.slane %v4213_v16, %v6489_v40  ;;  %v4228_v35 = vrot.slane %v4214_v43, %v6489_v40  ;;  %v7919_v6 = vrot.slane %v4215_v17, %v6489_v40  ;;  %v7922_v29 = vrot.slane %v4216_v19, %v6489_v40 }
 0x939   :  { %v7925_v44 = vrot.slane %v4217_v30, %v6489_v40  ;;  %v7928_v10 = vrot.slane %v4218_v25, %v6489_v40  ;;  %v7935_v31 = vrot.slane %v4219_v62, %v6489_v40  ;;  %v7942_v60 = vrot.slane %v4220_v33, %v6489_v40 }
 0x93a   :  { %v4256_v0 = vmul.f32 %v4224_v14, %v7739_v4  ;;  %v4260_v11 = vmul.f32 %v4228_v35, %v7761_v58  ;;  %v4264_v27 = vmul.f32 %v7919_v6, %v7857_v47  ;;  %v4268_v2 = vmul.f32 %v7922_v29, %v7859_v9 }
 0x93b   :  { %v4272_v4 = vmul.f32 %v7925_v44, %v7846_v52  ;;  %v4276_v58 = vmul.f32 %v7928_v10, %v7834_v55  ;;  %v4255_v37 = vmul.f32 %v4224_v14, %v7729_v49  ;;  %v4259_v9 = vmul.f32 %v4228_v35, %v7750_v5 }
 0x93c   :  { %v4330_v7 = vsel %vm353_vm3, %v4256_v0, 0.0  ;;  %v4331_v24 = vsel %vm353_vm3, %v4260_v11, 0.0  ;;  %v4333_v34 = vsel %vm353_vm3, %v4264_v27, 0.0  ;;  %v4263_v38 = vmul.f32 %v7919_v6, %v7788_v23  ;;  %v8076_v27 = vld [vmem:[#allocation4_spill] sm:$0xff] }
 0x93d   :  { %v4332_v47 = vadd.f32 %v4331_v24, %v4330_v7  ;;  %v4280_v40 = vmul.f32 %v7935_v31, %v7848_v59  ;;  %v4335_v26 = vsel %vm353_vm3, %v4268_v2, 0.0  ;;  %v4267_v52 = vmul.f32 %v7922_v29, %v7813_v41  ;;  %v8077_v24 = vld [vmem:[#allocation8_spill] sm:$0xff] }
 0x93e   :  { %v4315_v55 = vsel %vm353_vm3, %v4255_v37, 0.0  ;;  %v4316_v15 = vsel %vm353_vm3, %v4259_v9, 0.0  ;;  %v4284_v49 = vmul.f32 %v7942_v60, %v7895_v61  ;;  %v4337_v23 = vsel %vm353_vm3, %v4272_v4, 0.0  ;;  %v8080_v9 = vld [vmem:[#allocation10_spill] sm:$0xff] }
 0x93f   :  { %v4334_v8 = vadd.f32 %v4333_v34, %v4332_v47  ;;  %v4317_v54 = vadd.f32 %v4316_v15, %v4315_v55  ;;  %v4339_v46 = vsel %vm353_vm3, %v4276_v58, 0.0  ;;  %v4271_v59 = vmul.f32 %v7925_v44, %v7799_v12  ;;  %v8078_v58 = vld [vmem:[#allocation6_spill] sm:$0xff] }
 0x940   :  { %v4318_v57 = vsel %vm353_vm3, %v4263_v38, 0.0  ;;  %v4254_v42 = vmul.f32 %v4224_v14, %v7725_v32  ;;  %v4258_v63 = vmul.f32 %v4228_v35, %v7744_v3  ;;  %v4341_v39 = vsel %vm353_vm3, %v4280_v40, 0.0 }
 0x941   :  { %v4336_v5 = vadd.f32 %v4335_v26, %v4334_v8  ;;  %v4319_v41 = vadd.f32 %v4318_v57, %v4317_v54  ;;  %v4275_v61 = vmul.f32 %v7928_v10, %v7779_v22  ;;  %v4320_v48 = vsel %vm353_vm3, %v4267_v52, 0.0 }
 0x942   :  { %v4262_v1 = vmul.f32 %v7919_v6, %v7772_v51  ;;  %v4343_v12 = vsel %vm353_vm3, %v4284_v49, 0.0  ;;  %v4279_v13 = vmul.f32 %v7935_v31, %v7803_v36  ;;  %v4322_v32 = vsel %vm353_vm3, %v4271_v59, 0.0  ;;  %v8081_v49 = vld [vmem:[#allocation7_spill] sm:$0xff]  ;;  %v8082_v59 = vld [vmem:[#allocation5_spill] sm:$0xff] }
 0x943   :  { %v4338_v53 = vadd.f32 %v4337_v23, %v4336_v5  ;;  %v4321_v16 = vadd.f32 %v4320_v48, %v4319_v41  ;;  %v4266_v3 = vmul.f32 %v7922_v29, %v7811_v18  ;;  %v4300_v43 = vsel %vm353_vm3, %v4254_v42, 0.0 }
 0x944   :  { %v4301_v22 = vsel %vm353_vm3, %v4258_v63, 0.0  ;;  %v4283_v51 = vmul.f32 %v7942_v60, %v7898_v20  ;;  %v4324_v25 = vsel %vm353_vm3, %v4275_v61, 0.0  ;;  %v4270_v36 = vmul.f32 %v7925_v44, %v7792_v56  ;;  %v8083_v63 = vld [vmem:[#allocation9_spill] sm:$0xff] }
 0x945   :  { %v4340_v21 = vadd.f32 %v4339_v46, %v4338_v53  ;;  %v4323_v19 = vadd.f32 %v4322_v32, %v4321_v16  ;;  %v4302_v30 = vadd.f32 %v4301_v22, %v4300_v43  ;;  %v4303_v62 = vsel %vm353_vm3, %v4262_v1, 0.0  ;;  %v4356_v43 = vpop.permute.xlu0 %4355 }
 0x946   :  { %v4253_v33 = vmul.f32 %v4224_v14, %v7727_v28  ;;  %v4257_v2 = vmul.f32 %v4228_v35, %v8076_v27  ;;  %v4326_v7 = vsel %vm353_vm3, %v4279_v13, 0.0  ;;  %v4274_v20 = vmul.f32 %v7928_v10, %v8077_v24  ;;  %v8079_v28 = vld [vmem:[#allocation11_spill] sm:$0xff] }
 0x947   :  { %v4342_v17 = vadd.f32 %v4341_v39, %v4340_v21  ;;  %v4325_v0 = vadd.f32 %v4324_v25, %v4323_v19  ;;  %v4304_v11 = vadd.f32 %v4303_v62, %v4302_v30  ;;  %v4305_v4 = vsel %vm353_vm3, %v4266_v3, 0.0  ;;  %v4361_v3 = vpop.permute.xlu1 %4360 }
 0x948   :  { %v4261_v47 = vmul.f32 %v7919_v6, %v8078_v58  ;;  %v4328_v34 = vsel %vm353_vm3, %v4283_v51, 0.0  ;;  %v4278_v14 = vmul.f32 %v7935_v31, %v8079_v28  ;;  %v4307_v35 = vsel %vm353_vm3, %v4270_v36, 0.0 }
 0x949   :  { %v4344_v18 = vadd.f32 %v4343_v12, %v4342_v17  ;;  %v4327_v56 = vadd.f32 %v4326_v7, %v4325_v0  ;;  %v4306_v37 = vadd.f32 %v4305_v4, %v4304_v11  ;;  %v4265_v38 = vmul.f32 %v7922_v29, %v8080_v9 }
 0x94a   :  { %v4285_v40 = vsel %vm353_vm3, %v4253_v33, 0.0  ;;  %v4286_v8 = vsel %vm353_vm3, %v4257_v2, 0.0  ;;  %v4282_v55 = vmul.f32 %v7942_v60, %v7883_v45  ;;  %v4309_v15 = vsel %vm353_vm3, %v4274_v20, 0.0 }
 0x94b   :  { %5612 = vmatprep.subr.mxu0 %v4344_v18  ;;  %v4329_v26 = vadd.f32 %v4328_v34, %v4327_v56  ;;  %v4308_v6 = vadd.f32 %v4307_v35, %v4306_v37  ;;  %v4287_v52 = vadd.f32 %v4286_v8, %v4285_v40  ;;  %v4269_v5 = vmul.f32 %v7925_v44, %v8081_v49  ;;  %v4371_v25 = vpop.permute.xlu1 %4370 }
 0x94c   :  { %5613 = vmatpush3.msra.mxu0 %v4344_v18  ;;  %v4288_v54 = vsel %vm353_vm3, %v4261_v47, 0.0  ;;  %v4311_v46 = vsel %vm353_vm3, %v4278_v14, 0.0  ;;  %v4273_v57 = vmul.f32 %v7928_v10, %v8082_v59  ;;  %v4290_v53 = vsel %vm353_vm3, %v4265_v38, 0.0  ;;  %v4366_v18 = vpop.permute.xlu0 %4365 }
 0x94d   :  { %5614 = vmatprep.subr.mxu0 %v4329_v26  ;;  %v4310_v23 = vadd.f32 %v4309_v15, %v4308_v6  ;;  %v4289_v29 = vadd.f32 %v4288_v54, %v4287_v52  ;;  %v4313_v42 = vsel %vm353_vm3, %v4282_v55, 0.0  ;;  %v4277_v44 = vmul.f32 %v7935_v31, %v8083_v63  ;;  %v4346_v31 = vld [vmem:[%s8058_s5 + $0x8] sm:$0xff] }
 0x94e   :  { %5615 = vmatpush3.msra.mxu0 %v4329_v26  ;;  %v4292_v39 = vsel %vm353_vm3, %v4269_v5, 0.0  ;;  %v4281_v1 = vmul.f32 %v7942_v60, %v7888_v50  ;;  %v4294_v21 = vsel %vm353_vm3, %v4273_v57, 0.0  ;;  %v4347_v50 = vld [vmem:[%s8058_s5 + $0x10] sm:$0xff]  ;;  %v4348_v60 = vld [vmem:[%s8058_s5 + $0x18] sm:$0xff] }
 0x94f   :  { %v4312_v41 = vadd.f32 %v4311_v46, %v4310_v23  ;;  %v4291_v45 = vadd.f32 %v4290_v53, %v4289_v29  ;;  %v4296_v12 = vsel %vm353_vm3, %v4277_v44, 0.0 }
 0x950   :  { %v4298_v16 = vsel %vm353_vm3, %v4281_v1, 0.0 }
 0x951   :  { %v4314_v61 = vadd.f32 %v4313_v42, %v4312_v41  ;;  %v4293_v48 = vadd.f32 %v4292_v39, %v4291_v45 }
 0x953   :  { %5616 = vmatprep.subr.mxu0 %v4314_v61  ;;  %v4295_v10 = vadd.f32 %v4294_v21, %v4293_v48 }
 0x954   :  { %5617 = vmatpush3.msra.mxu0 %v4314_v61 }
 0x955   :  { %v4297_v13 = vadd.f32 %v4296_v12, %v4295_v10 }
 0x957   :  { %v4299_v32 = vadd.f32 %v4298_v16, %v4297_v13 }
 0x959   :  { %5618 = vmatprep.subr.mxu0 %v4299_v32 }
 0x95a   :  { %5619 = vmatpush3.msra.mxu0 %v4299_v32 }
 0x95b   :  { %5621 = vmatmul.mubr.msk.f32.vlgmr.msra.gmra.mxu0 %vm1555_vm2, %v4346_v31 }
 0x95c   :  { %5623 = vmatprep.mubr.msk.f32.mxu0 %vm1555_vm2, %v4347_v50 }
 0x95f   :  { %5624 = vmatmul.mubr.msk.f32.gmra.mxu0 %vm1555_vm2, %v4348_v60 }
 0xa1b   :  { %v5622_v22 = vpop.f32.mrf.mxu0 }
 0xa1c   :  { %v4457_v17 = vadd.f32 %v5622_v22, %v4361_v3 }
 0xa1d   :  { %v4451_v51 = vpop.f32.mrf.mxu0 }
 0xa1e   :  { %v4471_v19 = vmax.f32 %v4457_v17, 0.0  ;;  %v4452_v30 = vadd.f32 %v4451_v51, %v4356_v43 }
 0xa1f   :  { %v5625_v36 = vpop.f32.mrf.mxu0 }
 0xa20   :  { %4475 = vst.msk [vmem:[%s8059_s7 + $0x8] sm:$0xff] %vm353_vm3, %v4471_v19  ;;  %v4470_v62 = vmax.f32 %v4452_v30, 0.0  ;;  %v4467_v33 = vadd.f32 %v5625_v36, %v4371_v25 }
 0xa21   :  { %v4461_v0 = vpop.f32.mrf.mxu0 }
 0xa22   :  { %4474 = vst.msk [vmem:[%s8059_s7] sm:$0xff] %vm353_vm3, %v4470_v62  ;;  %v4473_v11 = vmax.f32 %v4467_v33, 0.0  ;;  %v4462_v27 = vadd.f32 %v4461_v0, %v4366_v18 }
 0xa24   :  { %4477 = vst.msk [vmem:[%s8059_s7 + $0x18] sm:$0xff] %vm353_vm3, %v4473_v11  ;;  %v4472_v2 = vmax.f32 %v4462_v27, 0.0 }
 0xa26   :  { %4476 = vst.msk [vmem:[%s8059_s7 + $0x10] sm:$0xff] %vm353_vm3, %v4472_v2 }

</bundles_post_ra>
